<compile_context>
chip_gen: v7x
topology: tpu7x:2x2x1
jax: 0.10.0
libtpu: 0.0.40
codegen_flags: <defaults>
</compile_context>

<pallas_src>
import math

import jax
import jax.numpy as jnp
from jax.experimental import pallas as pl
from jax.experimental.pallas import tpu as pltpu

LANE = 128
SUBLANE_BF16 = 16


def _silu(x):
    return x * jax.nn.sigmoid(x)


def _round_up(n, m):
    return ((n + m - 1) // m) * m


def _pad2(a, rows, cols):
    r, c = a.shape
    return jnp.pad(a, ((0, rows - r), (0, cols - c)))


def res_policy_kernel(t_ref, x_ref,
                      w_x_ref, w_t_ref, b_ref, w_h_ref,
                      w_out_ref, b_out_ref,
                      out_ref):
    f32 = jnp.float32
    bf16 = jnp.bfloat16
    T = w_t_ref.shape[0]
    half = T // 2

    def dot(a, w):
        # bf16 MXU operands, f32 accumulation.
        return jnp.dot(a, w, preferred_element_type=f32)

    # ---- sinusoidal timestep embedding, concat([cos, sin]) built lane-wise --
    lane = jax.lax.broadcasted_iota(jnp.int32, (1, T), 1)
    j = jnp.where(lane < half, lane, lane - half).astype(f32)
    freqs = jnp.exp(j * (-math.log(10000.0) / half))               # [1, T]
    args = t_ref[...] * freqs                                      # [tile, T]
    t_emb = jnp.where(lane < half, jnp.cos(args), jnp.sin(args)).astype(bf16)

    x_b = x_ref[...].astype(bf16)                                  # [tile, D]

    # ---- first layers (independent): x stem + t hidden ---------------------
    h0 = dot(x_b, w_x_ref[...]) + b_ref[0]                         # [tile, Hp] f32
    th = _silu(dot(t_emb, w_t_ref[...]) + b_ref[1])                # [tile, Hp] f32

    # ---- t_module second Linear (long-lived temp kept in bf16) -------------
    t_out = (dot(th.astype(bf16), w_h_ref[0]) + b_ref[2]).astype(bf16)

    # ---- x_module: one res block of 3x (Linear -> SiLU), residual / sqrt(2) -
    r = _silu(dot(h0.astype(bf16), w_h_ref[1]) + b_ref[3]).astype(bf16)
    r = _silu(dot(r, w_h_ref[2]) + b_ref[4]).astype(bf16)
    r = _silu(dot(r, w_h_ref[3]) + b_ref[5])
    h = (h0 + r) * (1.0 / math.sqrt(2.0))

    # ---- out_module: Linear -> SiLU -> Linear on (x_out + t_out) -----------
    y = _silu(dot((h + t_out.astype(f32)).astype(bf16), w_h_ref[4]) + b_ref[6])
    out_ref[...] = (dot(y.astype(bf16), w_out_ref[...])
                    + b_out_ref[...]).astype(out_ref.dtype)


def init_params(key, data_dim, hidden_dim, time_embed_dim):
    """Deterministic torch-Linear-style init; weights stored as [in, out]."""
    def linear(key, fan_in, fan_out):
        kw, kb = jax.random.split(key)
        bound = 1.0 / math.sqrt(fan_in)
        w = jax.random.uniform(kw, (fan_in, fan_out), jnp.float32, -bound, bound)
        b = jax.random.uniform(kb, (1, fan_out), jnp.float32, -bound, bound)
        return w, b

    keys = jax.random.split(key, 9)
    hid = hidden_dim
    p = {}
    p["tw1"], p["tb1"] = linear(keys[0], time_embed_dim, hid)
    p["tw2"], p["tb2"] = linear(keys[1], hid, hid)
    p["xwm"], p["xbm"] = linear(keys[2], data_dim, hid)
    p["rw1"], p["rb1"] = linear(keys[3], hid, hid)
    p["rw2"], p["rb2"] = linear(keys[4], hid, hid)
    p["rw3"], p["rb3"] = linear(keys[5], hid, hid)
    p["ow1"], p["ob1"] = linear(keys[6], hid, hid)
    p["ow2"], p["ob2"] = linear(keys[7], hid, data_dim)
    return p


def res_policy_forward(params, x, t, time_embed_dim, *, tile_n_max=1024):
    """x: [N, data_dim] f32, t: scalar or [N] f32 -> [N, data_dim] f32."""
    assert time_embed_dim % 2 == 0, "even time_embed_dim assumed"
    if t.ndim == 0:
        t = jnp.broadcast_to(t, (x.shape[0],))

    N, D = x.shape
    H = params["tb1"].shape[-1]
    T = time_embed_dim
    Hp = _round_up(H, LANE)
    bf16, f32 = jnp.bfloat16, jnp.float32

    # ---- batch tiling: tile sized to the real batch ------------------------
    #   >= 2 grid steps (dual-TC split on v7x via "parallel"), even step count,
    #   tile a multiple of 16 rows (bf16 sublane packing), <= tile_n_max rows.
    steps = max(2, -(-N // tile_n_max))
    steps += steps % 2
    tile_n = _round_up(-(-N // steps), SUBLANE_BF16)
    Np = tile_n * steps

    # ---- weight prep: lane-padded bf16 weights, stacked/consolidated -------
    w_x = _pad2(params["xwm"], D, Hp).astype(bf16)                   # [D, Hp]
    w_t = _pad2(params["tw1"], T, Hp).astype(bf16)                   # [T, Hp]
    w_h = jnp.stack([_pad2(params[k], Hp, Hp)
                     for k in ("tw2", "rw1", "rw2", "rw3", "ow1")]
                    ).astype(bf16)                                   # [5, Hp, Hp]
    b_stk = jnp.stack([_pad2(params[k], 1, Hp)
                       for k in ("xbm", "tb1", "tb2", "rb1", "rb2", "rb3", "ob1")]
                      ).astype(f32)                                  # [7, 1, Hp]
    w_out = _pad2(params["ow2"], Hp, D).astype(bf16)                 # [Hp, D]
    b_out = params["ob2"].astype(f32)                                # [1, D]

    # ---- batch operands: unpadded feature dims, rows padded to Np ----------
    x_p = jnp.pad(x.astype(f32), ((0, Np - N), (0, 0)))              # [Np, D]
    t_p = jnp.pad(t.astype(f32)[:, None], ((0, Np - N), (0, 0)))     # [Np, 1]

    def batch_spec(feat):
        return pl.BlockSpec((tile_n, feat), lambda i: (i, 0))

    def const_spec(a):
        zeros = (0,) * a.ndim     # same block every step -> stays resident
        return pl.BlockSpec(a.shape, lambda i: zeros)

    in_specs = [batch_spec(1), batch_spec(D),
                const_spec(w_x), const_spec(w_t), const_spec(b_stk),
                const_spec(w_h), const_spec(w_out), const_spec(b_out)]

    out = pl.pallas_call(
        res_policy_kernel,
        out_shape=jax.ShapeDtypeStruct((Np, D), jnp.float32),
        grid=(steps,),
        in_specs=in_specs,
        out_specs=batch_spec(D),
        compiler_params=pltpu.CompilerParams(
            dimension_semantics=("parallel",),      # dual-TC split on v7x
            vmem_limit_bytes=32 * 1024 * 1024),     # safe on v5e/v6e/v7x
    )(t_p, x_p, w_x, w_t, b_stk, w_h, w_out, b_out)
    return out[:N]


def res_policy_reference(params, x, t, time_embed_dim):
    """Pure-JAX f32 reference replicating the PyTorch forward."""
    if t.ndim == 0:
        t = t[None]
    half = time_embed_dim // 2
    freqs = jnp.exp(-math.log(10000.0) * jnp.arange(half, dtype=jnp.float32) / half)
    args = t.astype(jnp.float32)[:, None] * freqs[None, :]
    t_emb = jnp.concatenate([jnp.cos(args), jnp.sin(args)], axis=-1)

    silu = lambda v: v * jax.nn.sigmoid(v)
    t_out = silu(t_emb @ params["tw1"] + params["tb1"]) @ params["tw2"] + params["tb2"]

    h = x @ params["xwm"] + params["xbm"]
    r = silu(h @ params["rw1"] + params["rb1"])
    r = silu(r @ params["rw2"] + params["rb2"])
    r = silu(r @ params["rw3"] + params["rb3"])
    h = (h + r) / math.sqrt(2.0)

    y = silu((h + t_out) @ params["ow1"] + params["ob1"])
    return y @ params["ow2"] + params["ob2"]


if __name__ == "__main__":
    N = 300                 # not a multiple of the tile -> exercises padding
    data_dim = 4
    hidden_dim = 32
    time_embed_dim = 16
    # num_res_block = 1 (hard-coded: one res block of 3 Linear+SiLU layers)

    key = jax.random.PRNGKey(0)
    kx, kt, kp = jax.random.split(key, 3)
    x = jax.random.normal(kx, (N, data_dim), dtype=jnp.float32)
    t = jax.random.uniform(kt, (N,), dtype=jnp.float32) * 1000.0

    params = init_params(kp, data_dim, hidden_dim, time_embed_dim)

    # vector-t path (2 grid steps of 160 rows each; 20 padding rows total)
    out = jax.block_until_ready(res_policy_forward(params, x, t, time_embed_dim))
    ref = res_policy_reference(params, x, t, time_embed_dim)
    assert out.shape == (N, data_dim)
    assert jnp.allclose(out, ref, rtol=5e-2, atol=5e-2), \
        float(jnp.max(jnp.abs(out - ref)))

    # scalar-t broadcast path
    t_scalar = jnp.float32(37.5)
    out_s = jax.block_until_ready(
        res_policy_forward(params, x, t_scalar, time_embed_dim))
    ref_s = res_policy_reference(params, x, t_scalar, time_embed_dim)
    assert jnp.allclose(out_s, ref_s, rtol=5e-2, atol=5e-2), \
        float(jnp.max(jnp.abs(out_s - ref_s)))

    print("KERNEL_OK")
</pallas_src>

<mosaic_0001>
module attributes {stable_mosaic.version = 11 : i64} {
  func.func @res_policy_kernel(%arg0: i32, %arg1: memref<160x1xf32, #tpu.memory_space<vmem>>, %arg2: memref<160x4xf32, #tpu.memory_space<vmem>>, %arg3: memref<4x128xbf16, #tpu.memory_space<vmem>>, %arg4: memref<16x128xbf16, #tpu.memory_space<vmem>>, %arg5: memref<7x1x128xf32, #tpu.memory_space<vmem>>, %arg6: memref<5x128x128xbf16, #tpu.memory_space<vmem>>, %arg7: memref<128x4xbf16, #tpu.memory_space<vmem>>, %arg8: memref<1x4xf32, #tpu.memory_space<vmem>>, %arg9: memref<160x4xf32, #tpu.memory_space<vmem>>) attributes {dimension_semantics = [#tpu.dimension_semantics<parallel>], iteration_bounds = array<i64: 2>, scalar_prefetch = 0 : i64, scratch_operands = 0 : i64, tpu.core_type = #tpu.core_type<tc>, window_params = [{transform_indices = @transform_0, window_bounds = array<i64: 160, 1>}, {transform_indices = @transform_1, window_bounds = array<i64: 160, 4>}, {pipeline_mode = #tpu.pipeline_mode<synchronous>, transform_indices = @transform_2, window_bounds = array<i64: 4, 128>}, {pipeline_mode = #tpu.pipeline_mode<synchronous>, transform_indices = @transform_3, window_bounds = array<i64: 16, 128>}, {pipeline_mode = #tpu.pipeline_mode<synchronous>, transform_indices = @transform_4, window_bounds = array<i64: 7, 1, 128>}, {pipeline_mode = #tpu.pipeline_mode<synchronous>, transform_indices = @transform_5, window_bounds = array<i64: 5, 128, 128>}, {pipeline_mode = #tpu.pipeline_mode<synchronous>, transform_indices = @transform_6, window_bounds = array<i64: 128, 4>}, {pipeline_mode = #tpu.pipeline_mode<synchronous>, transform_indices = @transform_7, window_bounds = array<i64: 1, 4>}, {transform_indices = @transform_8, window_bounds = array<i64: 160, 4>}]} {
    %0 = tpu.iota {dimensions = array<i32: 1>} : vector<1x16xi32>
    %c8_i32 = arith.constant 8 : i32
    %1 = vector.broadcast %c8_i32 : i32 to vector<1x16xi32>
    %2 = arith.cmpi slt, %0, %1 : vector<1x16xi32>
    %c8_i32_0 = arith.constant 8 : i32
    %3 = vector.broadcast %c8_i32_0 : i32 to vector<1x16xi32>
    %4 = arith.subi %0, %3 : vector<1x16xi32>
    %5 = arith.select %2, %0, %4 : vector<1x16xi1>, vector<1x16xi32>
    %6 = arith.sitofp %5 : vector<1x16xi32> to vector<1x16xf32>
    %cst = arith.constant -1.15129256 : f32
    %7 = vector.broadcast %cst : f32 to vector<1x16xf32>
    %8 = arith.mulf %6, %7 : vector<1x16xf32>
    %9 = math.exp %8 : vector<1x16xf32>
    %c0 = arith.constant 0 : index
    %c0_1 = arith.constant 0 : index
    %10 = vector.load %arg1[%c0, %c0_1] : memref<160x1xf32, #tpu.memory_space<vmem>>, vector<160x1xf32>
    %11 = vector.broadcast %10 : vector<160x1xf32> to vector<160x16xf32>
    %12 = vector.broadcast %9 : vector<1x16xf32> to vector<160x16xf32>
    %13 = arith.mulf %11, %12 : vector<160x16xf32>
    %c8_i32_2 = arith.constant 8 : i32
    %14 = vector.broadcast %c8_i32_2 : i32 to vector<1x16xi32>
    %15 = arith.cmpi slt, %0, %14 : vector<1x16xi32>
    %16 = math.cos %13 : vector<160x16xf32>
    %17 = math.sin %13 : vector<160x16xf32>
    %18 = vector.shape_cast %15 : vector<1x16xi1> to vector<1x16xi1>
    %19 = vector.broadcast %18 : vector<1x16xi1> to vector<160x16xi1>
    %20 = arith.select %19, %16, %17 : vector<160x16xi1>, vector<160x16xf32>
    %21 = arith.truncf %20 : vector<160x16xf32> to vector<160x16xbf16>
    %c0_3 = arith.constant 0 : index
    %c0_4 = arith.constant 0 : index
    %22 = vector.load %arg2[%c0_3, %c0_4] : memref<160x4xf32, #tpu.memory_space<vmem>>, vector<160x4xf32>
    %23 = arith.truncf %22 : vector<160x4xf32> to vector<160x4xbf16>
    %c0_5 = arith.constant 0 : index
    %c0_6 = arith.constant 0 : index
    %24 = vector.load %arg3[%c0_5, %c0_6] : memref<4x128xbf16, #tpu.memory_space<vmem>>, vector<4x128xbf16>
    %cst_7 = arith.constant dense<0.000000e+00> : vector<160x128xf32>
    %25 = tpu.matmul %23, %24, %cst_7 {dimension_numbers = #tpu.dot_dimension_numbers<[1], [0], [0], [1], [0, 0, 1, 1], [], []>} : vector<160x4xbf16>, vector<4x128xbf16>, vector<160x128xf32> -> vector<160x128xf32>
    %c0_8 = arith.constant 0 : index
    %c0_9 = arith.constant 0 : index
    %c0_10 = arith.constant 0 : index
    %26 = vector.load %arg5[%c0_8, %c0_9, %c0_10] : memref<7x1x128xf32, #tpu.memory_space<vmem>>, vector<1x1x128xf32>
    %27 = vector.shape_cast %26 : vector<1x1x128xf32> to vector<1x128xf32>
    %28 = vector.broadcast %27 : vector<1x128xf32> to vector<160x128xf32>
    %29 = arith.addf %25, %28 : vector<160x128xf32>
    %c0_11 = arith.constant 0 : index
    %c0_12 = arith.constant 0 : index
    %30 = vector.load %arg4[%c0_11, %c0_12] : memref<16x128xbf16, #tpu.memory_space<vmem>>, vector<16x128xbf16>
    %cst_13 = arith.constant dense<0.000000e+00> : vector<160x128xf32>
    %31 = tpu.matmul %21, %30, %cst_13 {dimension_numbers = #tpu.dot_dimension_numbers<[1], [0], [0], [1], [0, 0, 1, 1], [], []>} : vector<160x16xbf16>, vector<16x128xbf16>, vector<160x128xf32> -> vector<160x128xf32>
    %c1 = arith.constant 1 : index
    %c0_14 = arith.constant 0 : index
    %c0_15 = arith.constant 0 : index
    %32 = vector.load %arg5[%c1, %c0_14, %c0_15] : memref<7x1x128xf32, #tpu.memory_space<vmem>>, vector<1x1x128xf32>
    %33 = vector.shape_cast %32 : vector<1x1x128xf32> to vector<1x128xf32>
    %34 = vector.broadcast %33 : vector<1x128xf32> to vector<160x128xf32>
    %35 = arith.addf %31, %34 : vector<160x128xf32>
    %36 = arith.negf %35 : vector<160x128xf32>
    %37 = math.exp %36 : vector<160x128xf32>
    %cst_16 = arith.constant 1.000000e+00 : f32
    %38 = vector.broadcast %cst_16 : f32 to vector<160x128xf32>
    %39 = arith.addf %38, %37 : vector<160x128xf32>
    %40 = arith.divf %38, %39 : vector<160x128xf32>
    %41 = arith.mulf %35, %40 : vector<160x128xf32>
    %42 = arith.truncf %41 : vector<160x128xf32> to vector<160x128xbf16>
    %c0_17 = arith.constant 0 : index
    %c0_18 = arith.constant 0 : index
    %c0_19 = arith.constant 0 : index
    %43 = vector.load %arg6[%c0_17, %c0_18, %c0_19] : memref<5x128x128xbf16, #tpu.memory_space<vmem>>, vector<1x128x128xbf16>
    %44 = vector.shape_cast %43 : vector<1x128x128xbf16> to vector<128x128xbf16>
    %cst_20 = arith.constant dense<0.000000e+00> : vector<160x128xf32>
    %45 = tpu.matmul %42, %44, %cst_20 {dimension_numbers = #tpu.dot_dimension_numbers<[1], [0], [0], [1], [0, 0, 1, 1], [], []>} : vector<160x128xbf16>, vector<128x128xbf16>, vector<160x128xf32> -> vector<160x128xf32>
    %c2 = arith.constant 2 : index
    %c0_21 = arith.constant 0 : index
    %c0_22 = arith.constant 0 : index
    %46 = vector.load %arg5[%c2, %c0_21, %c0_22] : memref<7x1x128xf32, #tpu.memory_space<vmem>>, vector<1x1x128xf32>
    %47 = vector.shape_cast %46 : vector<1x1x128xf32> to vector<1x128xf32>
    %48 = vector.broadcast %47 : vector<1x128xf32> to vector<160x128xf32>
    %49 = arith.addf %45, %48 : vector<160x128xf32>
    %50 = arith.truncf %49 : vector<160x128xf32> to vector<160x128xbf16>
    %51 = arith.truncf %29 : vector<160x128xf32> to vector<160x128xbf16>
    %c1_23 = arith.constant 1 : index
    %c0_24 = arith.constant 0 : index
    %c0_25 = arith.constant 0 : index
    %52 = vector.load %arg6[%c1_23, %c0_24, %c0_25] : memref<5x128x128xbf16, #tpu.memory_space<vmem>>, vector<1x128x128xbf16>
    %53 = vector.shape_cast %52 : vector<1x128x128xbf16> to vector<128x128xbf16>
    %cst_26 = arith.constant dense<0.000000e+00> : vector<160x128xf32>
    %54 = tpu.matmul %51, %53, %cst_26 {dimension_numbers = #tpu.dot_dimension_numbers<[1], [0], [0], [1], [0, 0, 1, 1], [], []>} : vector<160x128xbf16>, vector<128x128xbf16>, vector<160x128xf32> -> vector<160x128xf32>
    %c3 = arith.constant 3 : index
    %c0_27 = arith.constant 0 : index
    %c0_28 = arith.constant 0 : index
    %55 = vector.load %arg5[%c3, %c0_27, %c0_28] : memref<7x1x128xf32, #tpu.memory_space<vmem>>, vector<1x1x128xf32>
    %56 = vector.shape_cast %55 : vector<1x1x128xf32> to vector<1x128xf32>
    %57 = vector.broadcast %56 : vector<1x128xf32> to vector<160x128xf32>
    %58 = arith.addf %54, %57 : vector<160x128xf32>
    %59 = arith.negf %58 : vector<160x128xf32>
    %60 = math.exp %59 : vector<160x128xf32>
    %cst_29 = arith.constant 1.000000e+00 : f32
    %61 = vector.broadcast %cst_29 : f32 to vector<160x128xf32>
    %62 = arith.addf %61, %60 : vector<160x128xf32>
    %63 = arith.divf %61, %62 : vector<160x128xf32>
    %64 = arith.mulf %58, %63 : vector<160x128xf32>
    %65 = arith.truncf %64 : vector<160x128xf32> to vector<160x128xbf16>
    %c2_30 = arith.constant 2 : index
    %c0_31 = arith.constant 0 : index
    %c0_32 = arith.constant 0 : index
    %66 = vector.load %arg6[%c2_30, %c0_31, %c0_32] : memref<5x128x128xbf16, #tpu.memory_space<vmem>>, vector<1x128x128xbf16>
    %67 = vector.shape_cast %66 : vector<1x128x128xbf16> to vector<128x128xbf16>
    %cst_33 = arith.constant dense<0.000000e+00> : vector<160x128xf32>
    %68 = tpu.matmul %65, %67, %cst_33 {dimension_numbers = #tpu.dot_dimension_numbers<[1], [0], [0], [1], [0, 0, 1, 1], [], []>} : vector<160x128xbf16>, vector<128x128xbf16>, vector<160x128xf32> -> vector<160x128xf32>
    %c4 = arith.constant 4 : index
    %c0_34 = arith.constant 0 : index
    %c0_35 = arith.constant 0 : index
    %69 = vector.load %arg5[%c4, %c0_34, %c0_35] : memref<7x1x128xf32, #tpu.memory_space<vmem>>, vector<1x1x128xf32>
    %70 = vector.shape_cast %69 : vector<1x1x128xf32> to vector<1x128xf32>
    %71 = vector.broadcast %70 : vector<1x128xf32> to vector<160x128xf32>
    %72 = arith.addf %68, %71 : vector<160x128xf32>
    %73 = arith.negf %72 : vector<160x128xf32>
    %74 = math.exp %73 : vector<160x128xf32>
    %cst_36 = arith.constant 1.000000e+00 : f32
    %75 = vector.broadcast %cst_36 : f32 to vector<160x128xf32>
    %76 = arith.addf %75, %74 : vector<160x128xf32>
    %77 = arith.divf %75, %76 : vector<160x128xf32>
    %78 = arith.mulf %72, %77 : vector<160x128xf32>
    %79 = arith.truncf %78 : vector<160x128xf32> to vector<160x128xbf16>
    %c3_37 = arith.constant 3 : index
    %c0_38 = arith.constant 0 : index
    %c0_39 = arith.constant 0 : index
    %80 = vector.load %arg6[%c3_37, %c0_38, %c0_39] : memref<5x128x128xbf16, #tpu.memory_space<vmem>>, vector<1x128x128xbf16>
    %81 = vector.shape_cast %80 : vector<1x128x128xbf16> to vector<128x128xbf16>
    %cst_40 = arith.constant dense<0.000000e+00> : vector<160x128xf32>
    %82 = tpu.matmul %79, %81, %cst_40 {dimension_numbers = #tpu.dot_dimension_numbers<[1], [0], [0], [1], [0, 0, 1, 1], [], []>} : vector<160x128xbf16>, vector<128x128xbf16>, vector<160x128xf32> -> vector<160x128xf32>
    %c5 = arith.constant 5 : index
    %c0_41 = arith.constant 0 : index
    %c0_42 = arith.constant 0 : index
    %83 = vector.load %arg5[%c5, %c0_41, %c0_42] : memref<7x1x128xf32, #tpu.memory_space<vmem>>, vector<1x1x128xf32>
    %84 = vector.shape_cast %83 : vector<1x1x128xf32> to vector<1x128xf32>
    %85 = vector.broadcast %84 : vector<1x128xf32> to vector<160x128xf32>
    %86 = arith.addf %82, %85 : vector<160x128xf32>
    %87 = arith.negf %86 : vector<160x128xf32>
    %88 = math.exp %87 : vector<160x128xf32>
    %cst_43 = arith.constant 1.000000e+00 : f32
    %89 = vector.broadcast %cst_43 : f32 to vector<160x128xf32>
    %90 = arith.addf %89, %88 : vector<160x128xf32>
    %91 = arith.divf %89, %90 : vector<160x128xf32>
    %92 = arith.mulf %86, %91 : vector<160x128xf32>
    %93 = arith.addf %29, %92 : vector<160x128xf32>
    %cst_44 = arith.constant 0.707106769 : f32
    %94 = vector.broadcast %cst_44 : f32 to vector<160x128xf32>
    %95 = arith.mulf %93, %94 : vector<160x128xf32>
    %96 = arith.extf %50 : vector<160x128xbf16> to vector<160x128xf32>
    %97 = arith.addf %95, %96 : vector<160x128xf32>
    %98 = arith.truncf %97 : vector<160x128xf32> to vector<160x128xbf16>
    %c4_45 = arith.constant 4 : index
    %c0_46 = arith.constant 0 : index
    %c0_47 = arith.constant 0 : index
    %99 = vector.load %arg6[%c4_45, %c0_46, %c0_47] : memref<5x128x128xbf16, #tpu.memory_space<vmem>>, vector<1x128x128xbf16>
    %100 = vector.shape_cast %99 : vector<1x128x128xbf16> to vector<128x128xbf16>
    %cst_48 = arith.constant dense<0.000000e+00> : vector<160x128xf32>
    %101 = tpu.matmul %98, %100, %cst_48 {dimension_numbers = #tpu.dot_dimension_numbers<[1], [0], [0], [1], [0, 0, 1, 1], [], []>} : vector<160x128xbf16>, vector<128x128xbf16>, vector<160x128xf32> -> vector<160x128xf32>
    %c6 = arith.constant 6 : index
    %c0_49 = arith.constant 0 : index
    %c0_50 = arith.constant 0 : index
    %102 = vector.load %arg5[%c6, %c0_49, %c0_50] : memref<7x1x128xf32, #tpu.memory_space<vmem>>, vector<1x1x128xf32>
    %103 = vector.shape_cast %102 : vector<1x1x128xf32> to vector<1x128xf32>
    %104 = vector.broadcast %103 : vector<1x128xf32> to vector<160x128xf32>
    %105 = arith.addf %101, %104 : vector<160x128xf32>
    %106 = arith.negf %105 : vector<160x128xf32>
    %107 = math.exp %106 : vector<160x128xf32>
    %cst_51 = arith.constant 1.000000e+00 : f32
    %108 = vector.broadcast %cst_51 : f32 to vector<160x128xf32>
    %109 = arith.addf %108, %107 : vector<160x128xf32>
    %110 = arith.divf %108, %109 : vector<160x128xf32>
    %111 = arith.mulf %105, %110 : vector<160x128xf32>
    %112 = arith.truncf %111 : vector<160x128xf32> to vector<160x128xbf16>
    %c0_52 = arith.constant 0 : index
    %c0_53 = arith.constant 0 : index
    %113 = vector.load %arg7[%c0_52, %c0_53] : memref<128x4xbf16, #tpu.memory_space<vmem>>, vector<128x4xbf16>
    %cst_54 = arith.constant dense<0.000000e+00> : vector<160x4xf32>
    %114 = tpu.matmul %112, %113, %cst_54 {dimension_numbers = #tpu.dot_dimension_numbers<[1], [0], [0], [1], [0, 0, 1, 1], [], []>} : vector<160x128xbf16>, vector<128x4xbf16>, vector<160x4xf32> -> vector<160x4xf32>
    %c0_55 = arith.constant 0 : index
    %c0_56 = arith.constant 0 : index
    %115 = vector.load %arg8[%c0_55, %c0_56] : memref<1x4xf32, #tpu.memory_space<vmem>>, vector<1x4xf32>
    %116 = vector.broadcast %115 : vector<1x4xf32> to vector<160x4xf32>
    %117 = arith.addf %114, %116 : vector<160x4xf32>
    %c0_57 = arith.constant 0 : index
    %c0_58 = arith.constant 0 : index
    %118 = vector.load %arg9[%c0_57, %c0_58] : memref<160x4xf32, #tpu.memory_space<vmem>>, vector<160x4xf32>
    tpu.vector_store %arg9[%c0_57, %c0_58], %117 {strides = array<i32>} : memref<160x4xf32, #tpu.memory_space<vmem>>, vector<160x4xf32>,
    return
  }
  func.func @transform_0(%arg0: i32) -> (i32, i32) {
    %c0_i32 = arith.constant 0 : i32
    %c0_i32_0 = arith.constant 0 : i32
    return %arg0, %c0_i32 : i32, i32
  }
  func.func @transform_1(%arg0: i32) -> (i32, i32) {
    %c0_i32 = arith.constant 0 : i32
    %c0_i32_0 = arith.constant 0 : i32
    return %arg0, %c0_i32 : i32, i32
  }
  func.func @transform_2(%arg0: i32) -> (i32, i32) {
    %c0_i32 = arith.constant 0 : i32
    %c0_i32_0 = arith.constant 0 : i32
    %c0_i32_1 = arith.constant 0 : i32
    return %c0_i32, %c0_i32_0 : i32, i32
  }
  func.func @transform_3(%arg0: i32) -> (i32, i32) {
    %c0_i32 = arith.constant 0 : i32
    %c0_i32_0 = arith.constant 0 : i32
    %c0_i32_1 = arith.constant 0 : i32
    return %c0_i32, %c0_i32_0 : i32, i32
  }
  func.func @transform_4(%arg0: i32) -> (i32, i32, i32) {
    %c0_i32 = arith.constant 0 : i32
    %c0_i32_0 = arith.constant 0 : i32
    %c0_i32_1 = arith.constant 0 : i32
    %c0_i32_2 = arith.constant 0 : i32
    return %c0_i32, %c0_i32_0, %c0_i32_1 : i32, i32, i32
  }
  func.func @transform_5(%arg0: i32) -> (i32, i32, i32) {
    %c0_i32 = arith.constant 0 : i32
    %c0_i32_0 = arith.constant 0 : i32
    %c0_i32_1 = arith.constant 0 : i32
    %c0_i32_2 = arith.constant 0 : i32
    return %c0_i32, %c0_i32_0, %c0_i32_1 : i32, i32, i32
  }
  func.func @transform_6(%arg0: i32) -> (i32, i32) {
    %c0_i32 = arith.constant 0 : i32
    %c0_i32_0 = arith.constant 0 : i32
    %c0_i32_1 = arith.constant 0 : i32
    return %c0_i32, %c0_i32_0 : i32, i32
  }
  func.func @transform_7(%arg0: i32) -> (i32, i32) {
    %c0_i32 = arith.constant 0 : i32
    %c0_i32_0 = arith.constant 0 : i32
    %c0_i32_1 = arith.constant 0 : i32
    return %c0_i32, %c0_i32_0 : i32, i32
  }
  func.func @transform_8(%arg0: i32) -> (i32, i32) {
    %c0_i32 = arith.constant 0 : i32
    %c0_i32_0 = arith.constant 0 : i32
    return %arg0, %c0_i32 : i32, i32
  }
}

</mosaic_0001>

<bundles_post_ra>
// kernel: tpu_custom_call.1
= control target key start
LH: loop header
LB: loop body
LE: loop exit
PB: predicated region body
PF: predicated region fallthrough
CT: control target
= control target key end

     0   :  { %s8548_s27 = smov 0   ;;  %s11666_s0 = inlined_call_operand.vmem [shape: f32[320,1], index: 0, kind: input, shape index: {}]   ;;  %s11667_s1 = inlined_call_operand.vmem [shape: f32[320,4], index: 1, kind: input, shape index: {}]   ;;  %s11668_s2 = inlined_call_operand.vmem [shape: bf16[4,128], index: 2, kind: input, shape index: {}]   ;;  %s11669_s3 = inlined_call_operand.vmem [shape: bf16[16,128], index: 3, kind: input, shape index: {}]   ;;  %s11670_s4 = inlined_call_operand.vmem [shape: f32[7,1,128], index: 4, kind: input, shape index: {}]   ;;  %s11671_s5 = inlined_call_operand.vmem [shape: bf16[5,128,128], index: 5, kind: input, shape index: {}]   ;;  %s11672_s6 = inlined_call_operand.vmem [shape: bf16[128,4], index: 6, kind: input, shape index: {}]   ;;  %s11673_s7 = inlined_call_operand.vmem [shape: f32[1,4], index: 7, kind: input, shape index: {}]   ;;  %s11674_s8 = inlined_call_operand.vmem [shape: f32[320,4], index: 8, kind: output, shape index: {}]  }
   0x1 LB: > { %s7050_s28 = sadd.s32 4294967295, %s8494_s27   ;;  %p7054_p0 = scmp.ge.s32.totalorder %s8494_s27, 1  ;;  %s8494_s27 = sphi %s8548_s27, %s18_s27  }
   0x2   : > { %p274_p1 = scmp.lt.s32.totalorder %s8494_s27, 3 }
   0x4   : > { %p275_p2 = pnand %p7054_p0, %p274_p1 }
   0x6   : > { %278 = sbr.rel (%p275_p2) target bundleno = 1975 (0x7b7), region = 52 }
   0xd   : > { %s313_s29 = smul.u32 20, %s7050_s28  ;;  %v4683_v0 = vld [vmem:[%s11668_s2] sm:$0x3]  ;;  %vm4722_vm0 = vcmask 1041408   ;;  %v8496_v1 = vmov 0   ;;  %vm4691_vm1 = vcmask 31744   ;;  %v332_v53 = vlaneseq }
   0xe   : > { %7955 = vset.pattern.permute.xlu1 %v8496_v1  ;;  %7954 = vset.pattern.permute.xlu0 %v8496_v1  ;;  %v4724_v2 = vsel %vm4722_vm0, %v4683_v0, 0 }
   0xf   : > { %p314_p3 = scmp.lt.s32.totalorder %s313_s29, 39  ;;  %7858 = vmatprep.subr.msk.bf16.mxu0 %vm4722_vm0, %v4683_v0  ;;  %v8623_v54 = vand.u32 127, %v332_v53 }
  0x10   : > { %7599 = vmatpush3.bf16.msra.mxu0 %v4724_v2 }
  0x11   : > { %s12009_s29 = smov (!%p314_p3, %s313_s29), 39  ;;  %11776 = vst [vmem:[#allocation2_spill] sm:$0xff] %v8623_v54  ;;  %v7058_v55 = vadd.s32 4294967288, %v8623_v54  ;;  %vm334_vm2 = vcmp.lt.s32.totalorder %v8623_v54, 8 }
  0x12   : > { %s8559_s10 = sshll.u32 %s12009_s29, 3 }
  0x13   : > { %s8565_s13 = scalar_lea.vmem %s11666_s0, %s8559_s10  ;;  %s8575_s16 = scalar_lea.vmem %s11667_s1, %s8559_s10  ;;  %v336_v56 = vsel %vm334_vm2, %v8623_v54, %v7058_v55 }
  0x14   : > { %v343_v3 = vld [vmem:[%s8565_s13 + $0x10] sm:$0xff]  ;;  %v341_v4 = vld [vmem:[%s8565_s13] sm:$0xff]  ;;  %v344_v5 = vld [vmem:[%s8565_s13 + $0x18] sm:$0xff]  ;;  %v337_v57 = vcvt.s32.f32 %v336_v56  ;;  %s11621_s15 = scalar_lea.vmem %s11674_s8, %s8559_s10 }
  0x15   : > { %373 = vperm.xlu1 %7955, %v343_v3   ;;  %363 = vperm.xlu0 %7954, %v341_v4   ;;  %v342_v6 = vld [vmem:[%s8565_s13 + $0x8] sm:$0xff]  ;;  %v345_v8 = vld [vmem:[%s8565_s13 + $0x20] sm:$0xff]  ;;  %v4655_v11 = vld [vmem:[%s8575_s16 + $0x10] sm:$0xff] }
  0x16   : > { %v346_v7 = vld [vmem:[%s8565_s13 + $0x28] sm:$0xff]  ;;  %v4653_v9 = vld [vmem:[%s8575_s16] sm:$0xff]  ;;  %v4656_v13 = vld [vmem:[%s8575_s16 + $0x18] sm:$0xff]  ;;  %v338_v58 = vmul.f32 -1.1512926, %v337_v57 }
  0x17   : > { %v4654_v10 = vld [vmem:[%s8575_s16 + $0x8] sm:$0xff]  ;;  %v4674_v14 = vpack.c.bf16 %v4656_v13, %v4655_v11  ;;  %v4657_v15 = vld [vmem:[%s8575_s16 + $0x20] sm:$0xff]  ;;  %v348_v18 = vld [vmem:[%s8565_s13 + $0x38] sm:$0xff] }
  0x18   : > { %v4673_v12 = vpack.c.bf16 %v4654_v10, %v4653_v9  ;;  %v4658_v16 = vld [vmem:[%s8575_s16 + $0x28] sm:$0xff]  ;;  %v347_v19 = vld [vmem:[%s8565_s13 + $0x30] sm:$0xff]  ;;  %v349_v21 = vld [vmem:[%s8565_s13 + $0x40] sm:$0xff]  ;;  %v339_v59 = vmul.f32 1.442695, %v338_v58 }
  0x19   : > { %378 = vperm.xlu1 %7955, %v344_v5   ;;  %368 = vperm.xlu0 %7954, %v342_v6   ;;  %v4675_v17 = vpack.c.bf16 %v4658_v16, %v4657_v15  ;;  %v350_v20 = vld [vmem:[%s8565_s13 + $0x48] sm:$0xff]  ;;  %v4659_v22 = vld [vmem:[%s8575_s16 + $0x30] sm:$0xff]  ;;  %v4660_v23 = vld [vmem:[%s8575_s16 + $0x38] sm:$0xff] }
  0x1a   : > { %7600 = vmatprep.mubr.msk.bf16.mxu0 %vm4691_vm1, %v4673_v12  ;;  %v4661_v24 = vld [vmem:[%s8575_s16 + $0x40] sm:$0xff]  ;;  %v4662_v25 = vld [vmem:[%s8575_s16 + $0x48] sm:$0xff]  ;;  %v4676_v26 = vpack.c.bf16 %v4660_v23, %v4659_v22  ;;  %v352_v27 = vld [vmem:[%s8565_s13 + $0x58] sm:$0xff]  ;;  %8005 = vpow2.f32 %v339_v59 }
  0x1b   : > { %7601 = vmatmul.mubr.msk.bf16.vlgmr.msra.gmra.mrb[0].mxu0 %vm4691_vm1, %v4674_v14  ;;  %v351_v28 = vld [vmem:[%s8565_s13 + $0x50] sm:$0xff]  ;;  %v4677_v29 = vpack.c.bf16 %v4662_v25, %v4661_v24  ;;  %v4664_v31 = vld [vmem:[%s8575_s16 + $0x58] sm:$0xff]  ;;  %v4665_v32 = vld [vmem:[%s8575_s16 + $0x60] sm:$0xff] }
  0x1c   : > { %7604 = vmatprep.mubr.msk.bf16.mxu0 %vm4691_vm1, %v4675_v17  ;;  %v4663_v30 = vld [vmem:[%s8575_s16 + $0x50] sm:$0xff]  ;;  %v4666_v33 = vld [vmem:[%s8575_s16 + $0x68] sm:$0xff]  ;;  %v353_v35 = vld [vmem:[%s8565_s13 + $0x60] sm:$0xff] }
  0x1d   : > { %388 = vperm.xlu1 %7955, %v346_v7   ;;  %383 = vperm.xlu0 %7954, %v345_v8   ;;  %v354_v34 = vld [vmem:[%s8565_s13 + $0x68] sm:$0xff]  ;;  %v4678_v36 = vpack.c.bf16 %v4664_v31, %v4663_v30  ;;  %v356_v37 = vld [vmem:[%s8565_s13 + $0x78] sm:$0xff]  ;;  %v355_v38 = vld [vmem:[%s8565_s13 + $0x70] sm:$0xff]  ;;  %v4679_v39 = vpack.c.bf16 %v4666_v33, %v4665_v32  ;;  %v11693_v31 = vmov 683565275  }
  0x1e   : > { %v4667_v40 = vld [vmem:[%s8575_s16 + $0x70] sm:$0xff]  ;;  %v4668_v41 = vld [vmem:[%s8575_s16 + $0x78] sm:$0xff]  ;;  %v4669_v42 = vld [vmem:[%s8575_s16 + $0x80] sm:$0xff] }
  0x1f   : > { %v4670_v43 = vld [vmem:[%s8575_s16 + $0x88] sm:$0xff]  ;;  %v357_v45 = vld [vmem:[%s8565_s13 + $0x80] sm:$0xff]  ;;  %v4680_v46 = vpack.c.bf16 %v4668_v41, %v4667_v40  ;;  %v360_v47 = vld [vmem:[%s8565_s13 + $0x98] sm:$0xff]  ;;  %v11687_v41 = vmov 920167782  }
  0x20   : > { %v358_v44 = vld [vmem:[%s8565_s13 + $0x88] sm:$0xff]  ;;  %v359_v48 = vld [vmem:[%s8565_s13 + $0x90] sm:$0xff]  ;;  %v4681_v49 = vpack.c.bf16 %v4670_v43, %v4669_v42  ;;  %v4672_v51 = vld [vmem:[%s8575_s16 + $0x98] sm:$0xff] }
  0x21   : > { %398 = vperm.xlu1 %7955, %v348_v18   ;;  %393 = vperm.xlu0 %7954, %v347_v19   ;;  %v4671_v50 = vld [vmem:[%s8575_s16 + $0x90] sm:$0xff] }
  0x22   : > { %v4682_v52 = vpack.c.bf16 %v4672_v51, %v4671_v50 }
  0x23   : > { %7605 = vmatmul.mubr.msk.bf16.gmra.mrb[4].mxu0 %vm4691_vm1, %v4676_v26 }
  0x24   : > { %7608 = vmatprep.mubr.msk.bf16.mxu0 %vm4691_vm1, %v4677_v29  ;;  %v8630_v60 = vpop.eup %8005 }
  0x25   : > { %408 = vperm.xlu1 %7955, %v350_v20   ;;  %403 = vperm.xlu0 %7954, %v349_v21  }
  0x29   : > { %418 = vperm.xlu1 %7955, %v352_v27   ;;  %413 = vperm.xlu0 %7954, %v351_v28  }
  0x2b   : > { %7609 = vmatmul.mubr.msk.bf16.gmra.mrb[8].mxu0 %vm4691_vm1, %v4678_v36 }
  0x2c   : > { %7612 = vmatprep.mubr.msk.bf16.mxu0 %vm4691_vm1, %v4679_v39  ;;  %v11682_v39 = vmov 2102212464  }
  0x2d   : > { %428 = vperm.xlu1 %7955, %v354_v34   ;;  %423 = vperm.xlu0 %7954, %v353_v35   ;;  %v11677_v35 = vmov 2475754826  }
  0x31   : > { %438 = vperm.xlu1 %7955, %v356_v37   ;;  %433 = vperm.xlu0 %7954, %v355_v38   ;;  %v11679_v37 = vmov 2131351028  }
  0x33   : > { %7613 = vmatmul.mubr.msk.bf16.gmra.mrb[12].mxu0 %vm4691_vm1, %v4680_v46 }
  0x34   : > { %7616 = vmatprep.mubr.msk.bf16.mxu0 %vm4691_vm1, %v4681_v49 }
  0x35   : > { %448 = vperm.xlu1 %7955, %v358_v44   ;;  %443 = vperm.xlu0 %7954, %v357_v45  }
  0x39   : > { %458 = vperm.xlu1 %7955, %v360_v47   ;;  %453 = vperm.xlu0 %7954, %v359_v48   ;;  %v11685_v48 = vmov 1326507024  }
  0x3b   : > { %7617 = vmatmul.mubr.msk.bf16.gmra.mrb[16].mxu0 %vm4691_vm1, %v4682_v52 }
  0x94   : > { %v374_v61 = vpop.permute.xlu1 %373  ;;  %v364_v62 = vpop.permute.xlu0 %363 }
  0x95   : > { %v8633_v63 = vmul.f32 %v8630_v60, %v374_v61  ;;  %v8636_v0 = vmul.f32 %v8630_v60, %v364_v62 }
  0x97   : > { %11777 = vst [vmem:[#allocation3_spill] sm:$0xff] %v8633_v63  ;;  %v687_v1 = vand.u32 2147483647, %v8633_v63  ;;  %v690_v2 = vand.u32 2139095040, %v8633_v63  ;;  %v481_v3 = vand.u32 2147483647, %v8636_v0 }
  0x98   : > { %v484_v4 = vand.u32 2139095040, %v8636_v0  ;;  %v379_v5 = vpop.permute.xlu1 %378  ;;  %v369_v19 = vpop.permute.xlu0 %368 }
  0x99   : > { %v691_v6 = vshrl.u32 %v690_v2, 23  ;;  %v8643_v7 = vmul.f32 %v8630_v60, %v379_v5  ;;  %v694_v8 = vand.u32 8388607, %v687_v1  ;;  %v488_v10 = vand.u32 8388607, %v481_v3 }
  0x9a   : > { %v485_v9 = vshrl.u32 %v484_v4, 23  ;;  %v8651_v25 = vmul.f32 %v8630_v60, %v369_v19 }
  0x9b   : > { %11778 = vst [vmem:[#allocation4_spill] sm:$0xff] %v8643_v7  ;;  %v7067_v11 = vadd.s32 4294967169, %v691_v6  ;;  %v793_v13 = vand.u32 2139095040, %v8643_v7  ;;  %v695_v15 = vor.u32 8388608, %v694_v8  ;;  %v489_v16 = vor.u32 8388608, %v488_v10 }
  0x9c   : > { %v7059_v12 = vadd.s32 4294967169, %v485_v9  ;;  %v790_v29 = vand.u32 2147483647, %v8643_v7 }
  0x9d   : > { %v697_v14 = vadd.s32 1, %v7067_v11  ;;  %v794_v18 = vshrl.u32 %v793_v13, 23  ;;  %v8653_v26 = vshll.u32 %v695_v15, 8  ;;  %v8657_v28 = vshll.u32 %v489_v16, 8 }
  0x9e   : > { %v491_v17 = vadd.s32 1, %v7059_v12 }
  0x9f   : > { %vm698_vm3 = vcmp.gt.s32.totalorder %v697_v14, 0  ;;  %v7071_v21 = vadd.s32 4294967169, %v794_v18 }
  0xa0   : > { %v699_v20 = vsel %vm698_vm3, %v697_v14, 0  ;;  %vm492_vm4 = vcmp.gt.s32.totalorder %v491_v17, 0 }
  0xa1   : > { %v700_v22 = vshrl.u32 %v699_v20, 5  ;;  %v701_v23 = vand.u32 31, %v699_v20  ;;  %v493_v24 = vsel %vm492_vm4, %v491_v17, 0  ;;  %v8661_v34 = vadd.s32 1, %v7071_v21 }
  0xa2   : > { %v8655_v27 = vshrl.u32 %v493_v24, 5  ;;  %v495_v33 = vand.u32 31, %v493_v24 }
  0xa3   : > { %v702_v30 = vsub.s32 32, %v701_v23  ;;  %v704_v32 = vshll.u32 %v11693_v31, %v701_v23  ;;  %v707_v36 = vshll.u32 %v11677_v35, %v701_v23  ;;  %v710_v38 = vshll.u32 %v11679_v37, %v701_v23 }
  0xa4   : > { %v713_v40 = vshll.u32 %v11682_v39, %v701_v23  ;;  %v716_v42 = vshll.u32 %v11687_v41, %v701_v23  ;;  %vm719_vm5 = vcmp.lt.s32.totalorder %v700_v22, 1  ;;  %vm720_vm6 = vcmp.lt.s32.totalorder %v700_v22, 2 }
  0xa5   : > { %v705_v43 = vshrl.u32 %v11677_v35, %v702_v30  ;;  %v708_v44 = vshrl.u32 %v11679_v37, %v702_v30  ;;  %v711_v45 = vshrl.u32 %v11682_v39, %v702_v30  ;;  %v703_v46 = vshrl.u32 %v11693_v31, %v702_v30 }
  0xa6   : > { %v714_v47 = vshrl.u32 %v11687_v41, %v702_v30  ;;  %v717_v49 = vshrl.u32 %v11685_v48, %v702_v30  ;;  %v496_v53 = vsub.s32 32, %v495_v33  ;;  %vm721_vm7 = vcmp.lt.s32.totalorder %v700_v22, 3 }
  0xa7   : > { %v706_v50 = vor.u32 %v705_v43, %v704_v32  ;;  %v709_v51 = vor.u32 %v708_v44, %v707_v36  ;;  %v712_v52 = vor.u32 %v711_v45, %v710_v38  ;;  %vm722_vm8 = vcmp.lt.s32.totalorder %v700_v22, 4 }
  0xa8   : > { %v715_v55 = vor.u32 %v714_v47, %v713_v40  ;;  %v718_v56 = vor.u32 %v717_v49, %v716_v42  ;;  %v498_v5 = vshll.u32 %v11693_v31, %v495_v33  ;;  %v499_v9 = vshrl.u32 %v11677_v35, %v496_v53 }
  0xa9   : > { %v723_v57 = vsel %vm719_vm5, %v703_v46, %v706_v50  ;;  %v724_v58 = vsel %vm722_vm8, %v712_v52, 2102212464  ;;  %v727_v59 = vsel %vm719_vm5, %v706_v50, %v709_v51  ;;  %v731_v61 = vsel %vm719_vm5, %v709_v51, %v712_v52 }
  0xaa   : > { %v725_v62 = vsel %vm721_vm7, %v709_v51, %v724_v58  ;;  %v728_v2 = vsel %vm722_vm8, %v715_v55, 920167782  ;;  %v732_v4 = vsel %vm722_vm8, %v718_v56, 1326507024  ;;  %v501_v10 = vshll.u32 %v11677_v35, %v495_v33 }
  0xab   : > { %v729_v6 = vsel %vm721_vm7, %v712_v52, %v728_v2  ;;  %v733_v8 = vsel %vm721_vm7, %v715_v55, %v732_v4  ;;  %v726_v11 = vsel %vm720_vm6, %v723_v57, %v725_v62  ;;  %v502_v14 = vshrl.u32 %v11679_v37, %v496_v53 }
  0xac   : > { %v730_v12 = vsel %vm720_vm6, %v727_v59, %v729_v6  ;;  %v734_v13 = vsel %vm720_vm6, %v731_v61, %v733_v8  ;;  %v500_v19 = vor.u32 %v499_v9, %v498_v5  ;;  %v504_v21 = vshll.u32 %v11679_v37, %v495_v33 }
  0xad   : > { %v8684_v15 = vmul.u32.u64.low %v8653_v26, %v734_v13  ;;  %v8685_v16 = vmul.u32.u64.high %v8653_v26, %v734_v13, %v8684_v15  ;;  %v8688_v17 = vmul.u32.u64.low %v8653_v26, %v730_v12  ;;  %v8689_v18 = vmul.u32.u64.high %v8653_v26, %v730_v12, %v8688_v17 }
  0xae   : > { %v503_v20 = vor.u32 %v502_v14, %v501_v10  ;;  %v505_v23 = vshrl.u32 %v11682_v39, %v496_v53  ;;  %v497_v22 = vshrl.u32 %v11693_v31, %v496_v53  ;;  %v507_v24 = vshll.u32 %v11682_v39, %v495_v33 }
  0xaf   : > { %v508_v30 = vshrl.u32 %v11687_v41, %v496_v53  ;;  %v511_v32 = vshrl.u32 %v11685_v48, %v496_v53  ;;  %v742_v36 = vmul.u32 %v8653_v26, %v726_v11  ;;  %v510_v40 = vshll.u32 %v11687_v41, %v495_v33 }
  0xb0   : > { %v506_v38 = vor.u32 %v505_v23, %v504_v21  ;;  %vm513_vm9 = vcmp.lt.s32.totalorder %v8655_v27, 1  ;;  %vm744_vm10 = vc.u32 %v8685_v16, %v8688_v17  ;;  %v745_v42 = vadd.s32 1, %v8689_v18 }
  0xb1   : > { %v509_v43 = vor.u32 %v508_v30, %v507_v24  ;;  %vm514_vm11 = vcmp.lt.s32.totalorder %v8655_v27, 2  ;;  %v512_v44 = vor.u32 %v511_v32, %v510_v40  ;;  %vm515_vm12 = vcmp.lt.s32.totalorder %v8655_v27, 3 }
  0xb2   : > { %vm516_vm13 = vcmp.lt.s32.totalorder %v8655_v27, 4  ;;  %v521_v45 = vsel %vm513_vm9, %v500_v19, %v503_v20  ;;  %v746_v26 = vsel %vm744_vm10, %v745_v42, %v8689_v18  ;;  %v525_v47 = vsel %vm513_vm9, %v503_v20, %v506_v38 }
  0xb3   : > { %v518_v46 = vsel %vm516_vm13, %v506_v38, 2102212464  ;;  %v522_v33 = vsel %vm516_vm13, %v509_v43, 920167782  ;;  %v747_v49 = vadd.s32 %v746_v26, %v742_v36  ;;  %v517_v50 = vsel %vm513_vm9, %v497_v22, %v500_v19 }
  0xb4   : > { %v523_v51 = vsel %vm515_vm12, %v506_v38, %v522_v33  ;;  %v526_v52 = vsel %vm516_vm13, %v512_v44, 1326507024  ;;  %v519_v53 = vsel %vm515_vm12, %v503_v20, %v518_v46  ;;  %vm801_vm14 = vcmp.gt.s32.totalorder %v8661_v34, 0 }
  0xb5   : > { %v524_v55 = vsel %vm514_vm11, %v521_v45, %v523_v51  ;;  %v527_v56 = vsel %vm515_vm12, %v509_v43, %v526_v52  ;;  %v748_v57 = vadd.s32 536870912, %v747_v49  ;;  %v802_v4 = vsel %vm801_vm14, %v8661_v34, 0 }
  0xb6   : > { %v528_v58 = vsel %vm514_vm11, %v525_v47, %v527_v56  ;;  %v8714_v59 = vmul.u32.u64.low %v8657_v28, %v524_v55  ;;  %v8715_v61 = vmul.u32.u64.high %v8657_v28, %v524_v55, %v8714_v59  ;;  %v520_v6 = vsel %vm514_vm11, %v517_v50, %v519_v53 }
  0xb7   : > { %v8719_v62 = vmul.u32.u64.low %v8657_v28, %v528_v58  ;;  %v8720_v2 = vmul.u32.u64.high %v8657_v28, %v528_v58, %v8719_v62  ;;  %v8723_v5 = vshrl.u32 %v748_v57, 30  ;;  %v797_v8 = vand.u32 8388607, %v790_v29 }
  0xb8   : > { %v804_v9 = vand.u32 31, %v802_v4  ;;  %v539_v11 = vadd.s32 1, %v8715_v61  ;;  %v587_v13 = vand.u32 2139095040, %v8651_v25  ;;  %v536_v14 = vmul.u32 %v8657_v28, %v520_v6 }
  0xb9   : > { %v750_v10 = vshll.u32 %v8723_v5, 30  ;;  %vm538_vm15 = vc.u32 %v8720_v2, %v8714_v59  ;;  %v798_v15 = vor.u32 8388608, %v797_v8  ;;  %v803_v22 = vshrl.u32 %v802_v4, 5 }
  0xba   : > { %v805_v12 = vsub.s32 32, %v804_v9  ;;  %v540_v27 = vsel %vm538_vm15, %v539_v11, %v8715_v61  ;;  %v807_v19 = vshll.u32 %v11693_v31, %v804_v9  ;;  %v810_v28 = vshll.u32 %v11677_v35, %v804_v9 }
  0xbb   : > { %v8735_v34 = vsub.s32 %v747_v49, %v750_v10  ;;  %v541_v18 = vadd.s32 %v540_v27, %v536_v14  ;;  %v588_v24 = vshrl.u32 %v587_v13, 23  ;;  %v813_v36 = vshll.u32 %v11679_v37, %v804_v9 }
  0xbc   : > { %v808_v20 = vshrl.u32 %v11677_v35, %v805_v12  ;;  %v811_v21 = vshrl.u32 %v11679_v37, %v805_v12  ;;  %v814_v38 = vshrl.u32 %v11682_v39, %v805_v12  ;;  %v816_v43 = vshll.u32 %v11682_v39, %v804_v9 }
  0xbd   : > { %v753_v23 = vsub.s32 0, %v8735_v34  ;;  %v542_v30 = vadd.s32 536870912, %v541_v18  ;;  %v817_v44 = vshrl.u32 %v11687_v41, %v805_v12  ;;  %v819_v46 = vshll.u32 %v11687_v41, %v804_v9 }
  0xbe   : > { %v809_v32 = vor.u32 %v808_v20, %v807_v19  ;;  %v812_v42 = vor.u32 %v811_v21, %v810_v28  ;;  %v815_v26 = vor.u32 %v814_v38, %v813_v36  ;;  %v820_v33 = vshrl.u32 %v11685_v48, %v805_v12 }
  0xbf   : > { %v7068_v40 = vmin.u32 %v753_v23, %v8735_v34  ;;  %v8748_v45 = vshrl.u32 %v542_v30, 30  ;;  %v818_v49 = vor.u32 %v817_v44, %v816_v43  ;;  %v838_v50 = vshll.u32 %v798_v15, 8 }
  0xc0   : > { %v7063_v51 = vadd.s32 4294967169, %v588_v24  ;;  %v806_v53 = vshrl.u32 %v11693_v31, %v805_v12  ;;  %v821_v55 = vor.u32 %v820_v33, %v819_v46  ;;  %vm822_vm0 = vcmp.lt.s32.totalorder %v803_v22, 1 }
  0xc1   : > { %v755_v47 = vclz %v7068_v40  ;;  %v544_v52 = vshll.u32 %v8748_v45, 30  ;;  %vm823_vm3 = vcmp.lt.s32.totalorder %v803_v22, 2  ;;  %vm825_vm4 = vcmp.lt.s32.totalorder %v803_v22, 4 }
  0xc2   : > { %v830_v57 = vsel %vm822_vm0, %v809_v32, %v812_v42  ;;  %vm824_vm5 = vcmp.lt.s32.totalorder %v803_v22, 3  ;;  %v831_v61 = vsel %vm825_vm4, %v818_v49, 920167782  ;;  %v834_v62 = vsel %vm822_vm0, %v812_v42, %v815_v26 }
  0xc3   : > { %v7069_v56 = vadd.s32 4294967294, %v755_v47  ;;  %v8755_v58 = vsub.s32 %v541_v18, %v544_v52  ;;  %v827_v4 = vsel %vm825_vm4, %v815_v26, 2102212464  ;;  %v832_v6 = vsel %vm824_vm5, %v815_v26, %v831_v61  ;;  %v389_v26 = vpop.permute.xlu1 %388 }
  0xc4   : > { %v835_v8 = vsel %vm825_vm4, %v821_v55, 1326507024  ;;  %v833_v11 = vsel %vm823_vm3, %v830_v57, %v832_v6  ;;  %v826_v13 = vsel %vm822_vm0, %v806_v53, %v809_v32  ;;  %v828_v15 = vsel %vm824_vm5, %v812_v42, %v827_v4 }
  0xc5   : > { %vm7070_vm6 = vcmp.lt.s32.totalorder %v7069_v56, 0  ;;  %v547_v10 = vsub.s32 0, %v8755_v58  ;;  %v836_v12 = vsel %vm824_vm5, %v818_v49, %v835_v8  ;;  %v594_v24 = vadd.s32 1, %v7063_v51 }
  0xc6   : > { %v758_v9 = vsel %vm7070_vm6, 0, %v7069_v56  ;;  %v837_v14 = vsel %vm823_vm3, %v834_v62, %v836_v12  ;;  %v8766_v21 = vmul.u32.u64.low %v838_v50, %v833_v11  ;;  %v8767_v23 = vmul.u32.u64.high %v838_v50, %v833_v11, %v8766_v21 }
  0xc7   : > { %v7060_v27 = vmin.u32 %v547_v10, %v8755_v58  ;;  %v8763_v18 = vmul.u32.u64.low %v838_v50, %v837_v14  ;;  %v8764_v19 = vmul.u32.u64.high %v838_v50, %v837_v14, %v8763_v18  ;;  %v763_v20 = vsub.s32 4294967266, %v758_v9 }
  0xc8   : > { %v829_v30 = vsel %vm823_vm3, %v826_v13, %v828_v15  ;;  %v11681_v36 = vand.u32 2147483647, %v8651_v25  ;;  %vm595_vm8 = vcmp.gt.s32.totalorder %v594_v24, 0  ;;  %v848_v40 = vadd.s32 1, %v8767_v23 }
  0xc9   : > { %v549_v28 = vclz %v7060_v27  ;;  %vm847_vm7 = vc.u32 %v8764_v19, %v8766_v21  ;;  %v764_v38 = vadd.s32 127, %v763_v20  ;;  %v596_v42 = vsel %vm595_vm8, %v594_v24, 0 }
  0xca   : > { %v845_v43 = vmul.u32 %v838_v50, %v829_v30  ;;  %v598_v44 = vand.u32 31, %v596_v42  ;;  %v849_v22 = vsel %vm847_vm7, %v848_v40, %v8767_v23  ;;  %v591_v33 = vand.u32 8388607, %v11681_v36 }
  0xcb   : > { %v7061_v32 = vadd.s32 4294967294, %v549_v28  ;;  %v759_v47 = vsub.s32 32, %v758_v9  ;;  %v765_v51 = vshll.u32 %v764_v38, 23  ;;  %v8781_v53 = vmul.f32 %v8630_v60, %v389_v26 }
  0xcc   : > { %v850_v49 = vadd.s32 %v849_v22, %v845_v43  ;;  %v599_v52 = vsub.s32 32, %v598_v44  ;;  %v743_v55 = vadd.s32 %v8688_v17, %v8685_v16  ;;  %v773_v57 = vsub.s32 4, %v8723_v5 }
  0xcd   : > { %vm7062_vm9 = vcmp.lt.s32.totalorder %v7061_v32, 0  ;;  %11779 = vst [vmem:[#allocation5_spill] sm:$0xff] %v8781_v53  ;;  %v537_v61 = vadd.s32 %v8714_v59, %v8720_v2  ;;  %v592_v62 = vor.u32 8388608, %v591_v33  ;;  %v760_v4 = vshll.u32 %v8735_v34, %v758_v9 }
  0xce   : > { %v8775_v46 = vsel %vm7062_vm9, 0, %v7061_v32  ;;  %v851_v56 = vadd.s32 536870912, %v850_v49  ;;  %v761_v6 = vshrl.u32 %v743_v55, %v759_v47  ;;  %v602_v10 = vshrl.u32 %v11677_v35, %v599_v52 }
  0xcf   : > { %v557_v50 = vsub.s32 4294967266, %v8775_v46  ;;  %v766_v11 = vor.u32 4788187, %v765_v51  ;;  %v605_v12 = vshrl.u32 %v11679_v37, %v599_v52  ;;  %v608_v16 = vshrl.u32 %v11682_v39, %v599_v52 }
  0xd0   : > { %v8790_v8 = vshrl.u32 %v851_v56, 30  ;;  %v999_v17 = vand.u32 2139095040, %v8781_v53  ;;  %v553_v13 = vsub.s32 32, %v8775_v46  ;;  %v601_v2 = vshll.u32 %v11693_v31, %v598_v44 }
  0xd1   : > { %v558_v14 = vadd.s32 127, %v557_v50  ;;  %v604_v34 = vshll.u32 %v11677_v35, %v598_v44  ;;  %v607_v9 = vshll.u32 %v11679_v37, %v598_v44  ;;  %v610_v27 = vshll.u32 %v11682_v39, %v598_v44 }
  0xd2   : > { %v853_v59 = vshll.u32 %v8790_v8, 30  ;;  %v611_v15 = vshrl.u32 %v11687_v41, %v599_v52  ;;  %v762_v18 = vor.u32 %v761_v6, %v760_v4  ;;  %v597_v23 = vshrl.u32 %v596_v42, 5 }
  0xd3   : > { %v603_v28 = vor.u32 %v602_v10, %v601_v2  ;;  %v606_v24 = vor.u32 %v605_v12, %v604_v34  ;;  %v609_v30 = vor.u32 %v608_v16, %v607_v9  ;;  %v614_v38 = vshrl.u32 %v11685_v48, %v599_v52 }
  0xd4   : > { %v8803_v20 = vsub.s32 %v850_v49, %v853_v59  ;;  %v612_v32 = vor.u32 %v611_v15, %v610_v27  ;;  %v767_v40 = vand.u32 2147483647, %v766_v11  ;;  %v559_v43 = vshll.u32 %v558_v14, 23 }
  0xd5   : > { %v613_v22 = vshll.u32 %v11687_v41, %v598_v44  ;;  %v554_v33 = vshll.u32 %v8755_v58, %v8775_v46  ;;  %v555_v47 = vshrl.u32 %v537_v61, %v553_v13  ;;  %v600_v49 = vshrl.u32 %v11693_v31, %v599_v52 }
  0xd6   : > { %v856_v26 = vsub.s32 0, %v8803_v20  ;;  %v1000_v51 = vshrl.u32 %v999_v17, 23  ;;  %vm616_vm10 = vcmp.lt.s32.totalorder %v597_v23, 1  ;;  %vm619_vm11 = vcmp.lt.s32.totalorder %v597_v23, 4 }
  0xd7   : > { %v615_v55 = vor.u32 %v614_v38, %v613_v22  ;;  %vm618_vm12 = vcmp.lt.s32.totalorder %v597_v23, 3  ;;  %v621_v50 = vsel %vm619_vm11, %v609_v30, 2102212464  ;;  %v624_v56 = vsel %vm616_vm10, %v603_v28, %v606_v24 }
  0xd8   : > { %v7072_v42 = vmin.u32 %v856_v26, %v8803_v20  ;;  %v625_v4 = vsel %vm619_vm11, %v612_v32, 920167782  ;;  %v560_v6 = vor.u32 4788187, %v559_v43  ;;  %vm617_vm13 = vcmp.lt.s32.totalorder %v597_v23, 2  ;;  %v384_v43 = vpop.permute.xlu0 %383 }
  0xd9   : > { %v626_v58 = vsel %vm618_vm12, %v609_v30, %v625_v4  ;;  %v769_v46 = vcvt.s32.f32 %v762_v18  ;;  %v628_v61 = vsel %vm616_vm10, %v606_v24, %v609_v30  ;;  %v632_v10 = vshll.u32 %v592_v62, 8 }
  0xda   : > { %v858_v44 = vclz %v7072_v42  ;;  %v627_v52 = vsel %vm617_vm13, %v624_v56, %v626_v58  ;;  %v556_v11 = vor.u32 %v555_v47, %v554_v33  ;;  %v620_v12 = vsel %vm616_vm10, %v600_v49, %v603_v28  ;;  %v399_v33 = vpop.permute.xlu1 %398 }
  0xdb   : > { %v622_v16 = vsel %vm618_vm12, %v606_v24, %v621_v50  ;;  %v629_v17 = vsel %vm619_vm11, %v615_v55, 1326507024  ;;  %v8819_v59 = vmul.u32.u64.low %v632_v10, %v627_v52  ;;  %v8820_v2 = vmul.u32.u64.high %v632_v10, %v627_v52, %v8819_v59 }
  0xdc   : > { %v7073_v13 = vadd.s32 4294967294, %v858_v44  ;;  %v630_v14 = vsel %vm618_vm12, %v612_v32, %v629_v17  ;;  %v770_v34 = vmul.f32 %v769_v46, %v767_v40  ;;  %v561_v9 = vand.u32 2147483647, %v560_v6 }
  0xdd   : > { %v631_v27 = vsel %vm617_vm13, %v628_v61, %v630_v14  ;;  %v7079_v15 = vadd.s32 4294967169, %v1000_v51  ;;  %v996_v28 = vand.u32 2147483647, %v8781_v53  ;;  %v563_v24 = vcvt.s32.f32 %v556_v11 }
  0xde   : > { %v8824_v18 = vmul.u32.u64.low %v632_v10, %v631_v27  ;;  %v8825_v62 = vmul.u32.u64.high %v632_v10, %v631_v27, %v8824_v18  ;;  %v623_v30 = vsel %vm617_vm13, %v620_v12, %v622_v16  ;;  %vm689_vm14 = vcmp.lt.s32.totalorder %v8633_v63, 0 }
  0xdf   : > { %vm7074_vm15 = vcmp.lt.s32.totalorder %v7073_v13, 0  ;;  %v642_v32 = vadd.s32 1, %v8820_v2  ;;  %v1006_v38 = vadd.s32 1, %v7079_v15  ;;  %vm8833_vm0 = vcmp.le.f32.partialorder %v687_v1, 0.7853982 }
  0xe0   : > { %v771_v26 = vxor.u32 2147483648, %v770_v34  ;;  %v774_v23 = vsel %vm689_vm14, %v773_v57, %v8723_v5  ;;  %v8842_v22 = vmul.f32 %v563_v24, %v561_v9  ;;  %v639_v47 = vmul.u32 %v632_v10, %v623_v30 }
  0xe1   : > { %vm641_vm3 = vc.u32 %v8825_v62, %v8819_v59  ;;  %v1003_v1 = vand.u32 8388607, %v996_v28  ;;  %vm1007_vm4 = vcmp.gt.s32.totalorder %v1006_v38, 0  ;;  %v8848_v49 = vsel %vm7074_vm15, 0, %v7073_v13 }
  0xe2   : > { %v643_v51 = vsel %vm641_vm3, %v642_v32, %v8820_v2  ;;  %v1008_v42 = vsel %vm1007_vm4, %v1006_v38, 0  ;;  %v8852_v55 = vmul.f32 %v8630_v60, %v384_v43  ;;  %v8856_v5 = vsel %vm8833_vm0, 0, %v774_v23 }
  0xe3   : > { %v644_v57 = vadd.s32 %v643_v51, %v639_v47  ;;  %v1010_v50 = vand.u32 31, %v1008_v42  ;;  %v8859_v56 = vmul.f32 %v8630_v60, %v399_v33  ;;  %v8863_v4 = vsel %vm689_vm14, %v771_v26, %v770_v34 }
  0xe4   : > { %11782 = vst [vmem:[#allocation6_spill] sm:$0xff] %v8852_v55  ;;  %v565_v6 = vxor.u32 2147483648, %v8842_v22  ;;  %v846_v44 = vadd.s32 %v8766_v21, %v8764_v19  ;;  %v876_v58 = vsub.s32 4, %v8790_v8  ;;  %v866_v46 = vsub.s32 4294967266, %v8848_v49 }
  0xe5   : > { %11783 = vst [vmem:[#allocation7_spill] sm:$0xff] %v8859_v56  ;;  %v645_v52 = vadd.s32 536870912, %v644_v57  ;;  %v1004_v61 = vor.u32 8388608, %v1003_v1  ;;  %v1011_v10 = vsub.s32 32, %v1010_v50  ;;  %v1009_v11 = vshrl.u32 %v1008_v42, 5 }
  0xe6   : > { %v1013_v12 = vshll.u32 %v11693_v31, %v1010_v50  ;;  %v1016_v16 = vshll.u32 %v11677_v35, %v1010_v50  ;;  %v896_v17 = vand.u32 2139095040, %v8852_v55  ;;  %v1019_v21 = vshll.u32 %v11679_v37, %v1010_v50 }
  0xe7   : > { %v8873_v13 = vshrl.u32 %v645_v52, 30  ;;  %v1014_v14 = vshrl.u32 %v11677_v35, %v1011_v10  ;;  %v1017_v19 = vshrl.u32 %v11679_v37, %v1011_v10  ;;  %v1020_v2 = vshrl.u32 %v11682_v39, %v1011_v10 }
  0xe8   : > { %v1022_v34 = vshll.u32 %v11682_v39, %v1010_v50  ;;  %v1023_v9 = vshrl.u32 %v11687_v41, %v1011_v10  ;;  %v1026_v27 = vshrl.u32 %v11685_v48, %v1011_v10  ;;  %vm792_vm5 = vcmp.lt.s32.totalorder %v8643_v7, 0 }
  0xe9   : > { %v647_v15 = vshll.u32 %v8873_v13, 30  ;;  %v1015_v18 = vor.u32 %v1014_v14, %v1013_v12  ;;  %v1018_v24 = vor.u32 %v1017_v19, %v1016_v16  ;;  %v1025_v30 = vshll.u32 %v11687_v41, %v1010_v50 }
  0xea   : > { %v862_v32 = vsub.s32 32, %v8848_v49  ;;  %v867_v38 = vadd.s32 127, %v866_v46  ;;  %v1021_v43 = vor.u32 %v1020_v2, %v1019_v21  ;;  %v1024_v26 = vor.u32 %v1023_v9, %v1022_v34 }
  0xeb   : > { %vm483_vm6 = vcmp.lt.s32.totalorder %v8636_v0, 0  ;;  %v8887_v23 = vsub.s32 %v644_v57, %v647_v15  ;;  %v1027_v33 = vor.u32 %v1026_v27, %v1025_v30  ;;  %vm1028_vm7 = vcmp.lt.s32.totalorder %v1009_v11, 1 }
  0xec   : > { %v1044_v47 = vshll.u32 %v1004_v61, 8  ;;  %v1012_v1 = vshrl.u32 %v11693_v31, %v1011_v10  ;;  %vm1031_vm8 = vcmp.lt.s32.totalorder %v1009_v11, 4  ;;  %v1036_v51 = vsel %vm1028_vm7, %v1015_v18, %v1018_v24 }
  0xed   : > { %v897_v42 = vshrl.u32 %v896_v17, 23  ;;  %vm8893_vm9 = vcmp.le.f32.partialorder %v790_v29, 0.7853982  ;;  %v650_v46 = vsub.s32 0, %v8887_v23  ;;  %vm1030_vm10 = vcmp.lt.s32.totalorder %v1009_v11, 3 }
  0xee   : > { %v1033_v57 = vsel %vm1031_vm8, %v1021_v43, 2102212464  ;;  %v1037_v52 = vsel %vm1031_vm8, %v1024_v26, 920167782  ;;  %vm8902_vm11 = vcmp.le.f32.partialorder %v481_v3, 0.7853982  ;;  %v1040_v29 = vsel %vm1028_vm7, %v1018_v24, %v1021_v43 }
  0xef   : > { %v868_v10 = vshll.u32 %v867_v38, 23  ;;  %vm1029_vm12 = vcmp.lt.s32.totalorder %v1009_v11, 2  ;;  %v1038_v12 = vsel %vm1030_vm10, %v1021_v43, %v1037_v52  ;;  %v7064_v16 = vmin.u32 %v650_v46, %v8887_v23 }
  0xf0   : > { %v1032_v17 = vsel %vm1028_vm7, %v1012_v1, %v1015_v18  ;;  %v1039_v14 = vsel %vm1029_vm12, %v1036_v51, %v1038_v12  ;;  %v1041_v19 = vsel %vm1031_vm8, %v1027_v33, 1326507024  ;;  %v1034_v21 = vsel %vm1030_vm10, %v1018_v24, %v1033_v57 }
  0xf1   : > { %v1042_v2 = vsel %vm1030_vm10, %v1024_v26, %v1041_v19  ;;  %v8911_v34 = vmul.u32.u64.low %v1044_v47, %v1039_v14  ;;  %v8912_v3 = vmul.u32.u64.high %v1044_v47, %v1039_v14, %v8911_v34  ;;  %v864_v9 = vshrl.u32 %v846_v44, %v862_v32 }
  0xf2   : > { %v652_v27 = vclz %v7064_v16  ;;  %v1043_v15 = vsel %vm1029_vm12, %v1040_v29, %v1042_v2  ;;  %v7075_v30 = vadd.s32 4294967169, %v897_v42  ;;  %v877_v38 = vsel %vm792_vm5, %v876_v58, %v8790_v8 }
  0xf3   : > { %v8919_v18 = vmul.u32.u64.low %v1044_v47, %v1043_v15  ;;  %v8920_v43 = vmul.u32.u64.high %v1044_v47, %v1043_v15, %v8919_v18  ;;  %v11676_v33 = vand.u32 2147483647, %v8852_v55  ;;  %v863_v24 = vshll.u32 %v8803_v20, %v8848_v49 }
  0xf4   : > { %v869_v26 = vor.u32 4788187, %v868_v10  ;;  %v1035_v1 = vsel %vm1029_vm12, %v1032_v17, %v1034_v21  ;;  %v903_v44 = vadd.s32 1, %v7075_v30  ;;  %v8927_v32 = vand.u32 3, %v8856_v5 }
  0xf5   : > { %v2842_v51 = vadd.s32 3, %v8856_v5  ;;  %v566_v8 = vsel %vm483_vm6, %v565_v6, %v8842_v22  ;;  %v1054_v58 = vadd.s32 1, %v8912_v3  ;;  %v775_v20 = vsel %vm8833_vm0, %v8633_v63, %v8863_v4 }
  0xf6   : > { %11788 = vst [vmem:[#allocation8_spill] sm:$0xff] %v8927_v32  ;;  %v865_v49 = vor.u32 %v864_v9, %v863_v24  ;;  %v7065_v11 = vadd.s32 4294967294, %v652_v27  ;;  %vm904_vm13 = vcmp.gt.s32.totalorder %v903_v44, 0  ;;  %v879_v42 = vsel %vm8893_vm9, 0, %v877_v38 }
  0xf7   : > { %v1051_v5 = vmul.u32 %v1044_v47, %v1035_v1  ;;  %vm1053_vm14 = vc.u32 %v8920_v43, %v8911_v34  ;;  %v905_v46 = vsel %vm904_vm13, %v903_v44, 0  ;;  %v8947_v22 = vsel %vm8902_vm11, %v8636_v0, %v566_v8 }
  0xf8   : > { %v870_v6 = vand.u32 2147483647, %v869_v26  ;;  %v1055_v40 = vsel %vm1053_vm14, %v1054_v58, %v8912_v3  ;;  %v900_v4 = vand.u32 8388607, %v11676_v33  ;;  %8007 = vcosq.f32 %v775_v20 }
  0xf9   : > { %v8952_v57 = vand.u32 3, %v2842_v51  ;;  %v1056_v52 = vadd.s32 %v1055_v40, %v1051_v5  ;;  %v907_v47 = vand.u32 31, %v905_v46  ;;  %8009 = vsinq.f32 %v775_v20 }
  0xfa   : > { %v872_v10 = vcvt.s32.f32 %v865_v49  ;;  %v8954_v12 = vand.u32 3, %v879_v42  ;;  %vm7066_vm15 = vcmp.lt.s32.totalorder %v7065_v11, 0  ;;  %8011 = vcosq.f32 %v8947_v22 }
  0xfb   : > { %11789 = vst [vmem:[#allocation9_spill] sm:$0xff] %v8952_v57  ;;  %v8957_v29 = vadd.s32 3, %v879_v42  ;;  %v1057_v16 = vadd.s32 536870912, %v1056_v52  ;;  %v908_v17 = vsub.s32 32, %v907_v47  ;;  %v640_v19 = vadd.s32 %v8819_v59, %v8825_v62 }
  0xfc   : > { %11790 = vst [vmem:[#allocation10_spill] sm:$0xff] %v8954_v12  ;;  %v873_v14 = vmul.f32 %v872_v10, %v870_v6  ;;  %v901_v21 = vor.u32 8388608, %v900_v4  ;;  %v1205_v2 = vand.u32 2139095040, %v8859_v56  ;;  %v8962_v3 = vsel %vm7066_vm15, 0, %v7065_v11 }
  0xfd   : > { %v8964_v9 = vshrl.u32 %v1057_v16, 30  ;;  %v911_v27 = vshrl.u32 %v11677_v35, %v908_v17  ;;  %v914_v15 = vshrl.u32 %v11679_v37, %v908_v17  ;;  %v910_v30 = vshll.u32 %v11693_v31, %v907_v47 }
  0xfe   : > { %v913_v38 = vshll.u32 %v11677_v35, %v907_v47  ;;  %v917_v18 = vshrl.u32 %v11682_v39, %v908_v17  ;;  %v920_v24 = vshrl.u32 %v11687_v41, %v908_v17  ;;  %v906_v62 = vshrl.u32 %v905_v46, 5 }
  0xff   : > { %v1059_v59 = vshll.u32 %v8964_v9, 30  ;;  %v919_v26 = vshll.u32 %v11682_v39, %v907_v47  ;;  %v11675_v1 = vand.u32 2147483647, %v8859_v56  ;;  %v660_v44 = vsub.s32 4294967266, %v8962_v3 }
 0x100   : > { %v912_v51 = vor.u32 %v911_v27, %v910_v30  ;;  %v915_v8 = vor.u32 %v914_v15, %v913_v38  ;;  %v916_v58 = vshll.u32 %v11679_v37, %v907_v47  ;;  %v923_v11 = vshrl.u32 %v11685_v48, %v908_v17 }
 0x101   : > { %v8977_v20 = vsub.s32 %v1056_v52, %v1059_v59  ;;  %v921_v49 = vor.u32 %v920_v24, %v919_v26  ;;  %v1206_v42 = vshrl.u32 %v1205_v2, 23  ;;  %v874_v5 = vxor.u32 2147483648, %v873_v14 }
 0x102   : > { %v656_v6 = vsub.s32 32, %v8962_v3  ;;  %v918_v46 = vor.u32 %v917_v18, %v916_v58  ;;  %v922_v40 = vshll.u32 %v11687_v41, %v907_v47  ;;  %v8982_v4 = vpop.eup %8007  ;;  %vm925_vm0 = vcmp.lt.s32.totalorder %v906_v62, 1 }
 0x103   : > { %11791 = vst [vmem:[#allocation11_spill] sm:$0xff] %v8982_v4  ;;  %v1062_v10 = vsub.s32 0, %v8977_v20  ;;  %v8985_v16 = vshll.u32 %v901_v21, 8  ;;  %v1209_v52 = vand.u32 8388607, %v11675_v1  ;;  %v8989_v27 = vpop.eup %8009  ;;  %v661_v15 = vadd.s32 127, %v660_v44 }
 0x104   : > { %11792 = vst [vmem:[#allocation12_spill] sm:$0xff] %v8989_v27  ;;  %v924_v2 = vor.u32 %v923_v11, %v922_v40  ;;  %vm928_vm3 = vcmp.lt.s32.totalorder %v906_v62, 4  ;;  %v933_v30 = vsel %vm925_vm0, %v912_v51, %v915_v8  ;;  %v8992_v38 = vpop.eup %8011  ;;  %vm927_vm4 = vcmp.lt.s32.totalorder %v906_v62, 3 }
 0x105   : > { %v7080_v47 = vmin.u32 %v1062_v10, %v8977_v20  ;;  %v934_v18 = vsel %vm928_vm3, %v921_v49, 920167782  ;;  %v7087_v24 = vadd.s32 4294967169, %v1206_v42  ;;  %v658_v21 = vshrl.u32 %v640_v19, %v656_v6 }
 0x106   : > { %vm926_vm7 = vcmp.lt.s32.totalorder %v906_v62, 2  ;;  %v930_v59 = vsel %vm928_vm3, %v918_v46, 2102212464  ;;  %v935_v26 = vsel %vm927_vm4, %v918_v46, %v934_v18  ;;  %v909_v44 = vshrl.u32 %v11693_v31, %v908_v17 }
 0x107   : > { %v1064_v58 = vclz %v7080_v47  ;;  %v936_v11 = vsel %vm926_vm7, %v933_v30, %v935_v26  ;;  %v937_v40 = vsel %vm925_vm0, %v915_v8, %v918_v46  ;;  %v662_v1 = vshll.u32 %v661_v15, 23 }
 0x108   : > { %vm998_vm8 = vcmp.lt.s32.totalorder %v8781_v53, 0  ;;  %v938_v10 = vsel %vm928_vm3, %v924_v2, 1326507024  ;;  %v9004_v42 = vmul.u32.u64.low %v8985_v16, %v936_v11  ;;  %v9005_v19 = vmul.u32.u64.high %v8985_v16, %v936_v11, %v9004_v42 }
 0x109   : > { %v7081_v6 = vadd.s32 4294967294, %v1064_v58  ;;  %v929_v18 = vsel %vm925_vm0, %v909_v44, %v912_v51  ;;  %v931_v47 = vsel %vm927_vm4, %v915_v8, %v930_v59  ;;  %v939_v17 = vsel %vm927_vm4, %v921_v49, %v938_v10  ;;  %v394_v51 = vpop.permute.xlu0 %393 }
 0x10a   : > { %v875_v46 = vsel %vm792_vm5, %v874_v5, %v873_v14  ;;  %v940_v15 = vsel %vm926_vm7, %v937_v40, %v939_v17  ;;  %v1210_v30 = vor.u32 8388608, %v1209_v52  ;;  %v1212_v26 = vadd.s32 1, %v7087_v24 }
 0x10b   : > { %v657_v2 = vshll.u32 %v8887_v23, %v8962_v3  ;;  %vm7082_vm10 = vcmp.lt.s32.totalorder %v7081_v6, 0  ;;  %v9017_v11 = vmul.u32.u64.low %v8985_v16, %v940_v15  ;;  %v9018_v58 = vmul.u32.u64.high %v8985_v16, %v940_v15, %v9017_v11 }
 0x10c   : > { %v9020_v44 = vsel %vm7082_vm10, 0, %v7081_v6  ;;  %v932_v8 = vsel %vm926_vm7, %v929_v18, %v931_v47  ;;  %v951_v49 = vadd.s32 1, %v9005_v19  ;;  %vm1213_vm5 = vcmp.gt.s32.totalorder %v1212_v26, 0 }
 0x10d   : > { %v659_v14 = vor.u32 %v658_v21, %v657_v2  ;;  %v663_v5 = vor.u32 4788187, %v662_v1  ;;  %v1082_v52 = vsub.s32 4, %v8964_v9  ;;  %v1214_v24 = vsel %vm1213_vm5, %v1212_v26, 0 }
 0x10e   : > { %8013 = vsinq.f32 %v8947_v22  ;;  %v9027_v23 = vand.u32 3, %v8957_v29  ;;  %v1216_v3 = vand.u32 31, %v1214_v24  ;;  %v9030_v59 = vmul.f32 %v8630_v60, %v394_v51 }
 0x10f   : > { %v9035_v62 = vsel %vm8893_vm9, %v8643_v7, %v875_v46  ;;  %vm9039_vm12 = vcmp.le.f32.partialorder %v996_v28, 0.7853982  ;;  %v1072_v22 = vsub.s32 4294967266, %v9020_v44  ;;  %v948_v29 = vmul.u32 %v8985_v16, %v932_v8 }
 0x110   : > { %11793 = vst [vmem:[#allocation13_spill] sm:$0xff] %v9027_v23  ;;  %vm950_vm13 = vc.u32 %v9018_v58, %v9004_v42  ;;  %v1052_v21 = vadd.s32 %v8911_v34, %v8920_v43  ;;  %v1217_v40 = vsub.s32 32, %v1216_v3  ;;  %v9050_v10 = vshll.u32 %v1210_v30, 8 }
 0x111   : > { %v952_v50 = vsel %vm950_vm13, %v951_v49, %v9005_v19  ;;  %v664_v6 = vand.u32 2147483647, %v663_v5  ;;  %v666_v28 = vcvt.s32.f32 %v659_v14  ;;  %v1083_v18 = vsel %vm998_vm8, %v1082_v52, %v8964_v9 }
 0x112   : > { %v953_v47 = vadd.s32 %v952_v50, %v948_v29  ;;  %v1220_v16 = vshrl.u32 %v11677_v35, %v1217_v40  ;;  %v1223_v17 = vshrl.u32 %v11679_v37, %v1217_v40  ;;  %v1226_v46 = vshrl.u32 %v11682_v39, %v1217_v40 }
 0x113   : > { %v1102_v34 = vand.u32 2139095040, %v9030_v59  ;;  %v1068_v43 = vsub.s32 32, %v9020_v44  ;;  %v1073_v19 = vadd.s32 127, %v1072_v22  ;;  %v1219_v30 = vshll.u32 %v11693_v31, %v1216_v3 }
 0x114   : > { %v954_v15 = vadd.s32 536870912, %v953_v47  ;;  %v1222_v26 = vshll.u32 %v11677_v35, %v1216_v3  ;;  %v1225_v2 = vshll.u32 %v11679_v37, %v1216_v3  ;;  %v1228_v9 = vshll.u32 %v11682_v39, %v1216_v3 }
 0x115   : > { %v1229_v11 = vshrl.u32 %v11687_v41, %v1217_v40  ;;  %v1215_v8 = vshrl.u32 %v1214_v24, 5  ;;  %v1231_v49 = vshll.u32 %v11687_v41, %v1216_v3  ;;  %v1232_v14 = vshrl.u32 %v11685_v48, %v1217_v40 }
 0x116   : > { %v9065_v51 = vshrl.u32 %v954_v15, 30  ;;  %v1221_v5 = vor.u32 %v1220_v16, %v1219_v30  ;;  %v1224_v52 = vor.u32 %v1223_v17, %v1222_v26  ;;  %v1227_v22 = vor.u32 %v1226_v46, %v1225_v2  ;;  %v409_v26 = vpop.permute.xlu1 %408 }
 0x117   : > { %v1230_v29 = vor.u32 %v1229_v11, %v1228_v9  ;;  %v667_v50 = vmul.f32 %v666_v28, %v664_v6  ;;  %v1074_v33 = vshll.u32 %v1073_v19, 23  ;;  %v1233_v37 = vor.u32 %v1232_v14, %v1231_v49 }
 0x118   : > { %v956_v35 = vshll.u32 %v9065_v51, 30  ;;  %v9070_v36 = vpop.eup %8013  ;;  %v1069_v15 = vshll.u32 %v8977_v20, %v9020_v44  ;;  %v1070_v39 = vshrl.u32 %v1052_v21, %v1068_v43  ;;  %v9076_v24 = vsel %vm9039_vm12, 0, %v1083_v18 }
 0x119   : > { %v1103_v3 = vshrl.u32 %v1102_v34, 23  ;;  %vm586_vm9 = vcmp.lt.s32.totalorder %v8651_v25, 0  ;;  %v1218_v6 = vshrl.u32 %v11693_v31, %v1217_v40  ;;  %vm1234_vm14 = vcmp.lt.s32.totalorder %v1215_v8, 1 }
 0x11a   : > { %v9079_v16 = vsub.s32 %v953_v47, %v956_v35  ;;  %vm1237_vm15 = vcmp.lt.s32.totalorder %v1215_v8, 4  ;;  %v1242_v17 = vsel %vm1234_vm14, %v1221_v5, %v1224_v52  ;;  %v1075_v20 = vor.u32 4788187, %v1074_v33 }
 0x11b   : > { %v1239_v28 = vsel %vm1237_vm15, %v1227_v22, 2102212464  ;;  %v1243_v46 = vsel %vm1237_vm15, %v1230_v29, 920167782  ;;  %v1247_v19 = vsel %vm1237_vm15, %v1233_v37, 1326507024  ;;  %v1246_v21 = vsel %vm1234_vm14, %v1224_v52, %v1227_v22 }
 0x11c   : > { %v959_v44 = vsub.s32 0, %v9079_v16  ;;  %vm1236_vm0 = vcmp.lt.s32.totalorder %v1215_v8, 3  ;;  %v11796_v18 = vand.u32 2147483647, %v8651_v25  ;;  %v11797_v35 = vmov 0 }
 0x11d   : > { %v1071_v40 = vor.u32 %v1070_v39, %v1069_v15  ;;  %vm895_vm4 = vcmp.lt.s32.totalorder %v8852_v55, 0  ;;  %vm1235_vm7 = vcmp.lt.s32.totalorder %v1215_v8, 2  ;;  %v1244_v47 = vsel %vm1236_vm0, %v1227_v22, %v1243_v46 }
 0x11e   : > { %vm9087_vm3 = vcmp.le.f32.partialorder %v11796_v18, 0.7853982  ;;  %v1248_v34 = vsel %vm1236_vm0, %v1230_v29, %v1247_v19  ;;  %v7076_v37 = vmin.u32 %v959_v44, %v9079_v16  ;;  %v1238_v33 = vsel %vm1234_vm14, %v1218_v6, %v1221_v5 }
 0x11f   : > { %v11798_v35 = vsel %vm9087_vm3, 4294967295, %v11797_v35  ;;  %v1240_v43 = vsel %vm1236_vm0, %v1224_v52, %v1239_v28  ;;  %v1245_v30 = vsel %vm1235_vm7, %v1242_v17, %v1244_v47  ;;  %v668_v2 = vxor.u32 2147483648, %v667_v50 }
 0x120   : > { %11799 = vst [vmem:[#allocation14_spill] sm:$0xff] %v11798_v35  ;;  %v1249_v9 = vsel %vm1235_vm7, %v1246_v21, %v1248_v34  ;;  %v9095_v11 = vmul.u32.u64.low %v9050_v10, %v1245_v30  ;;  %v9096_v49 = vmul.u32.u64.high %v9050_v10, %v1245_v30, %v9095_v11  ;;  %v1076_v39 = vand.u32 2147483647, %v1075_v20 }
 0x121   : > { %v961_v14 = vclz %v7076_v37  ;;  %v9100_v15 = vmul.u32.u64.low %v9050_v10, %v1249_v9  ;;  %v9101_v22 = vmul.u32.u64.high %v9050_v10, %v1249_v9, %v9100_v15  ;;  %8015 = vcosq.f32 %v9035_v62 }
 0x122   : > { %v1241_v8 = vsel %vm1235_vm7, %v1238_v33, %v1240_v43  ;;  %v7083_v5 = vadd.s32 4294967169, %v1103_v3  ;;  %v9105_v52 = vmul.f32 %v8630_v60, %v409_v26  ;;  %v1078_v29 = vcvt.s32.f32 %v1071_v40 }
 0x123   : > { %v7077_v6 = vadd.s32 4294967294, %v961_v14  ;;  %v979_v28 = vsub.s32 4, %v9065_v51  ;;  %v11684_v17 = vand.u32 2147483647, %v9030_v59  ;;  %v669_v46 = vsel %vm586_vm9, %v668_v2, %v667_v50  ;;  %v404_v50 = vpop.permute.xlu0 %403 }
 0x124   : > { %11800 = vst [vmem:[#allocation15_spill] sm:$0xff] %v9105_v52  ;;  %v3154_v19 = vadd.s32 3, %v9076_v24  ;;  %v1260_v20 = vadd.s32 1, %v9096_v49  ;;  %v1109_v44 = vadd.s32 1, %v7083_v5  ;;  %v1079_v21 = vmul.f32 %v1078_v29, %v1076_v39 }
 0x125   : > { %vm7078_vm10 = vcmp.lt.s32.totalorder %v7077_v6, 0  ;;  %v1257_v3 = vmul.u32 %v9050_v10, %v1241_v8  ;;  %vm1259_vm5 = vc.u32 %v9101_v22, %v9095_v11  ;;  %v1411_v47 = vand.u32 2139095040, %v9105_v52 }
 0x126   : > { %v9116_v18 = vsel %vm7078_vm10, 0, %v7077_v6  ;;  %v1261_v40 = vsel %vm1259_vm5, %v1260_v20, %v9096_v49  ;;  %vm1110_vm13 = vcmp.gt.s32.totalorder %v1109_v44, 0  ;;  %v672_v34 = vsel %vm9087_vm3, %v8651_v25, %v669_v46 }
 0x127   : > { %v980_v37 = vsel %vm895_vm4, %v979_v28, %v9065_v51  ;;  %v1262_v10 = vadd.s32 %v1261_v40, %v1257_v3  ;;  %v1106_v33 = vand.u32 8388607, %v11684_v17  ;;  %8017 = vsinq.f32 %v9035_v62 }
 0x128   : > { %v11801_v43 = vand.u32 2147483647, %v8852_v55  ;;  %v969_v26 = vsub.s32 4294967266, %v9116_v18  ;;  %v1111_v2 = vsel %vm1110_vm13, %v1109_v44, 0  ;;  %v1080_v9 = vxor.u32 2147483648, %v1079_v21 }
 0x129   : > { %v9137_v49 = vand.u32 3, %v9076_v24  ;;  %v1263_v51 = vadd.s32 536870912, %v1262_v10  ;;  %v9140_v39 = vmul.f32 %v8630_v60, %v404_v50  ;;  %8019 = vcosq.f32 %v672_v34 }
 0x12a   : > { %vm9131_vm14 = vcmp.le.f32.partialorder %v11801_v43, 0.7853982  ;;  %v1113_v14 = vand.u32 31, %v1111_v2  ;;  %v1412_v15 = vshrl.u32 %v1411_v47, 23  ;;  %8021 = vsinq.f32 %v672_v34 }
 0x12b   : > { %11804 = vst [vmem:[#allocation16_spill] sm:$0xff] %v9137_v49  ;;  %11805 = vst [vmem:[#allocation17_spill] sm:$0xff] %v9140_v39  ;;  %v982_v62 = vsel %vm9131_vm14, 0, %v980_v37  ;;  %v9144_v8 = vand.u32 3, %v3154_v19  ;;  %v9146_v5 = vshrl.u32 %v1263_v51, 30  ;;  %v1107_v29 = vor.u32 8388608, %v1106_v33  ;;  %v9148_v6 = vpop.eup %8015 }
 0x12c   : > { %11807 = vst [vmem:[#allocation19_spill] sm:$0xff] %v9148_v6  ;;  %v949_v24 = vadd.s32 %v9004_v42, %v9018_v58  ;;  %v965_v28 = vsub.s32 32, %v9116_v18  ;;  %v970_v46 = vadd.s32 127, %v969_v26  ;;  %v1114_v20 = vsub.s32 32, %v1113_v14 }
 0x12d   : > { %11806 = vst [vmem:[#allocation18_spill] sm:$0xff] %v9144_v8  ;;  %v9155_v44 = vsel %vm998_vm8, %v1080_v9, %v1079_v21  ;;  %v9157_v3 = vand.u32 3, %v982_v62  ;;  %v9159_v19 = vadd.s32 3, %v982_v62  ;;  %v1265_v40 = vshll.u32 %v9146_v5, 30 }
 0x12e   : > { %v11809_v47 = vmov 2475754826   ;;  %v11810_v34 = vmov 2131351028   ;;  %v11811_v33 = vmov 2102212464   ;;  %v1116_v26 = vshll.u32 %v11693_v31, %v1113_v14 }
 0x12f   : > { %11808 = vst [vmem:[#allocation20_spill] sm:$0xff] %v9157_v3  ;;  %v1117_v50 = vshrl.u32 %v11809_v47, %v1114_v20  ;;  %v1120_v37 = vshrl.u32 %v11810_v34, %v1114_v20  ;;  %v1123_v42 = vshrl.u32 %v11811_v33, %v1114_v20  ;;  %v7095_v58 = vadd.s32 4294967169, %v1412_v15 }
 0x130   : > { %v9165_v43 = vsub.s32 %v1262_v10, %v1265_v40  ;;  %v1119_v21 = vshll.u32 %v11809_v47, %v1113_v14  ;;  %v1122_v9 = vshll.u32 %v11810_v34, %v1113_v14  ;;  %v967_v51 = vshrl.u32 %v949_v24, %v965_v28 }
 0x131   : > { %v971_v62 = vshll.u32 %v970_v46, 23  ;;  %v1112_v17 = vshrl.u32 %v1111_v2, 5  ;;  %v9170_v48 = vshll.u32 %v1107_v29, 8  ;;  %v1118_v8 = vor.u32 %v1117_v50, %v1116_v26  ;;  %v9173_v23 = vpop.eup %8017 }
 0x132   : > { %v1268_v41 = vsub.s32 0, %v9165_v43  ;;  %v1121_v49 = vor.u32 %v1120_v37, %v1119_v21  ;;  %v1124_v3 = vor.u32 %v1123_v42, %v1122_v9  ;;  %11812 = vst [vmem:[#allocation21_spill] sm:$0xff] %v9173_v23  ;;  %v1125_v10 = vshll.u32 %v11811_v33, %v1113_v14 }
 0x133   : > { %v11813_v15 = vmov 920167782   ;;  %v11814_v57 = vmov 1326507024   ;;  %v966_v2 = vshll.u32 %v9079_v16, %v9116_v18  ;;  %v1418_v28 = vadd.s32 1, %v7095_v58  ;;  %v9183_v46 = vpop.eup %8019 }
 0x134   : > { %v1126_v40 = vshrl.u32 %v11813_v15, %v1114_v20  ;;  %v1128_v31 = vshll.u32 %v11813_v15, %v1113_v14  ;;  %v1129_v6 = vshrl.u32 %v11814_v57, %v1114_v20  ;;  %v7088_v29 = vmin.u32 %v1268_v41, %v9165_v43  ;;  %11815 = vst [vmem:[#allocation22_spill] sm:$0xff] %v9183_v46  ;;  %v9185_v42 = vpop.eup %8021 }
 0x135   : > { %vm1131_vm8 = vcmp.lt.s32.totalorder %v1112_v17, 1  ;;  %vm1134_vm15 = vcmp.lt.s32.totalorder %v1112_v17, 4  ;;  %11816 = vst [vmem:[#allocation23_spill] sm:$0xff] %v9185_v42  ;;  %v968_v26 = vor.u32 %v967_v51, %v966_v2  ;;  %v972_v23 = vor.u32 4788187, %v971_v62 }
 0x136   : > { %v1127_v50 = vor.u32 %v1126_v40, %v1125_v10  ;;  %v1130_v37 = vor.u32 %v1129_v6, %v1128_v31  ;;  %v1270_v14 = vclz %v7088_v29  ;;  %v1136_v21 = vsel %vm1134_vm15, %v1124_v3, 2102212464 }
 0x137   : > { %v1139_v9 = vsel %vm1131_vm8, %v1118_v8, %v1121_v49  ;;  %v11817_v16 = vmov 683565275   ;;  %vm1133_vm0 = vcmp.lt.s32.totalorder %v1112_v17, 3  ;;  %vm1132_vm7 = vcmp.lt.s32.totalorder %v1112_v17, 2 }
 0x138   : > { %v1115_v18 = vshrl.u32 %v11817_v16, %v1114_v20  ;;  %v1140_v41 = vsel %vm1134_vm15, %v1127_v50, 920167782  ;;  %v7089_v58 = vadd.s32 4294967294, %v1270_v14  ;;  %v1143_v10 = vsel %vm1131_vm8, %v1121_v49, %v1124_v3 }
 0x139   : > { %v1141_v24 = vsel %vm1133_vm0, %v1124_v3, %v1140_v41  ;;  %v1137_v6 = vsel %vm1133_vm0, %v1121_v49, %v1136_v21  ;;  %v1144_v51 = vsel %vm1134_vm15, %v1130_v37, 1326507024  ;;  %v973_v20 = vand.u32 2147483647, %v972_v23 }
 0x13a   : > { %v1135_v31 = vsel %vm1131_vm8, %v1115_v18, %v1118_v8  ;;  %v1142_v40 = vsel %vm1132_vm7, %v1139_v9, %v1141_v24  ;;  %vm7090_vm10 = vcmp.lt.s32.totalorder %v7089_v58, 0  ;;  %v1145_v2 = vsel %vm1133_vm0, %v1127_v50, %v1144_v51 }
 0x13b   : > { %v9193_v29 = vmul.u32.u64.low %v9170_v48, %v1142_v40  ;;  %v9194_v62 = vmul.u32.u64.high %v9170_v48, %v1142_v40, %v9193_v29  ;;  %v1273_v12 = vsel %vm7090_vm10, 0, %v7089_v58  ;;  %v1146_v14 = vsel %vm1132_vm7, %v1143_v10, %v1145_v2 }
 0x13c   : > { %vm1419_vm5 = vcmp.gt.s32.totalorder %v1418_v28, 0  ;;  %v1274_v41 = vsub.s32 32, %v1273_v12  ;;  %v1278_v3 = vsub.s32 4294967266, %v1273_v12  ;;  %v1138_v49 = vsel %vm1132_vm7, %v1135_v31, %v1137_v6 }
 0x13d   : > { %v1420_v8 = vsel %vm1419_vm5, %v1418_v28, 0  ;;  %v975_v24 = vcvt.s32.f32 %v968_v26  ;;  %v9200_v37 = vmul.u32.u64.low %v9170_v48, %v1146_v14  ;;  %v9201_v21 = vmul.u32.u64.high %v9170_v48, %v1146_v14, %v9200_v37 }
 0x13e   : > { %v1422_v50 = vand.u32 31, %v1420_v8  ;;  %v1258_v9 = vadd.s32 %v9095_v11, %v9101_v22  ;;  %v1279_v18 = vadd.s32 127, %v1278_v3  ;;  %v1157_v23 = vadd.s32 1, %v9194_v62 }
 0x13f   : > { %v11818_v58 = vand.u32 2147483647, %v9105_v52  ;;  %v9208_v40 = vmul.f32 %v975_v24, %v973_v20  ;;  %v1154_v17 = vmul.u32 %v9170_v48, %v1138_v49  ;;  %v1308_v26 = vand.u32 2139095040, %v9140_v39 }
 0x140   : > { %v1423_v28 = vsub.s32 32, %v1422_v50  ;;  %v1275_v31 = vshll.u32 %v9165_v43, %v1273_v12  ;;  %v1276_v6 = vshrl.u32 %v1258_v9, %v1274_v41  ;;  %v1280_v51 = vshll.u32 %v1279_v18, 23 }
 0x141   : > { %v1415_v10 = vand.u32 8388607, %v11818_v58  ;;  %v9213_v2 = vshrl.u32 %v1420_v8, 5  ;;  %vm1156_vm13 = vc.u32 %v9201_v21, %v9193_v29  ;;  %v1425_v11 = vshll.u32 %v11817_v16, %v1422_v50 }
 0x142   : > { %v1426_v22 = vshrl.u32 %v11809_v47, %v1423_v28  ;;  %v1428_v20 = vshll.u32 %v11809_v47, %v1422_v50  ;;  %v1158_v48 = vsel %vm1156_vm13, %v1157_v23, %v9194_v62  ;;  %v1429_v14 = vshrl.u32 %v11810_v34, %v1423_v28 }
 0x143   : > { %v1431_v3 = vshll.u32 %v11810_v34, %v1422_v50  ;;  %v1434_v12 = vshll.u32 %v11811_v33, %v1422_v50  ;;  %v1159_v43 = vadd.s32 %v1158_v48, %v1154_v17  ;;  %v1432_v41 = vshrl.u32 %v11811_v33, %v1423_v28 }
 0x144   : > { %v1435_v49 = vshrl.u32 %v11813_v15, %v1423_v28  ;;  %v1437_v8 = vshll.u32 %v11813_v15, %v1422_v50  ;;  %vm1204_vm8 = vcmp.lt.s32.totalorder %v8859_v56, 0  ;;  %v1281_v24 = vor.u32 4788187, %v1280_v51 }
 0x145   : > { %v1427_v37 = vor.u32 %v1426_v22, %v1425_v11  ;;  %v1430_v9 = vor.u32 %v1429_v14, %v1428_v20  ;;  %v1438_v62 = vshrl.u32 %v11814_v57, %v1423_v28  ;;  %v1160_v18 = vadd.s32 536870912, %v1159_v43 }
 0x146   : > { %v1433_v23 = vor.u32 %v1432_v41, %v1431_v3  ;;  %v1436_v58 = vor.u32 %v1435_v49, %v1434_v12  ;;  %v1309_v7 = vshrl.u32 %v1308_v26, 23  ;;  %v1277_v4 = vor.u32 %v1276_v6, %v1275_v31 }
 0x147   : > { %v1288_v17 = vsub.s32 4, %v9146_v5  ;;  %v1416_v48 = vor.u32 8388608, %v1415_v10  ;;  %v1439_v27 = vor.u32 %v1438_v62, %v1437_v8  ;;  %v977_v32 = vxor.u32 2147483648, %v9208_v40 }
 0x148   : > { %v9231_v54 = vshrl.u32 %v1160_v18, 30  ;;  %vm1440_vm15 = vcmp.lt.s32.totalorder %v9213_v2, 1  ;;  %vm1443_vm0 = vcmp.lt.s32.totalorder %v9213_v2, 4  ;;  %v11819_v50 = vand.u32 2147483647, %v8859_v56 }
 0x149   : > { %v1282_v26 = vand.u32 2147483647, %v1281_v24  ;;  %vm1442_vm10 = vcmp.lt.s32.totalorder %v9213_v2, 3  ;;  %v1448_v10 = vsel %vm1440_vm15, %v1427_v37, %v1430_v9  ;;  %v1449_v31 = vsel %vm1443_vm0, %v1436_v58, 920167782 }
 0x14a   : > { %vm9237_vm7 = vcmp.le.f32.partialorder %v11819_v50, 0.7853982  ;;  %v1162_v6 = vshll.u32 %v9231_v54, 30  ;;  %v1450_v11 = vsel %vm1442_vm10, %v1433_v23, %v1449_v31  ;;  %v1452_v22 = vsel %vm1440_vm15, %v1430_v9, %v1433_v23 }
 0x14b   : > { %v7091_v20 = vadd.s32 4294967169, %v1309_v7  ;;  %v1284_v14 = vcvt.s32.f32 %v1277_v4  ;;  %vm1441_vm5 = vcmp.lt.s32.totalorder %v9213_v2, 2  ;;  %v1445_v3 = vsel %vm1443_vm0, %v1433_v23, 2102212464 }
 0x14c   : > { %v1453_v12 = vsel %vm1443_vm0, %v1439_v27, 1326507024  ;;  %v9250_v41 = vsub.s32 %v1159_v43, %v1162_v6  ;;  %v1424_v49 = vshrl.u32 %v11817_v16, %v1423_v28  ;;  %v1451_v8 = vsel %vm1441_vm5, %v1448_v10, %v1450_v11 }
 0x14d   : > { %v1454_v24 = vsel %vm1442_vm10, %v1436_v58, %v1453_v12  ;;  %v1084_v7 = vsel %vm9039_vm12, %v8781_v53, %v9155_v44  ;;  %v1285_v4 = vmul.f32 %v1284_v14, %v1282_v26  ;;  %v1456_v27 = vshll.u32 %v1416_v48, 8 }
 0x14e   : > { %v1455_v62 = vsel %vm1441_vm5, %v1452_v22, %v1454_v24  ;;  %v1289_v28 = vsel %vm1204_vm8, %v1288_v17, %v9146_v5  ;;  %v1165_v43 = vsub.s32 0, %v9250_v41  ;;  %v1444_v18 = vsel %vm1440_vm15, %v1424_v49, %v1427_v37 }
 0x14f   : > { %v1446_v23 = vsel %vm1442_vm10, %v1430_v9, %v1445_v3  ;;  %vm1101_vm13 = vcmp.lt.s32.totalorder %v9030_v59, 0  ;;  %v9272_v1 = vmul.u32.u64.low %v1456_v27, %v1455_v62  ;;  %v9273_v44 = vmul.u32.u64.high %v1456_v27, %v1455_v62, %v9272_v1  ;;  %v419_v62 = vpop.permute.xlu1 %418 }
 0x150   : > { %v9275_v58 = vmul.u32.u64.low %v1456_v27, %v1451_v8  ;;  %v9276_v50 = vmul.u32.u64.high %v1456_v27, %v1451_v8, %v9275_v58  ;;  %8023 = vcosq.f32 %v1084_v7  ;;  %v978_v5 = vsel %vm895_vm4, %v977_v32, %v9208_v40 }
 0x151   : > { %v7084_v17 = vmin.u32 %v1165_v43, %v9250_v41  ;;  %v1315_v37 = vadd.s32 1, %v7091_v20  ;;  %v9284_v48 = vand.u32 3, %v9159_v19  ;;  %v1286_v9 = vxor.u32 2147483648, %v1285_v4 }
 0x152   : > { %v1447_v26 = vsel %vm1441_vm5, %v1444_v18, %v1446_v23  ;;  %v11706_v10 = vand.u32 2147483647, %v9140_v39  ;;  %8025 = vsinq.f32 %v1084_v7  ;;  %v1291_v31 = vsel %vm9237_vm7, 0, %v1289_v28 }
 0x153   : > { %11822 = vst [vmem:[#allocation24_spill] sm:$0xff] %v9284_v48  ;;  %v1167_v6 = vclz %v7084_v17  ;;  %vm1316_vm12 = vcmp.gt.s32.totalorder %v1315_v37, 0  ;;  %v981_v32 = vsel %vm9131_vm14, %v8852_v55, %v978_v5  ;;  %vm1465_vm4 = vc.u32 %v9273_v44, %v9275_v58 }
 0x154   : > { %v1466_v19 = vadd.s32 1, %v9276_v50  ;;  %v1317_v40 = vsel %vm1316_vm12, %v1315_v37, 0  ;;  %v1185_v11 = vsub.s32 4, %v9231_v54  ;;  %v1463_v22 = vmul.u32 %v1456_v27, %v1447_v26 }
 0x155   : > { %v7085_v2 = vadd.s32 4294967294, %v1167_v6  ;;  %v1319_v20 = vand.u32 31, %v1317_v40  ;;  %v1287_v14 = vsel %vm1204_vm8, %v1286_v9, %v1285_v4  ;;  %v9300_v3 = vand.u32 3, %v1291_v31 }
 0x156   : > { %v11824_v12 = vand.u32 2147483647, %v9030_v59  ;;  %v1467_v49 = vsel %vm1465_vm4, %v1466_v19, %v9276_v50  ;;  %v1312_v8 = vand.u32 8388607, %v11706_v10  ;;  %8027 = vcosq.f32 %v981_v32 }
 0x157   : > { %11823 = vst [vmem:[#allocation25_spill] sm:$0xff] %v9300_v3  ;;  %vm7086_vm14 = vcmp.lt.s32.totalorder %v7085_v2, 0  ;;  %v1468_v24 = vadd.s32 %v1467_v49, %v1463_v22  ;;  %v1320_v7 = vsub.s32 32, %v1319_v20  ;;  %8029 = vsinq.f32 %v981_v32 }
 0x158   : > { %vm9304_vm15 = vcmp.le.f32.partialorder %v11824_v12, 0.7853982  ;;  %v9311_v4 = vadd.s32 3, %v1291_v31  ;;  %v1155_v27 = vadd.s32 %v9193_v29, %v9201_v21  ;;  %v9315_v28 = vsel %vm7086_vm14, 0, %v7085_v2 }
 0x159   : > { %v9320_v43 = vsel %vm9237_vm7, %v8859_v56, %v1287_v14  ;;  %v1175_v18 = vsub.s32 4294967266, %v9315_v28  ;;  %v1186_v23 = vsel %vm1101_vm13, %v1185_v11, %v9231_v54  ;;  %v1469_v1 = vadd.s32 536870912, %v1468_v24 }
 0x15a   : > { %v1313_v50 = vor.u32 8388608, %v1312_v8  ;;  %v1323_v5 = vshrl.u32 %v11809_v47, %v1320_v7  ;;  %v1326_v17 = vshrl.u32 %v11810_v34, %v1320_v7  ;;  %v9329_v29 = vmul.f32 %v8630_v60, %v419_v62  ;;  %v9331_v21 = vpop.eup %8023 }
 0x15b   : > { %11828 = vst [vmem:[#allocation27_spill] sm:$0xff] %v9331_v21  ;;  %v9333_v51 = vshrl.u32 %v1469_v1, 30  ;;  %v1322_v37 = vshll.u32 %v11817_v16, %v1319_v20  ;;  %v1329_v9 = vshrl.u32 %v11811_v33, %v1320_v7  ;;  %v1332_v26 = vshrl.u32 %v11813_v15, %v1320_v7 }
 0x15c   : > { %11827 = vst [vmem:[#allocation26_spill] sm:$0xff] %v9329_v29  ;;  %v1176_v54 = vadd.s32 127, %v1175_v18  ;;  %v9338_v31 = vshrl.u32 %v1317_v40, 5  ;;  %v1325_v6 = vshll.u32 %v11809_v47, %v1319_v20  ;;  %v1331_v32 = vshll.u32 %v11811_v33, %v1319_v20  ;;  %v9342_v19 = vpop.eup %8025 }
 0x15d   : > { %11829 = vst [vmem:[#allocation28_spill] sm:$0xff] %v9342_v19  ;;  %v1171_v2 = vsub.s32 32, %v9315_v28  ;;  %v1471_v11 = vshll.u32 %v9333_v51, 30  ;;  %v1324_v22 = vor.u32 %v1323_v5, %v1322_v37  ;;  %v1328_v14 = vshll.u32 %v11810_v34, %v1319_v20 }
 0x15e   : > { %v1327_v12 = vor.u32 %v1326_v17, %v1325_v6  ;;  %v1333_v49 = vor.u32 %v1332_v26, %v1331_v32  ;;  %v1334_v8 = vshll.u32 %v11813_v15, %v1319_v20  ;;  %v1335_v40 = vshrl.u32 %v11814_v57, %v1320_v7 }
 0x15f   : > { %8031 = vcosq.f32 %v9320_v43  ;;  %v1188_v62 = vsel %vm9304_vm15, 0, %v1186_v23  ;;  %v9352_v18 = vsub.s32 %v1468_v24, %v1471_v11  ;;  %v1330_v1 = vor.u32 %v1329_v9, %v1328_v14 }
 0x160   : > { %v1177_v10 = vshll.u32 %v1176_v54, 23  ;;  %v1336_v3 = vor.u32 %v1335_v40, %v1334_v8  ;;  %v9354_v56 = vshll.u32 %v1313_v50, 8  ;;  %v1617_v5 = vand.u32 2139095040, %v9329_v29  ;;  %v9357_v17 = vpop.eup %8027  ;;  %v414_v54 = vpop.permute.xlu0 %413 }
 0x161   : > { %11830 = vst [vmem:[#allocation29_spill] sm:$0xff] %v9357_v17  ;;  %v1172_v20 = vshll.u32 %v9250_v41, %v9315_v28  ;;  %v1474_v37 = vsub.s32 0, %v9352_v18  ;;  %vm1337_vm8 = vcmp.lt.s32.totalorder %v9338_v31, 1  ;;  %vm1340_vm0 = vcmp.lt.s32.totalorder %v9338_v31, 4  ;;  %v9364_v24 = vpop.eup %8029 }
 0x162   : > { %11831 = vst [vmem:[#allocation30_spill] sm:$0xff] %v9364_v24  ;;  %v1173_v23 = vshrl.u32 %v1155_v27, %v1171_v2  ;;  %vm1410_vm7 = vcmp.lt.s32.totalorder %v9105_v52, 0  ;;  %v1321_v50 = vshrl.u32 %v11817_v16, %v1320_v7  ;;  %v1345_v9 = vsel %vm1337_vm8, %v1324_v22, %v1327_v12 }
 0x163   : > { %v1346_v26 = vsel %vm1340_vm0, %v1333_v49, 920167782  ;;  %v7096_v41 = vmin.u32 %v1474_v37, %v9352_v18  ;;  %vm1338_vm10 = vcmp.lt.s32.totalorder %v9338_v31, 2  ;;  %vm1339_vm5 = vcmp.lt.s32.totalorder %v9338_v31, 3 }
 0x164   : > { %v1342_v28 = vsel %vm1340_vm0, %v1330_v1, 2102212464  ;;  %v1178_v6 = vor.u32 4788187, %v1177_v10  ;;  %v1347_v32 = vsel %vm1339_vm5, %v1330_v1, %v1346_v26  ;;  %v1349_v27 = vsel %vm1337_vm8, %v1327_v12, %v1330_v1 }
 0x165   : > { %v1350_v2 = vsel %vm1340_vm0, %v1336_v3, 1326507024  ;;  %v11832_v7 = vand.u32 2147483647, %v9105_v52  ;;  %v1476_v14 = vclz %v7096_v41  ;;  %v1341_v8 = vsel %vm1337_vm8, %v1321_v50, %v1324_v22  ;;  %v429_v50 = vpop.permute.xlu1 %428 }
 0x166   : > { %v1348_v40 = vsel %vm1338_vm10, %v1345_v9, %v1347_v32  ;;  %v1351_v37 = vsel %vm1339_vm5, %v1333_v49, %v1350_v2  ;;  %v1343_v10 = vsel %vm1339_vm5, %v1327_v12, %v1342_v28  ;;  %v1494_v48 = vsub.s32 4, %v9333_v51  ;;  %v424_v9 = vpop.permute.xlu0 %423 }
 0x167   : > { %vm9377_vm12 = vcmp.le.f32.partialorder %v11832_v7, 0.7853982  ;;  %v1352_v26 = vsel %vm1338_vm10, %v1349_v27, %v1351_v37  ;;  %v9388_v3 = vmul.u32.u64.low %v9354_v56, %v1348_v40  ;;  %v9389_v1 = vmul.u32.u64.high %v9354_v56, %v1348_v40, %v9388_v3 }
 0x168   : > { %v7097_v7 = vadd.s32 4294967294, %v1476_v14  ;;  %v9394_v41 = vmul.u32.u64.low %v9354_v56, %v1352_v26  ;;  %v9395_v21 = vmul.u32.u64.high %v9354_v56, %v1352_v26, %v9394_v41  ;;  %8033 = vsinq.f32 %v9320_v43 }
 0x169   : > { %v9399_v22 = vand.u32 3, %v9311_v4  ;;  %v1174_v12 = vor.u32 %v1173_v23, %v1172_v20  ;;  %v1618_v49 = vshrl.u32 %v1617_v5, 23  ;;  %v9401_v28 = vpop.eup %8031  ;;  %v9403_v32 = vand.u32 3, %v1188_v62  ;;  %v439_v41 = vpop.permute.xlu1 %438 }
 0x16a   : > { %11836 = vst [vmem:[#allocation32_spill] sm:$0xff] %v9401_v28  ;;  %v3258_v27 = vadd.s32 3, %v1188_v62  ;;  %vm7098_vm4 = vcmp.lt.s32.totalorder %v7097_v7, 0  ;;  %v1344_v2 = vsel %vm1338_vm10, %v1341_v8, %v1343_v10  ;;  %v1179_v14 = vand.u32 2147483647, %v1178_v6 }
 0x16b   : > { %11835 = vst [vmem:[#allocation31_spill] sm:$0xff] %v9399_v22  ;;  %11837 = vst [vmem:[#allocation33_spill] sm:$0xff] %v9403_v32  ;;  %v9407_v40 = vsel %vm7098_vm4, 0, %v7097_v7  ;;  %v1363_v43 = vadd.s32 1, %v9389_v1  ;;  %v7103_v4 = vadd.s32 4294967169, %v1618_v49  ;;  %v1495_v5 = vsel %vm1410_vm7, %v1494_v48, %v9333_v51 }
 0x16c   : > { %v1484_v20 = vsub.s32 4294967266, %v9407_v40  ;;  %v11712_v23 = vand.u32 2147483647, %v9329_v29  ;;  %v9416_v62 = vmul.f32 %v8630_v60, %v414_v54  ;;  %v1181_v37 = vcvt.s32.f32 %v1174_v12 }
 0x16d   : > { %v1360_v31 = vmul.u32 %v9354_v56, %v1344_v2  ;;  %vm1362_vm14 = vc.u32 %v9395_v21, %v9388_v3  ;;  %v1624_v6 = vadd.s32 1, %v7103_v4  ;;  %v9421_v8 = vand.u32 3, %v3258_v27  ;;  %v434_v56 = vpop.permute.xlu0 %433 }
 0x16e   : > { %v1485_v10 = vadd.s32 127, %v1484_v20  ;;  %v1364_v26 = vsel %vm1362_vm14, %v1363_v43, %v9389_v1  ;;  %v9425_v7 = vmul.f32 %v8630_v60, %v429_v50  ;;  %v1182_v48 = vmul.f32 %v1181_v37, %v1179_v14 }
 0x16f   : > { %11838 = vst [vmem:[#allocation34_spill] sm:$0xff] %v9421_v8  ;;  %v1497_v51 = vsel %vm9377_vm12, 0, %v1495_v5  ;;  %v1365_v54 = vadd.s32 %v1364_v26, %v1360_v31  ;;  %vm1625_vm8 = vcmp.gt.s32.totalorder %v1624_v6, 0  ;;  %v1480_v12 = vsub.s32 32, %v9407_v40 }
 0x170   : > { %11839 = vst [vmem:[#allocation35_spill] sm:$0xff] %v9425_v7  ;;  %v1621_v49 = vand.u32 8388607, %v11712_v23  ;;  %v1626_v27 = vsel %vm1625_vm8, %v1624_v6, 0  ;;  %v1514_v2 = vand.u32 2139095040, %v9416_v62  ;;  %v1486_v1 = vshll.u32 %v1485_v10, 23 }
 0x171   : > { %v1366_v43 = vadd.s32 536870912, %v1365_v54  ;;  %v1628_v50 = vand.u32 31, %v1626_v27  ;;  %v9434_v14 = vmul.f32 %v8630_v60, %v424_v9  ;;  %v1464_v4 = vadd.s32 %v9275_v58, %v9273_v44 }
 0x172   : > { %v9440_v5 = vmul.f32 %v8630_v60, %v439_v41  ;;  %v9443_v37 = vmul.f32 %v8630_v60, %v434_v56  ;;  %v9445_v31 = vpop.eup %8033  ;;  %v1183_v6 = vxor.u32 2147483648, %v1182_v48  ;;  %v9447_v10 = vand.u32 3, %v1497_v51 }
 0x173   : > { %11841 = vst [vmem:[#allocation37_spill] sm:$0xff] %v9445_v31  ;;  %v9449_v26 = vshrl.u32 %v1366_v43, 30  ;;  %v1629_v9 = vsub.s32 32, %v1628_v50  ;;  %v1482_v23 = vshrl.u32 %v1464_v4, %v1480_v12  ;;  %v1622_v22 = vor.u32 8388608, %v1621_v49 }
 0x174   : > { %11840 = vst [vmem:[#allocation36_spill] sm:$0xff] %v9440_v5  ;;  %11842 = vst [vmem:[#allocation38_spill] sm:$0xff] %v9447_v10  ;;  %v1627_v8 = vshrl.u32 %v1626_v27, 5  ;;  %v1515_v44 = vshrl.u32 %v1514_v2, 23  ;;  %v1487_v58 = vor.u32 4788187, %v1486_v1  ;;  %v1631_v41 = vshll.u32 %v11817_v16, %v1628_v50 }
 0x175   : > { %v1368_v20 = vshll.u32 %v9449_v26, 30  ;;  %v1632_v56 = vshrl.u32 %v11809_v47, %v1629_v9  ;;  %v1634_v28 = vshll.u32 %v11809_v47, %v1628_v50  ;;  %v1635_v31 = vshrl.u32 %v11810_v34, %v1629_v9 }
 0x176   : > { %v1638_v10 = vshrl.u32 %v11811_v33, %v1629_v9  ;;  %v1641_v43 = vshrl.u32 %v11813_v15, %v1629_v9  ;;  %v1637_v12 = vshll.u32 %v11810_v34, %v1628_v50  ;;  %v1640_v49 = vshll.u32 %v11811_v33, %v1628_v50 }
 0x177   : > { %v9458_v32 = vsub.s32 %v1365_v54, %v1368_v20  ;;  %v1644_v27 = vshrl.u32 %v11814_v57, %v1629_v9  ;;  %v1481_v2 = vshll.u32 %v9352_v18, %v9407_v40  ;;  %v1633_v1 = vor.u32 %v1632_v56, %v1631_v41 }
 0x178   : > { %v1636_v4 = vor.u32 %v1635_v31, %v1634_v28  ;;  %v1643_v19 = vshll.u32 %v11813_v15, %v1628_v50  ;;  %v3570_v53 = vadd.s32 3, %v1497_v51  ;;  %v1639_v24 = vor.u32 %v1638_v10, %v1637_v12 }
 0x179   : > { %v1371_v17 = vsub.s32 0, %v9458_v32  ;;  %v1642_v55 = vor.u32 %v1641_v43, %v1640_v49  ;;  %v1184_v54 = vsel %vm1101_vm13, %v1183_v6, %v1182_v48  ;;  %v1483_v20 = vor.u32 %v1482_v23, %v1481_v2 }
 0x17a   : > { %v1645_v63 = vor.u32 %v1644_v27, %v1643_v19  ;;  %v1662_v46 = vshll.u32 %v1622_v22, 8  ;;  %v1488_v42 = vand.u32 2147483647, %v1487_v58  ;;  %vm1646_vm0 = vcmp.lt.s32.totalorder %v1627_v8, 1 }
 0x17b   : > { %v7092_v35 = vmin.u32 %v1371_v17, %v9458_v32  ;;  %v7099_v18 = vadd.s32 4294967169, %v1515_v44  ;;  %v1630_v28 = vshrl.u32 %v11817_v16, %v1629_v9  ;;  %vm1647_vm10 = vcmp.lt.s32.totalorder %v1627_v8, 2 }
 0x17c   : > { %vm1649_vm5 = vcmp.lt.s32.totalorder %v1627_v8, 4  ;;  %v1654_v40 = vsel %vm1646_vm0, %v1633_v1, %v1636_v4  ;;  %vm1648_vm4 = vcmp.lt.s32.totalorder %v1627_v8, 3  ;;  %v1658_v48 = vsel %vm1646_vm0, %v1636_v4, %v1639_v24 }
 0x17d   : > { %v1373_v51 = vclz %v7092_v35  ;;  %v1651_v50 = vsel %vm1649_vm5, %v1639_v24, 2102212464  ;;  %v1655_v31 = vsel %vm1649_vm5, %v1642_v55, 920167782  ;;  %v1650_v10 = vsel %vm1646_vm0, %v1630_v28, %v1633_v1 }
 0x17e   : > { %v1656_v41 = vsel %vm1648_vm4, %v1639_v24, %v1655_v31  ;;  %v1659_v23 = vsel %vm1649_vm5, %v1645_v63, 1326507024  ;;  %v1652_v22 = vsel %vm1648_vm4, %v1636_v4, %v1651_v50  ;;  %v1490_v58 = vcvt.s32.f32 %v1483_v20 }
 0x17f   : > { %v7093_v19 = vadd.s32 4294967294, %v1373_v51  ;;  %v1657_v6 = vsel %vm1647_vm10, %v1654_v40, %v1656_v41  ;;  %v1660_v17 = vsel %vm1648_vm4, %v1642_v55, %v1659_v23  ;;  %vm1307_vm13 = vcmp.lt.s32.totalorder %v9140_v39, 0 }
 0x180   : > { %v1661_v9 = vsel %vm1647_vm10, %v1658_v48, %v1660_v17  ;;  %v9474_v44 = vmul.u32.u64.low %v1662_v46, %v1657_v6  ;;  %v9475_v56 = vmul.u32.u64.high %v1662_v46, %v1657_v6, %v9474_v44  ;;  %v1521_v24 = vadd.s32 1, %v7099_v18 }
 0x181   : > { %vm7094_vm14 = vcmp.lt.s32.totalorder %v7093_v19, 0  ;;  %v9478_v35 = vmul.u32.u64.low %v1662_v46, %v1661_v9  ;;  %v9479_v43 = vmul.u32.u64.high %v1662_v46, %v1661_v9, %v9478_v35  ;;  %v1491_v63 = vmul.f32 %v1490_v58, %v1488_v42 }
 0x182   : > { %v9481_v12 = vand.u32 3, %v3570_v53  ;;  %v1376_v49 = vsel %vm7094_vm14, 0, %v7093_v19  ;;  %v1653_v55 = vsel %vm1647_vm10, %v1650_v10, %v1652_v22  ;;  %v1187_v27 = vsel %vm9304_vm15, %v9030_v59, %v1184_v54 }
 0x183   : > { %v1377_v2 = vsub.s32 32, %v1376_v49  ;;  %v1381_v1 = vsub.s32 4294967266, %v1376_v49  ;;  %vm1522_vm8 = vcmp.gt.s32.totalorder %v1521_v24, 0  ;;  %v1361_v4 = vadd.s32 %v9388_v3, %v9395_v21 }
 0x184   : > { %11843 = vst [vmem:[#allocation39_spill] sm:$0xff] %v9481_v12  ;;  %v1672_v20 = vadd.s32 1, %v9475_v56  ;;  %v11844_v18 = vand.u32 2147483647, %v9416_v62  ;;  %v1523_v53 = vsel %vm1522_vm8, %v1521_v24, 0  ;;  %v1391_v8 = vsub.s32 4, %v9449_v26 }
 0x185   : > { %v1382_v28 = vadd.s32 127, %v1381_v1  ;;  %v1669_v40 = vmul.u32 %v1662_v46, %v1653_v55  ;;  %vm1671_vm0 = vc.u32 %v9479_v43, %v9474_v44  ;;  %v1492_v30 = vxor.u32 2147483648, %v1491_v63 }
 0x186   : > { %v1518_v42 = vand.u32 8388607, %v11844_v18  ;;  %v11845_v54 = vand.u32 2147483647, %v9140_v39  ;;  %v1673_v21 = vsel %vm1671_vm0, %v1672_v20, %v9475_v56  ;;  %v1525_v3 = vand.u32 31, %v1523_v53 }
 0x187   : > { %v1823_v50 = vand.u32 2139095040, %v9425_v7  ;;  %8035 = vcosq.f32 %v1187_v27  ;;  %v1379_v31 = vshrl.u32 %v1361_v4, %v1377_v2  ;;  %v1383_v10 = vshll.u32 %v1382_v28, 23 }
 0x188   : > { %vm9497_vm15 = vcmp.le.f32.partialorder %v11845_v54, 0.7853982  ;;  %v1674_v41 = vadd.s32 %v1673_v21, %v1669_v40  ;;  %8037 = vsinq.f32 %v1187_v27  ;;  %v1519_v46 = vor.u32 8388608, %v1518_v42 }
 0x189   : > { %v1526_v48 = vsub.s32 32, %v1525_v3  ;;  %v11732_v23 = vand.u32 2147483647, %v9425_v7  ;;  %v1378_v19 = vshll.u32 %v9458_v32, %v1376_v49  ;;  %v1384_v22 = vor.u32 4788187, %v1383_v10 }
 0x18a   : > { %v1392_v6 = vsel %vm1307_vm13, %v1391_v8, %v9449_v26  ;;  %v1675_v17 = vadd.s32 536870912, %v1674_v41  ;;  %v1493_v58 = vsel %vm1410_vm7, %v1492_v30, %v1491_v63  ;;  %v1824_v35 = vshrl.u32 %v1823_v50, 23 }
 0x18b   : > { %v1529_v9 = vshrl.u32 %v11809_v47, %v1526_v48  ;;  %v1532_v56 = vshrl.u32 %v11810_v34, %v1526_v48  ;;  %v1380_v24 = vor.u32 %v1379_v31, %v1378_v19  ;;  %v1535_v27 = vshrl.u32 %v11811_v33, %v1526_v48 }
 0x18c   : > { %v9512_v55 = vshrl.u32 %v1675_v17, 30  ;;  %v1538_v32 = vshrl.u32 %v11813_v15, %v1526_v48  ;;  %v1528_v49 = vshll.u32 %v11817_v16, %v1525_v3  ;;  %v1531_v26 = vshll.u32 %v11809_v47, %v1525_v3 }
 0x18d   : > { %v1537_v2 = vshll.u32 %v11811_v33, %v1525_v3  ;;  %v1541_v63 = vshrl.u32 %v11814_v57, %v1526_v48  ;;  %v1385_v1 = vand.u32 2147483647, %v1384_v22  ;;  %v1524_v20 = vshrl.u32 %v1523_v53, 5 }
 0x18e   : > { %v1677_v4 = vshll.u32 %v9512_v55, 30  ;;  %v1534_v18 = vshll.u32 %v11810_v34, %v1525_v3  ;;  %v1530_v42 = vor.u32 %v1529_v9, %v1528_v49  ;;  %v1533_v28 = vor.u32 %v1532_v56, %v1531_v26 }
 0x18f   : > { %v1539_v8 = vor.u32 %v1538_v32, %v1537_v2  ;;  %v1540_v40 = vshll.u32 %v11813_v15, %v1525_v3  ;;  %v1394_v30 = vsel %vm9497_vm15, 0, %v1392_v6  ;;  %v1559_v50 = vshll.u32 %v1519_v46, 8 }
 0x190   : > { %v9525_v54 = vsub.s32 %v1674_v41, %v1677_v4  ;;  %v1536_v21 = vor.u32 %v1535_v27, %v1534_v18  ;;  %v1496_v31 = vsel %vm9377_vm12, %v9105_v52, %v1493_v58  ;;  %v1387_v10 = vcvt.s32.f32 %v1380_v24 }
 0x191   : > { %v1542_v53 = vor.u32 %v1541_v63, %v1540_v40  ;;  %v9532_v19 = vand.u32 8388607, %v11732_v23  ;;  %v9534_v22 = vpop.eup %8035  ;;  %vm1543_vm7 = vcmp.lt.s32.totalorder %v1524_v20, 1  ;;  %vm1546_vm10 = vcmp.lt.s32.totalorder %v1524_v20, 4 }
 0x192   : > { %v1680_v3 = vsub.s32 0, %v9525_v54  ;;  %v7111_v41 = vadd.s32 4294967169, %v1824_v35  ;;  %v9537_v6 = vpop.eup %8037  ;;  %v9539_v46 = vmul.f32 %v1387_v10, %v1385_v1  ;;  %v1527_v11 = vshrl.u32 %v11817_v16, %v1526_v48 }
 0x193   : > { %v1551_v17 = vsel %vm1543_vm7, %v1530_v42, %v1533_v28  ;;  %v1552_v58 = vsel %vm1546_vm10, %v1539_v8, 920167782  ;;  %vm1545_vm12 = vcmp.lt.s32.totalorder %v1524_v20, 3  ;;  %v1548_v56 = vsel %vm1546_vm10, %v1536_v21, 2102212464 }
 0x194   : > { %v7104_v9 = vmin.u32 %v1680_v3, %v9525_v54  ;;  %v1555_v24 = vsel %vm1543_vm7, %v1533_v28, %v1536_v21  ;;  %vm1544_vm5 = vcmp.lt.s32.totalorder %v1524_v20, 2  ;;  %v1547_v27 = vsel %vm1543_vm7, %v1527_v11, %v1530_v42 }
 0x195   : > { %v1553_v32 = vsel %vm1545_vm12, %v1536_v21, %v1552_v58  ;;  %v1556_v49 = vsel %vm1546_vm10, %v1542_v53, 1326507024  ;;  %v1830_v63 = vadd.s32 1, %v7111_v41  ;;  %v1549_v1 = vsel %vm1545_vm12, %v1533_v28, %v1548_v56 }
 0x196   : > { %v1682_v26 = vclz %v7104_v9  ;;  %v1554_v35 = vsel %vm1544_vm5, %v1551_v17, %v1553_v32  ;;  %v1557_v2 = vsel %vm1545_vm12, %v1539_v8, %v1556_v49  ;;  %8039 = vcosq.f32 %v1496_v31 }
 0x197   : > { %v1558_v4 = vsel %vm1544_vm5, %v1555_v24, %v1557_v2  ;;  %v9545_v48 = vmul.u32.u64.low %v1559_v50, %v1554_v35  ;;  %v9546_v18 = vmul.u32.u64.high %v1559_v50, %v1554_v35, %v9545_v48  ;;  %vm1831_vm4 = vcmp.gt.s32.totalorder %v1830_v63, 0 }
 0x198   : > { %v7105_v40 = vadd.s32 4294967294, %v1682_v26  ;;  %v9549_v10 = vmul.u32.u64.low %v1559_v50, %v1558_v4  ;;  %v9550_v3 = vmul.u32.u64.high %v1559_v50, %v1558_v4, %v9549_v10  ;;  %v9552_v42 = vand.u32 3, %v1394_v30 }
 0x199   : > { %v9554_v21 = vadd.s32 3, %v1394_v30  ;;  %vm1616_vm14 = vcmp.lt.s32.totalorder %v9329_v29, 0  ;;  %v1832_v8 = vsel %vm1831_vm4, %v1830_v63, 0  ;;  %8041 = vsinq.f32 %v1496_v31 }
 0x19a   : > { %11848 = vst [vmem:[#allocation40_spill] sm:$0xff] %v9552_v42  ;;  %vm7106_vm8 = vcmp.lt.s32.totalorder %v7105_v40, 0  ;;  %v1550_v28 = vsel %vm1544_vm5, %v1547_v27, %v1549_v1  ;;  %v1834_v53 = vand.u32 31, %v1832_v8  ;;  %v1670_v41 = vadd.s32 %v9474_v44, %v9479_v43 }
 0x19b   : > { %v1685_v11 = vsel %vm7106_vm8, 0, %v7105_v40  ;;  %v1569_v17 = vadd.s32 1, %v9546_v18  ;;  %v1828_v58 = vor.u32 8388608, %v9532_v19  ;;  %v1389_v9 = vxor.u32 2147483648, %v9539_v46 }
 0x19c   : > { %v1686_v30 = vsub.s32 32, %v1685_v11  ;;  %v1690_v56 = vsub.s32 4294967266, %v1685_v11  ;;  %v1700_v24 = vsub.s32 4, %v9512_v55  ;;  %v1566_v32 = vmul.u32 %v1559_v50, %v1550_v28 }
 0x19d   : > { %vm1568_vm0 = vc.u32 %v9550_v3, %v9545_v48  ;;  %v9566_v20 = vshrl.u32 %v1832_v8, 5  ;;  %v1835_v31 = vsub.s32 32, %v1834_v53  ;;  %v1687_v44 = vshll.u32 %v9525_v54, %v1685_v11 }
 0x19e   : > { %v1688_v43 = vshrl.u32 %v1670_v41, %v1686_v30  ;;  %v1691_v27 = vadd.s32 127, %v1690_v56  ;;  %v1570_v49 = vsel %vm1568_vm0, %v1569_v17, %v9546_v18  ;;  %v1837_v26 = vshll.u32 %v11817_v16, %v1834_v53 }
 0x19f   : > { %v1571_v19 = vadd.s32 %v1570_v49, %v1566_v32  ;;  %v1838_v35 = vshrl.u32 %v11809_v47, %v1835_v31  ;;  %v1841_v2 = vshrl.u32 %v11810_v34, %v1835_v31  ;;  %v1840_v63 = vshll.u32 %v11809_v47, %v1834_v53 }
 0x1a0   : > { %v1692_v50 = vshll.u32 %v1691_v27, 23  ;;  %v1843_v1 = vshll.u32 %v11810_v34, %v1834_v53  ;;  %v1844_v4 = vshrl.u32 %v11811_v33, %v1835_v31  ;;  %v11849_v54 = vand.u32 2147483647, %v9329_v29  ;;  %v9587_v56 = vpop.eup %8039 }
 0x1a1   : > { %v1689_v18 = vor.u32 %v1688_v43, %v1687_v44  ;;  %v1572_v10 = vadd.s32 536870912, %v1571_v19  ;;  %v1846_v8 = vshll.u32 %v11811_v33, %v1834_v53  ;;  %v1847_v28 = vshrl.u32 %v11813_v15, %v1835_v31  ;;  %11852 = vst [vmem:[#allocation41_spill] sm:$0xff] %v9587_v56 }
 0x1a2   : > { %vm9578_vm7 = vcmp.le.f32.partialorder %v11849_v54, 0.7853982  ;;  %v1693_v41 = vor.u32 4788187, %v1692_v50  ;;  %v1701_v11 = vsel %vm1616_vm14, %v1700_v24, %v9512_v55  ;;  %v1839_v17 = vor.u32 %v1838_v35, %v1837_v26 }
 0x1a3   : > { %v1842_v30 = vor.u32 %v1841_v2, %v1840_v63  ;;  %v1573_v32 = vshrl.u32 %v1572_v10, 30  ;;  %v1845_v27 = vor.u32 %v1844_v4, %v1843_v1  ;;  %v1848_v49 = vor.u32 %v1847_v28, %v1846_v8  ;;  %v9590_v44 = vpop.eup %8041 }
 0x1a4   : > { %v1850_v54 = vshrl.u32 %v11814_v57, %v1835_v31  ;;  %11853 = vst [vmem:[#allocation42_spill] sm:$0xff] %v9590_v44  ;;  %v1390_v43 = vsel %vm1307_vm13, %v1389_v9, %v9539_v46  ;;  %v1694_v50 = vand.u32 2147483647, %v1693_v41  ;;  %vm1513_vm10 = vcmp.lt.s32.totalorder %v9416_v62, 0 }
 0x1a5   : > { %v1849_v55 = vshll.u32 %v11813_v15, %v1834_v53  ;;  %v1720_v24 = vand.u32 2139095040, %v9434_v14  ;;  %v1696_v26 = vcvt.s32.f32 %v1689_v18  ;;  %v1574_v35 = vshll.u32 %v1573_v32, 30 }
 0x1a6   : > { %vm1852_vm12 = vcmp.lt.s32.totalorder %v9566_v20, 1  ;;  %vm1855_vm5 = vcmp.lt.s32.totalorder %v9566_v20, 4  ;;  %vm1854_vm4 = vcmp.lt.s32.totalorder %v9566_v20, 3  ;;  %v11854_v9 = vand.u32 2147483647, %v9416_v62 }
 0x1a7   : > { %v1851_v2 = vor.u32 %v1850_v54, %v1849_v55  ;;  %v1860_v63 = vsel %vm1852_vm12, %v1839_v17, %v1842_v30  ;;  %v1861_v46 = vsel %vm1855_vm5, %v1848_v49, 920167782  ;;  %v9611_v1 = vsub.s32 %v1571_v19, %v1574_v35 }
 0x1a8   : > { %vm9607_vm13 = vcmp.le.f32.partialorder %v11854_v9, 0.7853982  ;;  %vm1853_vm8 = vcmp.lt.s32.totalorder %v9566_v20, 2  ;;  %v1862_v4 = vsel %vm1854_vm4, %v1845_v27, %v1861_v46  ;;  %v1868_v18 = vshll.u32 %v1828_v58, 8 }
 0x1a9   : > { %v1697_v10 = vmul.f32 %v1696_v26, %v1694_v50  ;;  %v1857_v8 = vsel %vm1855_vm5, %v1845_v27, 2102212464  ;;  %v1863_v28 = vsel %vm1853_vm8, %v1860_v63, %v1862_v4  ;;  %v1721_v41 = vshrl.u32 %v1720_v24, 23 }
 0x1aa   : > { %v1577_v54 = vsub.s32 0, %v9611_v1  ;;  %v1597_v55 = vsub.s32 4, %v1573_v32  ;;  %v1836_v19 = vshrl.u32 %v11817_v16, %v1835_v31  ;;  %v1864_v35 = vsel %vm1852_vm12, %v1842_v30, %v1845_v27 }
 0x1ab   : > { %v1703_v46 = vsel %vm9578_vm7, 0, %v1701_v11  ;;  %v1865_v58 = vsel %vm1855_vm5, %v1851_v2, 1326507024  ;;  %v9628_v50 = vmul.u32.u64.low %v1868_v18, %v1863_v28  ;;  %v9629_v26 = vmul.u32.u64.high %v1868_v18, %v1863_v28, %v9628_v50 }
 0x1ac   : > { %v7100_v24 = vmin.u32 %v1577_v54, %v9611_v1  ;;  %v1856_v63 = vsel %vm1852_vm12, %v1836_v19, %v1839_v17  ;;  %v1858_v31 = vsel %vm1854_vm4, %v1842_v30, %v1857_v8  ;;  %v1866_v27 = vsel %vm1854_vm4, %v1848_v49, %v1865_v58 }
 0x1ad   : > { %v9642_v11 = vsel %vm9497_vm15, %v9140_v39, %v1390_v43  ;;  %v1698_v2 = vxor.u32 2147483648, %v1697_v10  ;;  %v1867_v9 = vsel %vm1853_vm8, %v1864_v35, %v1866_v27  ;;  %v7107_v4 = vadd.s32 4294967169, %v1721_v41 }
 0x1ae   : > { %v1579_v28 = vclz %v7100_v24  ;;  %v1598_v17 = vsel %vm1513_vm10, %v1597_v55, %v1573_v32  ;;  %v9648_v54 = vmul.u32.u64.low %v1868_v18, %v1867_v9  ;;  %v9649_v19 = vmul.u32.u64.high %v1868_v18, %v1867_v9, %v9648_v54 }
 0x1af   : > { %v3778_v30 = vadd.s32 3, %v1703_v46  ;;  %v1859_v49 = vsel %vm1853_vm8, %v1856_v63, %v1858_v31  ;;  %v1878_v51 = vadd.s32 1, %v9629_v26  ;;  %v1727_v43 = vadd.s32 1, %v7107_v4 }
 0x1b0   : > { %8043 = vcosq.f32 %v9642_v11  ;;  %v9656_v8 = vand.u32 3, %v9554_v21  ;;  %v9658_v41 = vand.u32 3, %v1703_v46  ;;  %v7101_v35 = vadd.s32 4294967294, %v1579_v28 }
 0x1b1   : > { %v1699_v32 = vsel %vm1616_vm14, %v1698_v2, %v1697_v10  ;;  %v9664_v55 = vsel %vm9607_vm13, 0, %v1598_v17  ;;  %v11731_v20 = vand.u32 2147483647, %v9434_v14  ;;  %vm1728_vm15 = vcmp.gt.s32.totalorder %v1727_v43, 0 }
 0x1b2   : > { %11857 = vst [vmem:[#allocation43_spill] sm:$0xff] %v9656_v8  ;;  %11858 = vst [vmem:[#allocation44_spill] sm:$0xff] %v9658_v41  ;;  %vm7102_vm0 = vcmp.lt.s32.totalorder %v7101_v35, 0  ;;  %v1875_v58 = vmul.u32 %v1868_v18, %v1859_v49  ;;  %vm1877_vm12 = vc.u32 %v9649_v19, %v9628_v50  ;;  %v1729_v21 = vsel %vm1728_vm15, %v1727_v43, 0 }
 0x1b3   : > { %v9669_v24 = vand.u32 3, %v3778_v30  ;;  %v1582_v46 = vsel %vm7102_vm0, 0, %v7101_v35  ;;  %v1879_v63 = vsel %vm1877_vm12, %v1878_v51, %v9629_v26  ;;  %v1731_v31 = vand.u32 31, %v1729_v21 }
 0x1b4   : > { %v1567_v10 = vadd.s32 %v9545_v48, %v9550_v3  ;;  %v1583_v27 = vsub.s32 32, %v1582_v46  ;;  %v1587_v2 = vsub.s32 4294967266, %v1582_v46  ;;  %v1880_v9 = vadd.s32 %v1879_v63, %v1875_v58 }
 0x1b5   : > { %11859 = vst [vmem:[#allocation45_spill] sm:$0xff] %v9669_v24  ;;  %v9677_v18 = vsel %vm9578_vm7, %v9329_v29, %v1699_v32  ;;  %v9680_v4 = vadd.s32 3, %v9664_v55  ;;  %v1732_v28 = vsub.s32 32, %v1731_v31  ;;  %v1724_v48 = vand.u32 8388607, %v11731_v20 }
 0x1b6   : > { %v1585_v54 = vshrl.u32 %v1567_v10, %v1583_v27  ;;  %v1588_v26 = vadd.s32 127, %v1587_v2  ;;  %v1881_v30 = vadd.s32 536870912, %v1880_v9  ;;  %v1584_v3 = vshll.u32 %v9611_v1, %v1582_v46 }
 0x1b7   : > { %v1734_v49 = vshll.u32 %v11817_v16, %v1731_v31  ;;  %v1735_v40 = vshrl.u32 %v11809_v47, %v1732_v28  ;;  %v1738_v51 = vshrl.u32 %v11810_v34, %v1732_v28  ;;  %vm1822_vm14 = vcmp.lt.s32.totalorder %v9425_v7, 0 }
 0x1b8   : > { %v1589_v43 = vshll.u32 %v1588_v26, 23  ;;  %v1882_v35 = vshrl.u32 %v1881_v30, 30  ;;  %v1741_v32 = vshrl.u32 %v11811_v33, %v1732_v28  ;;  %v1744_v58 = vshrl.u32 %v11813_v15, %v1732_v28 }
 0x1b9   : > { %v1730_v63 = vshrl.u32 %v1729_v21, 5  ;;  %v1737_v10 = vshll.u32 %v11809_v47, %v1731_v31  ;;  %v1740_v27 = vshll.u32 %v11810_v34, %v1731_v31  ;;  %v1743_v1 = vshll.u32 %v11811_v33, %v1731_v31 }
 0x1ba   : > { %v9695_v46 = vpop.eup %8043  ;;  %v1586_v2 = vor.u32 %v1585_v54, %v1584_v3  ;;  %v1590_v20 = vor.u32 4788187, %v1589_v43  ;;  %v1883_v17 = vshll.u32 %v1882_v35, 30  ;;  %v1736_v26 = vor.u32 %v1735_v40, %v1734_v49 }
 0x1bb   : > { %11860 = vst [vmem:[#allocation46_spill] sm:$0xff] %v9695_v46  ;;  %v1739_v23 = vor.u32 %v1738_v51, %v1737_v10  ;;  %v1745_v24 = vor.u32 %v1744_v58, %v1743_v1  ;;  %v1746_v30 = vshll.u32 %v11813_v15, %v1731_v31  ;;  %v1747_v41 = vshrl.u32 %v11814_v57, %v1732_v28 }
 0x1bc   : > { %v1591_v29 = vand.u32 2147483647, %v1590_v20  ;;  %v9699_v21 = vsub.s32 %v1880_v9, %v1883_v17  ;;  %v1742_v12 = vor.u32 %v1741_v32, %v1740_v27  ;;  %v2029_v8 = vand.u32 2139095040, %v9440_v5 }
 0x1bd   : > { %v1906_v56 = vsub.s32 4, %v1882_v35  ;;  %v1725_v44 = vor.u32 8388608, %v1724_v48  ;;  %v1733_v52 = vshrl.u32 %v11817_v16, %v1732_v28  ;;  %v1748_v54 = vor.u32 %v1747_v41, %v1746_v30 }
 0x1be   : > { %v1593_v3 = vcvt.s32.f32 %v1586_v2  ;;  %v11861_v49 = vand.u32 2147483647, %v9425_v7  ;;  %v1886_v31 = vsub.s32 0, %v9699_v21  ;;  %vm1749_vm5 = vcmp.lt.s32.totalorder %v1730_v63, 1 }
 0x1bf   : > { %vm1752_vm4 = vcmp.lt.s32.totalorder %v1730_v63, 4  ;;  %vm1750_vm8 = vcmp.lt.s32.totalorder %v1730_v63, 2  ;;  %vm1751_vm15 = vcmp.lt.s32.totalorder %v1730_v63, 3  ;;  %v1757_v20 = vsel %vm1749_vm5, %v1736_v26, %v1739_v23 }
 0x1c0   : > { %vm9705_vm7 = vcmp.le.f32.partialorder %v11861_v49, 0.7853982  ;;  %v1758_v9 = vsel %vm1752_vm4, %v1745_v24, 920167782  ;;  %v1594_v17 = vmul.f32 %v1593_v3, %v1591_v29  ;;  %v7112_v48 = vmin.u32 %v1886_v31, %v9699_v21 }
 0x1c1   : > { %v1754_v28 = vsel %vm1752_vm4, %v1742_v12, 2102212464  ;;  %v1761_v41 = vsel %vm1749_vm5, %v1739_v23, %v1742_v12  ;;  %v1907_v51 = vsel %vm1822_vm14, %v1906_v56, %v1882_v35  ;;  %v1759_v43 = vsel %vm1751_vm15, %v1742_v12, %v1758_v9 }
 0x1c2   : > { %v1762_v32 = vsel %vm1752_vm4, %v1748_v54, 1326507024  ;;  %v1765_v58 = vshll.u32 %v1725_v44, 8  ;;  %v1888_v10 = vclz %v7112_v48  ;;  %v1753_v27 = vsel %vm1749_vm5, %v1733_v52, %v1736_v26 }
 0x1c3   : > { %v1760_v1 = vsel %vm1750_vm8, %v1757_v20, %v1759_v43  ;;  %v1763_v2 = vsel %vm1751_vm15, %v1745_v24, %v1762_v32  ;;  %v1755_v30 = vsel %vm1751_vm15, %v1739_v23, %v1754_v28  ;;  %v1595_v3 = vxor.u32 2147483648, %v1594_v17 }
 0x1c4   : > { %v1764_v49 = vsel %vm1750_vm8, %v1761_v41, %v1763_v2  ;;  %v9715_v46 = vmul.u32.u64.low %v1765_v58, %v1760_v1  ;;  %v9716_v29 = vmul.u32.u64.high %v1765_v58, %v1760_v1, %v9715_v46  ;;  %v7113_v31 = vadd.s32 4294967294, %v1888_v10 }
 0x1c5   : > { %v9719_v42 = vmul.u32.u64.low %v1765_v58, %v1764_v49  ;;  %v9720_v39 = vmul.u32.u64.high %v1765_v58, %v1764_v49, %v9719_v42  ;;  %8045 = vsinq.f32 %v9642_v11  ;;  %v9724_v12 = vand.u32 3, %v9664_v55 }
 0x1c6   : > { %v9727_v52 = vand.u32 3, %v9680_v4  ;;  %v2030_v23 = vshrl.u32 %v2029_v8, 23  ;;  %8047 = vcosq.f32 %v9677_v18  ;;  %vm7114_vm0 = vcmp.lt.s32.totalorder %v7113_v31, 0 }
 0x1c7   : > { %v1756_v56 = vsel %vm1750_vm8, %v1753_v27, %v1755_v30  ;;  %v11865_v44 = vand.u32 2147483647, %v9440_v5  ;;  %v1891_v35 = vsel %vm7114_vm0, 0, %v7113_v31  ;;  %v1909_v42 = vsel %vm9705_vm7, 0, %v1907_v51 }
 0x1c8   : > { %11864 = vst [vmem:[#allocation47_spill] sm:$0xff] %v9727_v52  ;;  %v1775_v11 = vadd.s32 1, %v9716_v29  ;;  %v7119_v55 = vadd.s32 4294967169, %v2030_v23  ;;  %v1596_v4 = vsel %vm1513_vm10, %v1595_v3, %v1594_v17  ;;  %v1892_v26 = vsub.s32 32, %v1891_v35 }
 0x1c9   : > { %v2033_v24 = vand.u32 8388607, %v11865_v44  ;;  %v1896_v8 = vsub.s32 4294967266, %v1891_v35  ;;  %v1926_v54 = vand.u32 2139095040, %v9443_v37  ;;  %v1772_v20 = vmul.u32 %v1765_v58, %v1756_v56 }
 0x1ca   : > { %vm1774_vm12 = vc.u32 %v9720_v39, %v9715_v46  ;;  %v2036_v63 = vadd.s32 1, %v7119_v55  ;;  %v11747_v9 = vand.u32 2147483647, %v9443_v37  ;;  %v1876_v48 = vadd.s32 %v9628_v50, %v9649_v19 }
 0x1cb   : > { %v1897_v28 = vadd.s32 127, %v1896_v8  ;;  %v3986_v41 = vadd.s32 3, %v1909_v42  ;;  %v1776_v51 = vsel %vm1774_vm12, %v1775_v11, %v9716_v29  ;;  %v1599_v17 = vsel %vm9607_vm13, %v9416_v62, %v1596_v4 }
 0x1cc   : > { %v1777_v43 = vadd.s32 %v1776_v51, %v1772_v20  ;;  %v2034_v32 = vor.u32 8388608, %v2033_v24  ;;  %vm2037_vm10 = vcmp.gt.s32.totalorder %v2036_v63, 0  ;;  %v1894_v58 = vshrl.u32 %v1876_v48, %v1892_v26 }
 0x1cd   : > { %v1898_v10 = vshll.u32 %v1897_v28, 23  ;;  %v2038_v27 = vsel %vm2037_vm10, %v2036_v63, 0  ;;  %v1927_v1 = vshrl.u32 %v1926_v54, 23  ;;  %8049 = vsinq.f32 %v9677_v18 }
 0x1ce   : > { %v9749_v2 = vand.u32 3, %v1909_v42  ;;  %v1778_v50 = vadd.s32 536870912, %v1777_v43  ;;  %v2040_v19 = vand.u32 31, %v2038_v27  ;;  %8051 = vcosq.f32 %v1599_v17 }
 0x1cf   : > { %v1893_v30 = vshll.u32 %v9699_v21, %v1891_v35  ;;  %v1899_v49 = vor.u32 4788187, %v1898_v10  ;;  %v9752_v29 = vand.u32 3, %v3986_v41  ;;  %v9754_v53 = vpop.eup %8045  ;;  %8053 = vsinq.f32 %v1599_v17  ;;  %v449_v41 = vpop.permute.xlu1 %448 }
 0x1d0   : > { %11866 = vst [vmem:[#allocation48_spill] sm:$0xff] %v9749_v2  ;;  %v1779_v3 = vshrl.u32 %v1778_v50, 30  ;;  %v2041_v31 = vsub.s32 32, %v2040_v19  ;;  %v9758_v23 = vand.u32 8388607, %v11747_v9  ;;  %v9760_v18 = vpop.eup %8047  ;;  %v2039_v44 = vshrl.u32 %v2038_v27, 5 }
 0x1d1   : > { %11867 = vst [vmem:[#allocation49_spill] sm:$0xff] %v9752_v29  ;;  %11868 = vst [vmem:[#allocation50_spill] sm:$0xff] %v9760_v18  ;;  %v1895_v56 = vor.u32 %v1894_v58, %v1893_v30  ;;  %v9762_v24 = vshll.u32 %v2034_v32, 8  ;;  %v7115_v42 = vadd.s32 4294967169, %v1927_v1  ;;  %v2043_v35 = vshll.u32 %v11817_v16, %v2040_v19 }
 0x1d2   : > { %v1780_v21 = vshll.u32 %v1779_v3, 30  ;;  %v2044_v11 = vshrl.u32 %v11809_v47, %v2041_v31  ;;  %v2046_v55 = vshll.u32 %v11809_v47, %v2040_v19  ;;  %v1900_v4 = vand.u32 2147483647, %v1899_v49 }
 0x1d3   : > { %vm1719_vm13 = vcmp.lt.s32.totalorder %v9434_v14, 0  ;;  %v2047_v26 = vshrl.u32 %v11810_v34, %v2041_v31  ;;  %v2050_v8 = vshrl.u32 %v11811_v33, %v2041_v31  ;;  %v2053_v54 = vshrl.u32 %v11813_v15, %v2041_v31 }
 0x1d4   : > { %v9771_v20 = vsub.s32 %v1777_v43, %v1780_v21  ;;  %v2049_v63 = vshll.u32 %v11810_v34, %v2040_v19  ;;  %v2052_v48 = vshll.u32 %v11811_v33, %v2040_v19  ;;  %v2056_v28 = vshrl.u32 %v11814_v57, %v2041_v31 }
 0x1d5   : > { %v2045_v51 = vor.u32 %v2044_v11, %v2043_v35  ;;  %v2048_v17 = vor.u32 %v2047_v26, %v2046_v55  ;;  %v2055_v32 = vshll.u32 %v11813_v15, %v2040_v19  ;;  %v1931_v58 = vor.u32 8388608, %v9758_v23 }
 0x1d6   : > { %v1902_v10 = vcvt.s32.f32 %v1895_v56  ;;  %v1783_v27 = vsub.s32 0, %v9771_v20  ;;  %v2051_v1 = vor.u32 %v2050_v8, %v2049_v63  ;;  %v2054_v50 = vor.u32 %v2053_v54, %v2052_v48 }
 0x1d7   : > { %v11869_v43 = vand.u32 2147483647, %v9434_v14  ;;  %v1803_v49 = vsub.s32 4, %v1779_v3  ;;  %v2057_v21 = vor.u32 %v2056_v28, %v2055_v32  ;;  %v1933_v9 = vadd.s32 1, %v7115_v42  ;;  %v9788_v19 = vpop.eup %8049 }
 0x1d8   : > { %v9786_v35 = vmul.f32 %v8630_v60, %v449_v41  ;;  %11872 = vst [vmem:[#allocation51_spill] sm:$0xff] %v9788_v19  ;;  %v1903_v23 = vmul.f32 %v1902_v10, %v1900_v4  ;;  %v7108_v56 = vmin.u32 %v1783_v27, %v9771_v20  ;;  %v2042_v11 = vshrl.u32 %v11817_v16, %v2041_v31  ;;  %v9792_v55 = vpop.eup %8051 }
 0x1d9   : > { %vm9781_vm5 = vcmp.le.f32.partialorder %v11869_v43, 0.7853982  ;;  %vm2058_vm4 = vcmp.lt.s32.totalorder %v2039_v44, 1  ;;  %11873 = vst [vmem:[#allocation52_spill] sm:$0xff] %v9792_v55  ;;  %vm2059_vm8 = vcmp.lt.s32.totalorder %v2039_v44, 2  ;;  %vm2060_vm15 = vcmp.lt.s32.totalorder %v2039_v44, 3  ;;  %v9794_v8 = vpop.eup %8053 }
 0x1da   : > { %vm2061_vm0 = vcmp.lt.s32.totalorder %v2039_v44, 4  ;;  %v2066_v26 = vsel %vm2058_vm4, %v2045_v51, %v2048_v17  ;;  %v1785_v42 = vclz %v7108_v56  ;;  %v2062_v54 = vsel %vm2058_vm4, %v2042_v11, %v2045_v51 }
 0x1db   : > { %v2063_v63 = vsel %vm2061_vm0, %v2051_v1, 2102212464  ;;  %v2067_v48 = vsel %vm2061_vm0, %v2054_v50, 920167782  ;;  %v2070_v4 = vsel %vm2058_vm4, %v2048_v17, %v2051_v1  ;;  %v2071_v32 = vsel %vm2061_vm0, %v2057_v21, 1326507024 }
 0x1dc   : > { %v2064_v28 = vsel %vm2060_vm15, %v2048_v17, %v2063_v63  ;;  %v2068_v41 = vsel %vm2060_vm15, %v2051_v1, %v2067_v48  ;;  %v7109_v10 = vadd.s32 4294967294, %v1785_v42  ;;  %v1804_v31 = vsel %vm1719_vm13, %v1803_v49, %v1779_v3 }
 0x1dd   : > { %v2069_v27 = vsel %vm2059_vm8, %v2066_v26, %v2068_v41  ;;  %v2072_v43 = vsel %vm2060_vm15, %v2054_v50, %v2071_v32  ;;  %v2065_v29 = vsel %vm2059_vm8, %v2062_v54, %v2064_v28  ;;  %vm1934_vm10 = vcmp.gt.s32.totalorder %v1933_v9, 0 }
 0x1de   : > { %v2073_v2 = vsel %vm2059_vm8, %v2070_v4, %v2072_v43  ;;  %v9802_v56 = vmul.u32.u64.low %v9762_v24, %v2069_v27  ;;  %v9803_v51 = vmul.u32.u64.high %v9762_v24, %v2069_v27, %v9802_v56  ;;  %vm7110_vm12 = vcmp.lt.s32.totalorder %v7109_v10, 0 }
 0x1df   : > { %v9807_v17 = vmul.u32.u64.low %v9762_v24, %v2073_v2  ;;  %v9808_v1 = vmul.u32.u64.high %v9762_v24, %v2073_v2, %v9807_v17  ;;  %v1773_v3 = vadd.s32 %v9715_v46, %v9720_v39  ;;  %v1788_v49 = vsel %vm7110_vm12, 0, %v7109_v10 }
 0x1e0   : > { %v1935_v50 = vsel %vm1934_vm10, %v1933_v9, 0  ;;  %v9812_v21 = vshll.u32 %v1931_v58, 8  ;;  %v1904_v44 = vxor.u32 2147483648, %v1903_v23  ;;  %v1789_v11 = vsub.s32 32, %v1788_v49 }
 0x1e1   : > { %v1793_v26 = vsub.s32 4294967266, %v1788_v49  ;;  %v1806_v42 = vsel %vm9781_vm5, 0, %v1804_v31  ;;  %v2081_v54 = vmul.u32 %v9762_v24, %v2065_v29  ;;  %v2084_v63 = vadd.s32 1, %v9803_v51 }
 0x1e2   : > { %v1937_v2 = vand.u32 31, %v1935_v50  ;;  %v1790_v28 = vshll.u32 %v9771_v20, %v1788_v49  ;;  %v1791_v39 = vshrl.u32 %v1773_v3, %v1789_v11  ;;  %vm2083_vm4 = vc.u32 %v9808_v1, %v9802_v56 }
 0x1e3   : > { %v1794_v46 = vadd.s32 127, %v1793_v26  ;;  %v9822_v9 = vand.u32 3, %v1806_v42  ;;  %v9824_v58 = vadd.s32 3, %v1806_v42  ;;  %v2085_v41 = vsel %vm2083_vm4, %v2084_v63, %v9803_v51  ;;  %v7956_v51 = vld [vmem:[%s11669_s3] sm:$0xff]  }
 0x1e4   : > { %v1938_v4 = vsub.s32 32, %v1937_v2  ;;  %v1905_v29 = vsel %vm1822_vm14, %v1904_v44, %v1903_v23  ;;  %v1792_v24 = vor.u32 %v1791_v39, %v1790_v28  ;;  %v2086_v10 = vadd.s32 %v2085_v41, %v2081_v54  ;;  %7620 = vmatprep.subr.bf16.mxu1 %v7956_v51 }
 0x1e5   : > { %11874 = vst [vmem:[#allocation53_spill] sm:$0xff] %v9822_v9  ;;  %v1795_v32 = vshll.u32 %v1794_v46, 23  ;;  %vm2028_vm8 = vcmp.lt.s32.totalorder %v9440_v5, 0  ;;  %v9830_v20 = vshrl.u32 %v1935_v50, 5  ;;  %v1940_v23 = vshll.u32 %v11817_v16, %v1937_v2  ;;  %7621 = vmatpush3.bf16.msra.mxu1 %v7956_v51 }
 0x1e6   : > { %v1941_v31 = vshrl.u32 %v11809_v47, %v1938_v4  ;;  %v1944_v27 = vshrl.u32 %v11810_v34, %v1938_v4  ;;  %v1947_v43 = vshrl.u32 %v11811_v33, %v1938_v4  ;;  %v2087_v3 = vadd.s32 536870912, %v2086_v10 }
 0x1e7   : > { %v1796_v17 = vor.u32 4788187, %v1795_v32  ;;  %v1943_v49 = vshll.u32 %v11809_v47, %v1937_v2  ;;  %v1799_v44 = vcvt.s32.f32 %v1792_v24  ;;  %v1946_v50 = vshll.u32 %v11810_v34, %v1937_v2 }
 0x1e8   : > { %v1949_v11 = vshll.u32 %v11811_v33, %v1937_v2  ;;  %v1950_v26 = vshrl.u32 %v11813_v15, %v1938_v4  ;;  %v11875_v54 = vand.u32 2147483647, %v9440_v5  ;;  %v2088_v28 = vshrl.u32 %v2087_v3, 30 }
 0x1e9   : > { %v1797_v42 = vand.u32 2147483647, %v1796_v17  ;;  %v1952_v39 = vshll.u32 %v11813_v15, %v1937_v2  ;;  %v1953_v46 = vshrl.u32 %v11814_v57, %v1938_v4  ;;  %v1942_v41 = vor.u32 %v1941_v31, %v1940_v23 }
 0x1ea   : > { %vm9845_vm14 = vcmp.le.f32.partialorder %v11875_v54, 0.7853982  ;;  %v1945_v24 = vor.u32 %v1944_v27, %v1943_v49  ;;  %v1948_v32 = vor.u32 %v1947_v43, %v1946_v50  ;;  %v1951_v48 = vor.u32 %v1950_v26, %v1949_v11 }
 0x1eb   : > { %v1800_v9 = vmul.f32 %v1799_v44, %v1797_v42  ;;  %v2089_v52 = vshll.u32 %v2088_v28, 30  ;;  %v2112_v18 = vsub.s32 4, %v2088_v28  ;;  %v1954_v17 = vor.u32 %v1953_v46, %v1952_v39 }
 0x1ec   : > { %v1908_v54 = vsel %vm9705_vm7, %v9425_v7, %v1905_v29  ;;  %v1939_v19 = vshrl.u32 %v11817_v16, %v1938_v4  ;;  %v2235_v3 = vand.u32 2139095040, %v9786_v35  ;;  %v11878_v2 = vand.u32 2147483647, %v9786_v35 }
 0x1ed   : > { %v9860_v31 = vsub.s32 %v2086_v10, %v2089_v52  ;;  %vm1955_vm15 = vcmp.lt.s32.totalorder %v9830_v20, 1  ;;  %vm1957_vm0 = vcmp.lt.s32.totalorder %v9830_v20, 3  ;;  %vm1958_vm12 = vcmp.lt.s32.totalorder %v9830_v20, 4 }
 0x1ee   : > { %v9858_v55 = vand.u32 8388607, %v11878_v2  ;;  %v1960_v27 = vsel %vm1958_vm12, %v1948_v32, 2102212464  ;;  %v1963_v40 = vsel %vm1955_vm15, %v1942_v41, %v1945_v24  ;;  %v1964_v29 = vsel %vm1958_vm12, %v1951_v48, 920167782 }
 0x1ef   : > { %v1968_v4 = vsel %vm1958_vm12, %v1954_v17, 1326507024  ;;  %v1801_v43 = vxor.u32 2147483648, %v1800_v9  ;;  %v2092_v51 = vsub.s32 0, %v9860_v31  ;;  %v2113_v23 = vsel %vm2028_vm8, %v2112_v18, %v2088_v28 }
 0x1f0   : > { %v1967_v52 = vsel %vm1955_vm15, %v1945_v24, %v1948_v32  ;;  %vm1956_vm7 = vcmp.lt.s32.totalorder %v9830_v20, 2  ;;  %v1965_v10 = vsel %vm1957_vm0, %v1948_v32, %v1964_v29  ;;  %v1969_v49 = vsel %vm1957_vm0, %v1951_v48, %v1968_v4  ;;  %v444_v32 = vpop.permute.xlu0 %443 }
 0x1f1   : > { %v2236_v44 = vshrl.u32 %v2235_v3, 23  ;;  %v7120_v50 = vmin.u32 %v2092_v51, %v9860_v31  ;;  %v1959_v11 = vsel %vm1955_vm15, %v1939_v19, %v1942_v41  ;;  %v1961_v18 = vsel %vm1957_vm0, %v1945_v24, %v1960_v27 }
 0x1f2   : > { %v1966_v26 = vsel %vm1956_vm7, %v1963_v40, %v1965_v10  ;;  %v2115_v42 = vsel %vm9845_vm14, 0, %v2113_v23  ;;  %v1970_v28 = vsel %vm1956_vm7, %v1967_v52, %v1969_v49  ;;  %v1802_v19 = vsel %vm1719_vm13, %v1801_v43, %v1800_v9  ;;  %v7957_v23 = vld [vmem:[%s11671_s5 + $0x40] sm:$0xff]  }
 0x1f3   : > { %v9889_v48 = vmul.u32.u64.low %v9812_v21, %v1966_v26  ;;  %v9890_v39 = vmul.u32.u64.high %v9812_v21, %v1966_v26, %v9889_v48  ;;  %v2094_v46 = vclz %v7120_v50  ;;  %8055 = vcosq.f32 %v1908_v54  ;;  %7678 = vmatprep.subr.bf16.mxu1 %v7957_v23 }
 0x1f4   : > { %v9896_v41 = vmul.u32.u64.low %v9812_v21, %v1970_v28  ;;  %v9897_v24 = vmul.u32.u64.high %v9812_v21, %v1970_v28, %v9896_v41  ;;  %v9900_v17 = vand.u32 3, %v9824_v58  ;;  %v1962_v3 = vsel %vm1956_vm7, %v1959_v11, %v1961_v18  ;;  %v454_v11 = vpop.permute.xlu0 %453 }
 0x1f5   : > { %v7127_v2 = vadd.s32 4294967169, %v2236_v44  ;;  %8057 = vsinq.f32 %v1908_v54  ;;  %v7121_v27 = vadd.s32 4294967294, %v2094_v46  ;;  %v4194_v40 = vadd.s32 3, %v2115_v42 }
 0x1f6   : > { %11879 = vst [vmem:[#allocation54_spill] sm:$0xff] %v9900_v17  ;;  %v2240_v29 = vor.u32 8388608, %v9858_v55  ;;  %v1805_v9 = vsel %vm9781_vm5, %v9434_v14, %v1802_v19  ;;  %v1981_v4 = vadd.s32 1, %v9890_v39  ;;  %v9910_v51 = vmul.f32 %v8630_v60, %v444_v32 }
 0x1f7   : > { %v2242_v43 = vadd.s32 1, %v7127_v2  ;;  %v2082_v58 = vadd.s32 %v9802_v56, %v9808_v1  ;;  %vm7122_vm13 = vcmp.lt.s32.totalorder %v7121_v27, 0  ;;  %v1978_v20 = vmul.u32 %v9812_v21, %v1962_v3  ;;  %v459_v1 = vpop.permute.xlu1 %458 }
 0x1f8   : > { %vm1980_vm10 = vc.u32 %v9897_v24, %v9889_v48  ;;  %v2097_v55 = vsel %vm7122_vm13, 0, %v7121_v27  ;;  %v9917_v54 = vand.u32 3, %v2115_v42  ;;  %8059 = vcosq.f32 %v1805_v9 }
 0x1f9   : > { %v1982_v30 = vsel %vm1980_vm10, %v1981_v4, %v9890_v39  ;;  %vm2243_vm5 = vcmp.gt.s32.totalorder %v2242_v43, 0  ;;  %v2098_v52 = vsub.s32 32, %v2097_v55  ;;  %v2102_v10 = vsub.s32 4294967266, %v2097_v55 }
 0x1fa   : > { %11880 = vst [vmem:[#allocation55_spill] sm:$0xff] %v9917_v54  ;;  %v1983_v56 = vadd.s32 %v1982_v30, %v1978_v20  ;;  %v9923_v49 = vand.u32 3, %v4194_v40  ;;  %v2244_v21 = vsel %vm2243_vm5, %v2242_v43, 0  ;;  %v11755_v44 = vand.u32 2147483647, %v9910_v51 }
 0x1fb   : > { %v2132_v50 = vand.u32 2139095040, %v9910_v51  ;;  %v2099_v18 = vshll.u32 %v9860_v31, %v2097_v55  ;;  %v2100_v26 = vshrl.u32 %v2082_v58, %v2098_v52  ;;  %v2103_v42 = vadd.s32 127, %v2102_v10 }
 0x1fc   : > { %11881 = vst [vmem:[#allocation56_spill] sm:$0xff] %v9923_v49  ;;  %v1984_v28 = vadd.s32 536870912, %v1983_v56  ;;  %8061 = vsinq.f32 %v1805_v9  ;;  %vm1925_vm4 = vcmp.lt.s32.totalorder %v9443_v37, 0  ;;  %v2246_v39 = vand.u32 31, %v2244_v21 }
 0x1fd   : > { %v9929_v19 = vshll.u32 %v2240_v29, 8  ;;  %v9932_v46 = vmul.f32 %v8630_v60, %v459_v1  ;;  %v2101_v41 = vor.u32 %v2100_v26, %v2099_v18  ;;  %v2104_v32 = vshll.u32 %v2103_v42, 23  ;;  %v9937_v27 = vpop.eup %8055 }
 0x1fe   : > { %v1985_v3 = vshrl.u32 %v1984_v28, 30  ;;  %v9935_v2 = vmul.f32 %v8630_v60, %v454_v11  ;;  %11882 = vst [vmem:[#allocation57_spill] sm:$0xff] %v9937_v27  ;;  %v2247_v31 = vsub.s32 32, %v2246_v39  ;;  %v2133_v40 = vshrl.u32 %v2132_v50, 23 }
 0x1ff   : > { %v9941_v9 = vand.u32 8388607, %v11755_v44  ;;  %v9944_v4 = vpop.eup %8057  ;;  %v2105_v43 = vor.u32 4788187, %v2104_v32  ;;  %v11884_v58 = vand.u32 2147483647, %v9443_v37  ;;  %v2249_v55 = vshll.u32 %v11817_v16, %v2246_v39 }
 0x200   : > { %11883 = vst [vmem:[#allocation58_spill] sm:$0xff] %v9944_v4  ;;  %v1986_v60 = vshll.u32 %v1985_v3, 30  ;;  %v2252_v30 = vshll.u32 %v11809_v47, %v2246_v39  ;;  %v2250_v23 = vshrl.u32 %v11809_v47, %v2247_v31  ;;  %v2253_v52 = vshrl.u32 %v11810_v34, %v2247_v31 }
 0x201   : > { %vm9948_vm15 = vcmp.le.f32.partialorder %v11884_v58, 0.7853982  ;;  %v2255_v10 = vshll.u32 %v11810_v34, %v2246_v39  ;;  %v2256_v1 = vshrl.u32 %v11811_v33, %v2247_v31  ;;  %v2106_v50 = vand.u32 2147483647, %v2105_v43 }
 0x202   : > { %v2108_v11 = vcvt.s32.f32 %v2101_v41  ;;  %v9958_v18 = vsub.s32 %v1983_v56, %v1986_v60  ;;  %v2009_v26 = vsub.s32 4, %v1985_v3  ;;  %v1979_v42 = vadd.s32 %v9889_v48, %v9897_v24  ;;  %v9962_v44 = vpop.eup %8059 }
 0x203   : > { %v2245_v28 = vshrl.u32 %v2244_v21, 5  ;;  %v2251_v32 = vor.u32 %v2250_v23, %v2249_v55  ;;  %v7123_v58 = vadd.s32 4294967169, %v2133_v40  ;;  %v2254_v54 = vor.u32 %v2253_v52, %v2252_v30 }
 0x204   : > { %v2109_v29 = vmul.f32 %v2108_v11, %v2106_v50  ;;  %v1989_v49 = vsub.s32 0, %v9958_v18  ;;  %v2257_v17 = vor.u32 %v2256_v1, %v2255_v10  ;;  %v2258_v27 = vshll.u32 %v11811_v33, %v2246_v39 }
 0x205   : > { %v2259_v41 = vshrl.u32 %v11813_v15, %v2247_v31  ;;  %v2261_v56 = vshll.u32 %v11813_v15, %v2246_v39  ;;  %v2262_v43 = vshrl.u32 %v11814_v57, %v2247_v31  ;;  %v2010_v24 = vsel %vm1925_vm4, %v2009_v26, %v1985_v3 }
 0x206   : > { %v2110_v60 = vxor.u32 2147483648, %v2109_v29  ;;  %v7116_v48 = vmin.u32 %v1989_v49, %v9958_v18  ;;  %v2137_v21 = vor.u32 8388608, %v9941_v9  ;;  %v9973_v40 = vpop.eup %8061  ;;  %vm2264_vm0 = vcmp.lt.s32.totalorder %v2245_v28, 1 }
 0x207   : > { %v2260_v55 = vor.u32 %v2259_v41, %v2258_v27  ;;  %v2263_v30 = vor.u32 %v2262_v43, %v2261_v56  ;;  %vm2267_vm12 = vcmp.lt.s32.totalorder %v2245_v28, 4  ;;  %v2248_v52 = vshrl.u32 %v11817_v16, %v2247_v31 }
 0x208   : > { %v1991_v23 = vclz %v7116_v48  ;;  %v2269_v39 = vsel %vm2267_vm12, %v2257_v17, 2102212464  ;;  %v2272_v10 = vsel %vm2264_vm0, %v2251_v32, %v2254_v54  ;;  %v2012_v49 = vsel %vm9948_vm15, 0, %v2010_v24 }
 0x209   : > { %vm2265_vm7 = vcmp.lt.s32.totalorder %v2245_v28, 2  ;;  %vm2266_vm13 = vcmp.lt.s32.totalorder %v2245_v28, 3  ;;  %v2273_v3 = vsel %vm2267_vm12, %v2260_v55, 920167782  ;;  %v2111_v9 = vsel %vm2028_vm8, %v2110_v60, %v2109_v29 }
 0x20a   : > { %v7117_v27 = vadd.s32 4294967294, %v1991_v23  ;;  %v2274_v1 = vsel %vm2266_vm13, %v2257_v17, %v2273_v3  ;;  %v2276_v50 = vsel %vm2264_vm0, %v2254_v54, %v2257_v17  ;;  %v2268_v11 = vsel %vm2264_vm0, %v2248_v52, %v2251_v32 }
 0x20b   : > { %v2270_v26 = vsel %vm2266_vm13, %v2254_v54, %v2269_v39  ;;  %v2275_v31 = vsel %vm2265_vm7, %v2272_v10, %v2274_v1  ;;  %v2277_v41 = vsel %vm2267_vm12, %v2263_v30, 1326507024  ;;  %v2114_v29 = vsel %vm9845_vm14, %v9440_v5, %v2111_v9 }
 0x20c   : > { %vm7118_vm10 = vcmp.lt.s32.totalorder %v7117_v27, 0  ;;  %v2278_v56 = vsel %vm2266_vm13, %v2260_v55, %v2277_v41  ;;  %v9985_v43 = vmul.u32.u64.low %v9929_v19, %v2275_v31  ;;  %v9986_v48 = vmul.u32.u64.high %v9929_v19, %v2275_v31, %v9985_v43 }
 0x20d   : > { %v1994_v60 = vsel %vm7118_vm10, 0, %v7117_v27  ;;  %v2279_v17 = vsel %vm2265_vm7, %v2276_v50, %v2278_v56  ;;  %v2139_v32 = vadd.s32 1, %v7123_v58  ;;  %v2271_v30 = vsel %vm2265_vm7, %v2268_v11, %v2270_v26 }
 0x20e   : > { %v1995_v54 = vsub.s32 32, %v1994_v60  ;;  %v1996_v24 = vshll.u32 %v9958_v18, %v1994_v60  ;;  %v1999_v23 = vsub.s32 4294967266, %v1994_v60  ;;  %v2441_v39 = vand.u32 2139095040, %v9932_v46 }
 0x20f   : > { %v9996_v55 = vmul.u32.u64.low %v9929_v19, %v2279_v17  ;;  %v9997_v52 = vmul.u32.u64.high %v9929_v19, %v2279_v17, %v9996_v55  ;;  %vm2140_vm8 = vcmp.gt.s32.totalorder %v2139_v32, 0  ;;  %v2290_v3 = vadd.s32 1, %v9986_v48 }
 0x210   : > { %v1997_v10 = vshrl.u32 %v1979_v42, %v1995_v54  ;;  %v2000_v63 = vadd.s32 127, %v1999_v23  ;;  %v2141_v9 = vsel %vm2140_vm8, %v2139_v32, 0  ;;  %8063 = vcosq.f32 %v2114_v29 }
 0x211   : > { %v10001_v58 = vand.u32 3, %v2012_v49  ;;  %v2143_v27 = vand.u32 31, %v2141_v9  ;;  %8065 = vsinq.f32 %v2114_v29  ;;  %v10004_v50 = vadd.s32 3, %v2012_v49 }
 0x212   : > { %v1998_v28 = vor.u32 %v1997_v10, %v1996_v24  ;;  %v2001_v1 = vshll.u32 %v2000_v63, 23  ;;  %v2287_v11 = vmul.u32 %v9929_v19, %v2271_v30  ;;  %vm2289_vm14 = vc.u32 %v9997_v52, %v9985_v43 }
 0x213   : > { %11887 = vst [vmem:[#allocation59_spill] sm:$0xff] %v10001_v58  ;;  %v2144_v42 = vsub.s32 32, %v2143_v27  ;;  %v10009_v26 = vshll.u32 %v2137_v21, 8  ;;  %vm2234_vm5 = vcmp.lt.s32.totalorder %v9786_v35, 0  ;;  %v2291_v41 = vsel %vm2289_vm14, %v2290_v3, %v9986_v48 }
 0x214   : > { %v2002_v31 = vor.u32 4788187, %v2001_v1  ;;  %v2142_v56 = vshrl.u32 %v2141_v9, 5  ;;  %v2442_v60 = vshrl.u32 %v2441_v39, 23  ;;  %v11888_v29 = vand.u32 2147483647, %v9786_v35 }
 0x215   : > { %v2292_v19 = vadd.s32 %v2291_v41, %v2287_v11  ;;  %v2146_v17 = vshll.u32 %v11817_v16, %v2143_v27  ;;  %v2147_v32 = vshrl.u32 %v11809_v47, %v2144_v42  ;;  %v2150_v21 = vshrl.u32 %v11810_v34, %v2144_v42 }
 0x216   : > { %vm10015_vm0 = vcmp.le.f32.partialorder %v11888_v29, 0.7853982  ;;  %v2003_v54 = vand.u32 2147483647, %v2002_v31  ;;  %v2005_v24 = vcvt.s32.f32 %v1998_v28  ;;  %v2152_v23 = vshll.u32 %v11810_v34, %v2143_v27 }
 0x217   : > { %v2153_v48 = vshrl.u32 %v11811_v33, %v2144_v42  ;;  %v2293_v30 = vadd.s32 536870912, %v2292_v19  ;;  %v2149_v55 = vshll.u32 %v11809_v47, %v2143_v27  ;;  %v2155_v39 = vshll.u32 %v11811_v33, %v2143_v27 }
 0x218   : > { %v2156_v10 = vshrl.u32 %v11813_v15, %v2144_v42  ;;  %v2006_v63 = vmul.f32 %v2005_v24, %v2003_v54  ;;  %v2148_v3 = vor.u32 %v2147_v32, %v2146_v17  ;;  %v2159_v1 = vshrl.u32 %v11814_v57, %v2144_v42 }
 0x219   : > { %v2154_v9 = vor.u32 %v2153_v48, %v2152_v23  ;;  %v2294_v11 = vshrl.u32 %v2293_v30, 30  ;;  %v2151_v41 = vor.u32 %v2150_v21, %v2149_v55  ;;  %v2158_v28 = vshll.u32 %v11813_v15, %v2143_v27 }
 0x21a   : > { %v2157_v31 = vor.u32 %v2156_v10, %v2155_v39  ;;  %v2007_v29 = vxor.u32 2147483648, %v2006_v63  ;;  %v2145_v18 = vshrl.u32 %v11817_v16, %v2144_v42  ;;  %vm2161_vm12 = vcmp.lt.s32.totalorder %v2142_v56, 1  ;;  %v10030_v5 = vpop.eup %8063 }
 0x21b   : > { %vm2164_vm7 = vcmp.lt.s32.totalorder %v2142_v56, 4  ;;  %11891 = vst [vmem:[#allocation60_spill] sm:$0xff] %v10030_v5  ;;  %v2295_v58 = vshll.u32 %v2294_v11, 30  ;;  %v2318_v4 = vsub.s32 4, %v2294_v11  ;;  %v2160_v7 = vor.u32 %v2159_v1, %v2158_v28  ;;  %v10033_v32 = vpop.eup %8065 }
 0x21c   : > { %v2166_v17 = vsel %vm2164_vm7, %v2154_v9, 2102212464  ;;  %11892 = vst [vmem:[#allocation61_spill] sm:$0xff] %v10033_v32  ;;  %v2008_v21 = vsel %vm1925_vm4, %v2007_v29, %v2006_v63  ;;  %vm2163_vm13 = vcmp.lt.s32.totalorder %v2142_v56, 3  ;;  %v2165_v27 = vsel %vm2161_vm12, %v2145_v18, %v2148_v3 }
 0x21d   : > { %v2170_v54 = vsel %vm2164_vm7, %v2157_v31, 920167782  ;;  %v10039_v42 = vsub.s32 %v2292_v19, %v2295_v58  ;;  %v2319_v24 = vsel %vm2234_vm5, %v2318_v4, %v2294_v11  ;;  %v2167_v23 = vsel %vm2163_vm13, %v2151_v41, %v2166_v17 }
 0x21e   : > { %v2169_v48 = vsel %vm2161_vm12, %v2148_v3, %v2151_v41  ;;  %v2011_v30 = vsel %vm9948_vm15, %v9443_v37, %v2008_v21  ;;  %v2321_v55 = vsel %vm10015_vm0, 0, %v2319_v24  ;;  %v2171_v18 = vsel %vm2163_vm13, %v2154_v9, %v2170_v54 }
 0x21f   : > { %v11893_v39 = vand.u32 2147483647, %v9932_v46  ;;  %v2298_v19 = vsub.s32 0, %v10039_v42  ;;  %vm2162_vm4 = vcmp.lt.s32.totalorder %v2142_v56, 2  ;;  %v2173_v4 = vsel %vm2161_vm12, %v2151_v41, %v2154_v9 }
 0x220   : > { %v11766_v10 = vand.u32 2147483647, %v9935_v2  ;;  %v2168_v63 = vsel %vm2162_vm4, %v2165_v27, %v2167_v23  ;;  %v2172_v3 = vsel %vm2162_vm4, %v2169_v48, %v2171_v18  ;;  %v2174_v20 = vsel %vm2164_vm7, %v2160_v7, 1326507024 }
 0x221   : > { %v2445_v58 = vand.u32 8388607, %v11893_v39  ;;  %v7135_v1 = vadd.s32 4294967169, %v2442_v60  ;;  %8067 = vcosq.f32 %v2011_v30  ;;  %v7128_v11 = vmin.u32 %v2298_v19, %v10039_v42 }
 0x222   : > { %v4402_v28 = vadd.s32 3, %v2321_v55  ;;  %v2175_v29 = vsel %vm2163_vm13, %v2157_v31, %v2174_v20  ;;  %v10060_v21 = vmul.u32.u64.low %v10009_v26, %v2172_v3  ;;  %v10061_v54 = vmul.u32.u64.high %v10009_v26, %v2172_v3, %v10060_v21 }
 0x223   : > { %v2176_v17 = vsel %vm2162_vm4, %v2173_v4, %v2175_v29  ;;  %v2448_v9 = vadd.s32 1, %v7135_v1  ;;  %v2300_v41 = vclz %v7128_v11  ;;  %v2446_v7 = vor.u32 8388608, %v2445_v58 }
 0x224   : > { %v10065_v27 = vmul.u32.u64.low %v10009_v26, %v2176_v17  ;;  %v10066_v24 = vmul.u32.u64.high %v10009_v26, %v2176_v17, %v10065_v27  ;;  %8069 = vsinq.f32 %v2011_v30  ;;  %v10069_v60 = vand.u32 3, %v10004_v50 }
 0x225   : > { %v2288_v56 = vadd.s32 %v9985_v43, %v9997_v52  ;;  %vm2449_vm15 = vcmp.gt.s32.totalorder %v2448_v9, 0  ;;  %v7129_v31 = vadd.s32 4294967294, %v2300_v41  ;;  %v10073_v23 = vand.u32 3, %v2321_v55 }
 0x226   : > { %11894 = vst [vmem:[#allocation62_spill] sm:$0xff] %v10069_v60  ;;  %v2184_v48 = vmul.u32 %v10009_v26, %v2168_v63  ;;  %v2450_v18 = vsel %vm2449_vm15, %v2448_v9, 0  ;;  %v2187_v39 = vadd.s32 1, %v10061_v54  ;;  %v2338_v4 = vand.u32 2139095040, %v9935_v2 }
 0x227   : > { %11895 = vst [vmem:[#allocation63_spill] sm:$0xff] %v10073_v23  ;;  %v2452_v19 = vand.u32 31, %v2450_v18  ;;  %v10080_v30 = vand.u32 8388607, %v11766_v10  ;;  %vm7130_vm10 = vcmp.lt.s32.totalorder %v7129_v31, 0  ;;  %v10082_v50 = vand.u32 3, %v4402_v28 }
 0x228   : > { %vm2186_vm8 = vc.u32 %v10066_v24, %v10060_v21  ;;  %v10086_v43 = vshll.u32 %v2446_v7, 8  ;;  %v2303_v52 = vsel %vm7130_vm10, 0, %v7129_v31  ;;  %vm2131_vm14 = vcmp.lt.s32.totalorder %v9910_v51, 0 }
 0x229   : > { %11896 = vst [vmem:[#allocation64_spill] sm:$0xff] %v10082_v50  ;;  %v2188_v26 = vsel %vm2186_vm8, %v2187_v39, %v10061_v54  ;;  %v2453_v55 = vsub.s32 32, %v2452_v19  ;;  %v11897_v58 = vsub.s32 4, %v8748_v45  ;;  %v2304_v3 = vsub.s32 32, %v2303_v52 }
 0x22a   : > { %v2308_v20 = vsub.s32 4294967266, %v2303_v52  ;;  %v2189_v1 = vadd.s32 %v2188_v26, %v2184_v48  ;;  %v10097_v11 = vshrl.u32 %v2450_v18, 5  ;;  %v2305_v28 = vshll.u32 %v10039_v42, %v2303_v52 }
 0x22b   : > { %v10095_v63 = vsel %vm483_vm6, %v11897_v58, %v8748_v45  ;;  %v11898_v29 = vand.u32 2147483647, %v9910_v51  ;;  %v2455_v54 = vshll.u32 %v11817_v16, %v2452_v19  ;;  %v2339_v9 = vshrl.u32 %v2338_v4, 23  ;;  %v10108_v45 = vpop.eup %8067 }
 0x22c   : > { %11901 = vst [vmem:[#allocation65_spill] sm:$0xff] %v10108_v45  ;;  %v2306_v27 = vshrl.u32 %v2288_v56, %v2304_v3  ;;  %v2309_v7 = vadd.s32 127, %v2308_v20  ;;  %v2190_v31 = vadd.s32 536870912, %v2189_v1  ;;  %v2456_v48 = vshrl.u32 %v11809_v47, %v2453_v55 }
 0x22d   : > { %vm10102_vm12 = vcmp.le.f32.partialorder %v11898_v29, 0.7853982  ;;  %v2458_v42 = vshll.u32 %v11809_v47, %v2452_v19  ;;  %v2459_v18 = vshrl.u32 %v11810_v34, %v2453_v55  ;;  %v2461_v39 = vshll.u32 %v11810_v34, %v2452_v19 }
 0x22e   : > { %v2462_v52 = vshrl.u32 %v11811_v33, %v2453_v55  ;;  %v2307_v26 = vor.u32 %v2306_v27, %v2305_v28  ;;  %v2310_v58 = vshll.u32 %v2309_v7, 23  ;;  %v2191_v4 = vshrl.u32 %v2190_v31, 30  ;;  %v10116_v10 = vpop.eup %8069 }
 0x22f   : > { %v2465_v29 = vshrl.u32 %v11813_v15, %v2453_v55  ;;  %11902 = vst [vmem:[#allocation66_spill] sm:$0xff] %v10116_v10  ;;  %v2464_v3 = vshll.u32 %v11811_v33, %v2452_v19  ;;  %v2467_v20 = vshll.u32 %v11813_v15, %v2452_v19  ;;  %v2468_v41 = vshrl.u32 %v11814_v57, %v2453_v55 }
 0x230   : > { %v2463_v56 = vor.u32 %v2462_v52, %v2461_v39  ;;  %v2311_v50 = vor.u32 4788187, %v2310_v58  ;;  %v2192_v23 = vshll.u32 %v2191_v4, 30  ;;  %v2215_v60 = vsub.s32 4, %v2191_v4 }
 0x231   : > { %v2457_v5 = vor.u32 %v2456_v48, %v2455_v54  ;;  %v2314_v32 = vcvt.s32.f32 %v2307_v26  ;;  %v2460_v45 = vor.u32 %v2459_v18, %v2458_v42  ;;  %v2466_v28 = vor.u32 %v2465_v29, %v2464_v3  ;;  %v10134_v3 = vpop.f32.mrb[0].mxu0 }
 0x232   : > { %v2469_v27 = vor.u32 %v2468_v41, %v2467_v20  ;;  %v2312_v7 = vand.u32 2147483647, %v2311_v50  ;;  %v10121_v31 = vsub.s32 %v2189_v1, %v2192_v23  ;;  %v2216_v39 = vsel %vm2131_vm14, %v2215_v60, %v2191_v4  ;;  %11903 = vst [vmem:[#allocation67_spill] sm:$0xff] %v10134_v3  ;;  %v10142_v10 = vpop.f32.mrb[1].mxu0 }
 0x233   : > { %vm2473_vm6 = vcmp.lt.s32.totalorder %v10097_v11, 4  ;;  %v2454_v19 = vshrl.u32 %v11817_v16, %v2453_v55  ;;  %vm2470_vm7 = vcmp.lt.s32.totalorder %v10097_v11, 1  ;;  %vm2471_vm13 = vcmp.lt.s32.totalorder %v10097_v11, 2 }
 0x234   : > { %v2475_v52 = vsel %vm2473_vm6, %v2463_v56, 2102212464  ;;  %v2315_v54 = vmul.f32 %v2314_v32, %v2312_v7  ;;  %v2195_v48 = vsub.s32 0, %v10121_v31  ;;  %v2218_v50 = vsel %vm10102_vm12, 0, %v2216_v39 }
 0x235   : > { %vm2472_vm4 = vcmp.lt.s32.totalorder %v10097_v11, 3  ;;  %v2478_v23 = vsel %vm2470_vm7, %v2457_v5, %v2460_v45  ;;  %v2479_v1 = vsel %vm2473_vm6, %v2466_v28, 920167782  ;;  %v2482_v60 = vsel %vm2470_vm7, %v2460_v45, %v2463_v56 }
 0x236   : > { %v2483_v41 = vsel %vm2473_vm6, %v2469_v27, 1326507024  ;;  %v2316_v42 = vxor.u32 2147483648, %v2315_v54  ;;  %v7124_v55 = vmin.u32 %v2195_v48, %v10121_v31  ;;  %v2474_v18 = vsel %vm2470_vm7, %v2454_v19, %v2457_v5 }
 0x237   : > { %v2476_v26 = vsel %vm2472_vm4, %v2460_v45, %v2475_v52  ;;  %v4298_v58 = vadd.s32 3, %v2218_v50  ;;  %v2480_v4 = vsel %vm2472_vm4, %v2463_v56, %v2479_v1  ;;  %v2484_v29 = vsel %vm2472_vm4, %v2466_v28, %v2483_v41  ;;  %v10150_v28 = vpop.f32.mrb[2].mxu0 }
 0x238   : > { %v7131_v32 = vadd.s32 4294967169, %v2339_v9  ;;  %v2317_v20 = vsel %vm2234_vm5, %v2316_v42, %v2315_v54  ;;  %v2197_v7 = vclz %v7124_v55  ;;  %v2481_v39 = vsel %vm2471_vm13, %v2478_v23, %v2480_v4  ;;  %11904 = vst [vmem:[#allocation68_spill] sm:$0xff] %v10150_v28  ;;  %v10162_v11 = vpop.f32.mrb[3].mxu0 }
 0x239   : > { %v2485_v27 = vsel %vm2471_vm13, %v2482_v60, %v2484_v29  ;;  %v2477_v5 = vsel %vm2471_vm13, %v2474_v18, %v2476_v26  ;;  %v10155_v19 = vsel %vm10015_vm0, %v9786_v35, %v2317_v20  ;;  %v2185_v23 = vadd.s32 %v10060_v21, %v10066_v24 }
 0x23a   : > { %v10147_v45 = vmul.u32.u64.low %v10086_v43, %v2485_v27  ;;  %v10148_v9 = vmul.u32.u64.high %v10086_v43, %v2485_v27, %v10147_v45  ;;  %v2345_v56 = vadd.s32 1, %v7131_v32  ;;  %v7125_v52 = vadd.s32 4294967294, %v2197_v7  ;;  %v10194_v27 = vpop.f32.mrb[4].mxu0 }
 0x23b   : > { %v10158_v54 = vmul.u32.u64.low %v10086_v43, %v2481_v39  ;;  %v10159_v48 = vmul.u32.u64.high %v10086_v43, %v2481_v39, %v10158_v54  ;;  %v10166_v1 = vand.u32 3, %v2218_v50  ;;  %v10169_v49 = vand.u32 3, %v4298_v58  ;;  %11906 = vst [vmem:[#allocation69_spill] sm:$0xff] %v10194_v27  ;;  %v11934_v45 = vld [vmem:[#allocation21_spill] sm:$0xff] }
 0x23c   : > { %vm2346_vm5 = vcmp.gt.s32.totalorder %v2345_v56, 0  ;;  %vm7126_vm15 = vcmp.lt.s32.totalorder %v7125_v52, 0  ;;  %v2493_v41 = vmul.u32 %v10086_v43, %v2477_v5  ;;  %8071 = vcosq.f32 %v10155_v19 }
 0x23d   : > { %v2347_v42 = vsel %vm2346_vm5, %v2345_v56, 0  ;;  %v2200_v55 = vsel %vm7126_vm15, 0, %v7125_v52  ;;  %vm2495_vm0 = vc.u32 %v10148_v9, %v10158_v54  ;;  %v2496_v50 = vadd.s32 1, %v10159_v48 }
 0x23e   : > { %v10175_v18 = vshrl.u32 %v2347_v42, 5  ;;  %v2201_v21 = vsub.s32 32, %v2200_v55  ;;  %v2205_v24 = vsub.s32 4294967266, %v2200_v55  ;;  %v11905_v26 = vor.u32 8388608, %v10080_v30 }
 0x23f   : > { %v2202_v58 = vshll.u32 %v10121_v31, %v2200_v55  ;;  %v2349_v43 = vand.u32 31, %v2347_v42  ;;  %v10187_v29 = vsel %vm8902_vm11, 0, %v10095_v63  ;;  %vm2440_vm8 = vcmp.lt.s32.totalorder %v9932_v46, 0 }
 0x240   : > { %v10180_v4 = vshll.u32 %v11905_v26, 8  ;;  %vm2367_vm10 = vcmp.lt.s32.totalorder %v10175_v18, 1  ;;  %v2203_v32 = vshrl.u32 %v2185_v23, %v2201_v21  ;;  %v2206_v20 = vadd.s32 127, %v2205_v24 }
 0x241   : > { %v2497_v7 = vsel %vm2495_vm0, %v2496_v50, %v10159_v48  ;;  %vm2369_vm6 = vcmp.lt.s32.totalorder %v10175_v18, 3  ;;  %v2350_v39 = vsub.s32 32, %v2349_v43  ;;  %v2352_v31 = vshll.u32 %v11817_v16, %v2349_v43  ;;  %v10204_v48 = vpop.f32.mrb[5].mxu0 }
 0x242   : > { %v2498_v30 = vadd.s32 %v2497_v7, %v2493_v41  ;;  %vm2370_vm7 = vcmp.lt.s32.totalorder %v10175_v18, 4  ;;  %v2204_v5 = vor.u32 %v2203_v32, %v2202_v58  ;;  %v2207_v61 = vshll.u32 %v2206_v20, 23  ;;  %v10209_v21 = vpop.f32.mrb[6].mxu0 }
 0x243   : > { %v11907_v63 = vand.u32 2147483647, %v9932_v46  ;;  %v2355_v56 = vshll.u32 %v11809_v47, %v2349_v43  ;;  %v2358_v52 = vshll.u32 %v11810_v34, %v2349_v43  ;;  %v2353_v41 = vshrl.u32 %v11809_v47, %v2350_v39  ;;  %11910 = vst [vmem:[#allocation70_spill] sm:$0xff] %v10209_v21  ;;  %v10213_v32 = vpop.f32.mrb[7].mxu0 }
 0x244   : > { %v2499_v23 = vadd.s32 536870912, %v2498_v30  ;;  %v2356_v42 = vshrl.u32 %v11810_v34, %v2350_v39  ;;  %v2361_v55 = vshll.u32 %v11811_v33, %v2349_v43  ;;  %v2208_v24 = vor.u32 4788187, %v2207_v61  ;;  %11911 = vst [vmem:[#allocation71_spill] sm:$0xff] %v10213_v32 }
 0x245   : > { %vm10198_vm11 = vcmp.le.f32.partialorder %v11907_v63, 0.7853982  ;;  %v2211_v50 = vcvt.s32.f32 %v2204_v5  ;;  %v2359_v26 = vshrl.u32 %v11811_v33, %v2350_v39  ;;  %v2362_v58 = vshrl.u32 %v11813_v15, %v2350_v39 }
 0x246   : > { %v2500_v20 = vshrl.u32 %v2499_v23, 30  ;;  %v2354_v7 = vor.u32 %v2353_v41, %v2352_v31  ;;  %v2357_v63 = vor.u32 %v2356_v42, %v2355_v56  ;;  %v2364_v60 = vshll.u32 %v11813_v15, %v2349_v43  ;;  %v10217_v3 = vpop.eup %8071 }
 0x247   : > { %v2209_v47 = vand.u32 2147483647, %v2208_v24  ;;  %v2360_v27 = vor.u32 %v2359_v26, %v2358_v52  ;;  %v2363_v34 = vor.u32 %v2362_v58, %v2361_v55  ;;  %v2365_v28 = vshrl.u32 %v11814_v57, %v2350_v39 }
 0x248   : > { %v2501_v61 = vshll.u32 %v2500_v20, 30  ;;  %v2524_v5 = vsub.s32 4, %v2500_v20  ;;  %v2351_v33 = vshrl.u32 %v11817_v16, %v2350_v39  ;;  %v2375_v21 = vsel %vm2367_vm10, %v2354_v7, %v2357_v63  ;;  %v10233_v39 = vpop.f32.mrb[8].mxu0 }
 0x249   : > { %v2212_v32 = vmul.f32 %v2211_v50, %v2209_v47  ;;  %v2366_v23 = vor.u32 %v2365_v28, %v2364_v60  ;;  %v2372_v31 = vsel %vm2370_vm7, %v2360_v27, 2102212464  ;;  %v2376_v15 = vsel %vm2370_vm7, %v2363_v34, 920167782  ;;  %v10240_v52 = vpop.f32.mrb[9].mxu0 }
 0x24a   : > { %v10226_v43 = vsub.s32 %v2498_v30, %v2501_v61  ;;  %v2525_v57 = vsel %vm2440_vm8, %v2524_v5, %v2500_v20  ;;  %vm2368_vm13 = vcmp.lt.s32.totalorder %v10175_v18, 2  ;;  %v2377_v16 = vsel %vm2369_vm6, %v2360_v27, %v2376_v15  ;;  %v10249_v50 = vpop.f32.mrb[10].mxu0 }
 0x24b   : > { %v2213_v56 = vxor.u32 2147483648, %v2212_v32  ;;  %v2371_v28 = vsel %vm2367_vm10, %v2351_v33, %v2354_v7  ;;  %v2378_v60 = vsel %vm2368_vm13, %v2375_v21, %v2377_v16  ;;  %v574_v30 = vand.u32 3, %v10187_v29  ;;  %v10259_v7 = vpop.f32.mrb[11].mxu0 }
 0x24c   : > { %v2504_v41 = vsub.s32 0, %v10226_v43  ;;  %v2527_v42 = vsel %vm10198_vm11, 0, %v2525_v57  ;;  %v2373_v55 = vsel %vm2369_vm6, %v2357_v63, %v2372_v31  ;;  %v2379_v24 = vsel %vm2367_vm10, %v2357_v63, %v2360_v27 }
 0x24d   : > { %v2214_v21 = vsel %vm2131_vm14, %v2213_v56, %v2212_v32  ;;  %v2380_v26 = vsel %vm2370_vm7, %v2366_v23, 1326507024  ;;  %v10256_v58 = vmul.u32.u64.low %v10180_v4, %v2378_v60  ;;  %v10257_v20 = vmul.u32.u64.high %v10180_v4, %v2378_v60, %v10256_v58  ;;  %v10292_v56 = vpop.f32.mrb[12].mxu0 }
 0x24e   : > { %8073 = vsinq.f32 %v10155_v19  ;;  %v7136_v47 = vmin.u32 %v2504_v41, %v10226_v43  ;;  %v2381_v27 = vsel %vm2369_vm6, %v2363_v34, %v2380_v26  ;;  %v11774_v63 = vxor.u32 2147483648, %v8992_v38  ;;  %11913 = vst [vmem:[#allocation72_spill] sm:$0xff] %v10292_v56  ;;  %v10298_v41 = vpop.f32.mrb[13].mxu0 }
 0x24f   : > { %v2494_v32 = vadd.s32 %v10158_v54, %v10148_v9  ;;  %v10268_v61 = vand.u32 3, %v2527_v42  ;;  %v2374_v5 = vsel %vm2368_vm13, %v2371_v28, %v2373_v55  ;;  %v2382_v33 = vsel %vm2368_vm13, %v2379_v24, %v2381_v27  ;;  %v10301_v55 = vpop.f32.mrb[14].mxu0 }
 0x250   : > { %v2217_v19 = vsel %vm10102_vm12, %v9910_v51, %v2214_v21  ;;  %v2506_v23 = vclz %v7136_v47  ;;  %v10278_v34 = vmul.u32.u64.low %v10180_v4, %v2382_v33  ;;  %v10279_v31 = vmul.u32.u64.high %v10180_v4, %v2382_v33, %v10278_v34  ;;  %11914 = vst [vmem:[#allocation73_spill] sm:$0xff] %v10301_v55 }
 0x251   : > { %vm573_vm14 = vweird.f32 %v8636_v0  ;;  %v2393_v9 = vadd.s32 1, %v10257_v20  ;;  %vm576_vm4 = vcmp.eq.s32.totalorder %v574_v30, 0  ;;  %vm579_vm5 = vcmp.eq.s32.totalorder %v574_v30, 2  ;;  %v11930_v0 = vld [vmem:[#allocation12_spill] sm:$0xff] }
 0x252   : > { %v670_v54 = vsub.s32 4, %v8873_v13  ;;  %v7137_v15 = vadd.s32 4294967294, %v2506_v23  ;;  %v10284_v18 = vadd.s32 3, %v2527_v42  ;;  %v11912_v57 = vxor.u32 2147483648, %v9070_v36  ;;  %v11919_v23 = vld [vmem:[#allocation23_spill] sm:$0xff] }
 0x253   : > { %v581_v16 = vsel %vm579_vm5, %v11774_v63, %v9070_v36  ;;  %8075 = vcosq.f32 %v2217_v19  ;;  %v2390_v28 = vmul.u32 %v10180_v4, %v2374_v5  ;;  %vm575_vm12 = vcmp.lt.s32.totalorder %v574_v30, 2 }
 0x254   : > { %v578_v17 = vsel %vm576_vm4, %v8992_v38, %v11912_v57  ;;  %v671_v60 = vsel %vm586_vm9, %v670_v54, %v8873_v13  ;;  %8077 = vsinq.f32 %v2217_v19  ;;  %vm7138_vm15 = vcmp.lt.s32.totalorder %v7137_v15, 0  ;;  %v10308_v13 = vpop.f32.mrb[15].mxu0 }
 0x255   : > { %vm2392_vm0 = vc.u32 %v10279_v31, %v10256_v58  ;;  %v582_v42 = vsel %vm575_vm12, %v578_v17, %v581_v16  ;;  %v2509_v24 = vsel %vm7138_vm15, 0, %v7137_v15  ;;  %vm2337_vm10 = vcmp.lt.s32.totalorder %v9935_v2, 0  ;;  %v10327_v63 = vpop.f32.mrb[16].mxu0 }
 0x256   : > { %v2394_v21 = vsel %vm2392_vm0, %v2393_v9, %v10257_v20  ;;  %v673_v30 = vsel %vm9087_vm3, 0, %v671_v60  ;;  %v2634_v26 = vadd.s32 3, %v10187_v29  ;;  %v2510_v47 = vsub.s32 32, %v2509_v24  ;;  %v11920_v20 = vld [vmem:[#allocation22_spill] sm:$0xff]  ;;  %11921 = vst [vmem:[#allocation14_spill] sm:$0xff] %v10327_v63 }
 0x257   : > { %v2514_v27 = vsub.s32 4294967266, %v2509_v24  ;;  %v11916_v5 = vand.u32 2147483647, %v9935_v2  ;;  %v2395_v19 = vadd.s32 %v2394_v21, %v2390_v28  ;;  %v680_v34 = vxor.u32 2147483648, %v11919_v23 }
 0x258   : > { %v677_v54 = vand.u32 3, %v673_v30  ;;  %v683_v9 = vxor.u32 2147483648, %v11920_v20  ;;  %v2635_v15 = vand.u32 3, %v2634_v26  ;;  %v2738_v57 = vadd.s32 3, %v673_v30  ;;  %v10318_v17 = vpop.eup %8073 }
 0x259   : > { %vm10312_vm9 = vcmp.le.f32.partialorder %v11916_v5, 0.7853982  ;;  %v2511_v29 = vshll.u32 %v10226_v43, %v2509_v24  ;;  %v2512_v16 = vshrl.u32 %v2494_v32, %v2510_v47  ;;  %v2515_v60 = vadd.s32 127, %v2514_v27  ;;  %v10331_v47 = vpop.f32.mrb[17].mxu0 }
 0x25a   : > { %v2396_v4 = vadd.s32 536870912, %v2395_v19  ;;  %vm676_vm3 = vweird.f32 %v8651_v25  ;;  %v10323_v5 = vadd.s32 %v10256_v58, %v10279_v31  ;;  %v583_v28 = vsel %vm573_vm14, nan, %v582_v42  ;;  %11922 = vst [vmem:[#allocation23_spill] sm:$0xff] %v10331_v47  ;;  %v10333_v42 = vpop.f32.mrb[18].mxu0 }
 0x25b   : > { %vm678_vm6 = vcmp.lt.s32.totalorder %v677_v54, 2  ;;  %vm679_vm7 = vcmp.eq.s32.totalorder %v677_v54, 0  ;;  %v2513_v21 = vor.u32 %v2512_v16, %v2511_v29  ;;  %v2516_v26 = vshll.u32 %v2515_v60, 23  ;;  %11923 = vst [vmem:[#allocation22_spill] sm:$0xff] %v10333_v42  ;;  %v10343_v55 = vpop.f32.mrb[19].mxu0 }
 0x25c   : > { %v2397_v30 = vshrl.u32 %v2396_v4, 30  ;;  %vm682_vm13 = vcmp.eq.s32.totalorder %v677_v54, 2  ;;  %v681_v43 = vsel %vm679_vm7, %v11920_v20, %v680_v34  ;;  %vm2637_vm4 = vcmp.eq.s32.totalorder %v2635_v15, 0  ;;  %11926 = vst [vmem:[#allocation74_spill] sm:$0xff] %v10343_v55 }
 0x25d   : > { %v684_v32 = vsel %vm682_vm13, %v683_v9, %v11919_v23  ;;  %v2739_v24 = vand.u32 3, %v2738_v57  ;;  %v2517_v58 = vor.u32 4788187, %v2516_v26  ;;  %vm2640_vm5 = vcmp.eq.s32.totalorder %v2635_v15, 2  ;;  %v10335_v29 = vpop.eup %8075 }
 0x25e   : > { %v2398_v31 = vshll.u32 %v2397_v30, 30  ;;  %v2421_v27 = vsub.s32 4, %v2397_v30  ;;  %v2520_v16 = vcvt.s32.f32 %v2513_v21  ;;  %vm2636_vm12 = vcmp.lt.s32.totalorder %v2635_v15, 2  ;;  %v10345_v26 = vpop.eup %8077 }
 0x25f   : > { %v11924_v60 = vxor.u32 2147483648, %v9070_v36  ;;  %v11925_v63 = vxor.u32 2147483648, %v8992_v38  ;;  %v2518_v56 = vand.u32 2147483647, %v2517_v58  ;;  %v685_v15 = vsel %vm678_vm6, %v681_v43, %v684_v32 }
 0x260   : > { %v10347_v47 = vsub.s32 %v2395_v19, %v2398_v31  ;;  %v2422_v42 = vsel %vm2337_vm10, %v2421_v27, %v2397_v30  ;;  %vm2740_vm15 = vcmp.lt.s32.totalorder %v2739_v24, 2  ;;  %vm4855_vm0 = vcmask 130048  }
 0x261   : > { %v2639_v4 = vsel %vm2637_vm4, %v8992_v38, %v11924_v60  ;;  %v2642_v57 = vsel %vm2640_vm5, %v11925_v63, %v9070_v36  ;;  %v10354_v21 = vsel %vm10312_vm9, 0, %v2422_v42  ;;  %v2521_v36 = vmul.f32 %v2520_v16, %v2518_v56  ;;  %v11927_v63 = vld [vmem:[#allocation3_spill] sm:$0xff]  ;;  %v11929_v16 = vld [vmem:[#allocation8_spill] sm:$0xff] }
 0x262   : > { %v2643_v60 = vsel %vm2636_vm12, %v2639_v4, %v2642_v57  ;;  %v2401_v38 = vsub.s32 0, %v10347_v47  ;;  %vm2741_vm7 = vcmp.eq.s32.totalorder %v2739_v24, 0  ;;  %vm2744_vm13 = vcmp.eq.s32.totalorder %v2739_v24, 2  ;;  %v11931_v57 = vld [vmem:[#allocation11_spill] sm:$0xff] }
 0x263   : > { %vm779_vm4 = vweird.f32 %v11927_v63  ;;  %v686_v19 = vsel %vm676_vm3, nan, %v685_v15  ;;  %v2644_v54 = vsel %vm573_vm14, nan, %v2643_v60  ;;  %v2743_v30 = vsel %vm2741_vm7, %v11920_v20, %v680_v34 }
 0x264   : > { %v2746_v43 = vsel %vm2744_vm13, %v683_v9, %v11919_v23  ;;  %v2522_v32 = vxor.u32 2147483648, %v2521_v36  ;;  %v7132_v58 = vmin.u32 %v2401_v38, %v10347_v47  ;;  %v10366_v56 = vand.u32 3, %v10354_v21 }
 0x265   : > { %v2747_v31 = vsel %vm2740_vm15, %v2743_v30, %v2746_v43  ;;  %v4623_v42 = vsel %vm334_vm2, %v583_v28, %v2644_v54  ;;  %vm781_vm6 = vcmp.lt.s32.totalorder %v11929_v16, 2  ;;  %v783_v4 = vxor.u32 2147483648, %v11930_v0  ;;  %v11935_v43 = vld [vmem:[#allocation19_spill] sm:$0xff] }
 0x266   : > { %v2748_v24 = vsel %vm676_vm3, nan, %v2747_v31  ;;  %v2523_v23 = vsel %vm2440_vm8, %v2522_v32, %v2521_v36  ;;  %v2403_v34 = vclz %v7132_v58  ;;  %vm782_vm14 = vcmp.eq.s32.totalorder %v11929_v16, 0  ;;  %v11932_v36 = vld [vmem:[#allocation4_spill] sm:$0xff] }
 0x267   : > { %v4624_v20 = vsel %vm334_vm2, %v686_v19, %v2748_v24  ;;  %v2526_v25 = vsel %vm10198_vm11, %v9932_v46, %v2523_v23  ;;  %v784_v28 = vsel %vm782_vm14, %v11931_v57, %v783_v4  ;;  %v786_v15 = vxor.u32 2147483648, %v11931_v57  ;;  %v11933_v19 = vld [vmem:[#allocation10_spill] sm:$0xff] }
 0x268   : > { %v4643_v9 = vpack.c.bf16 %v4624_v20, %v4623_v42  ;;  %8079 = vcosq.f32 %v2526_v25  ;;  %v7133_v60 = vadd.s32 4294967294, %v2403_v34  ;;  %vm785_vm3 = vcmp.eq.s32.totalorder %v11929_v16, 2  ;;  %v11936_v20 = vld [vmem:[#allocation9_spill] sm:$0xff]  ;;  %v7965_v16 = vld [vmem:[%s11671_s5] sm:$0xff]  }
 0x269   : > { %vm882_vm8 = vweird.f32 %v11932_v36  ;;  %8081 = vsinq.f32 %v2526_v25  ;;  %v787_v38 = vsel %vm785_vm3, %v786_v15, %v11930_v0  ;;  %vm884_vm5 = vcmp.lt.s32.totalorder %v11933_v19, 2  ;;  %7642 = vmatprep.subr.bf16.mxu0 %v7965_v16 }
 0x26a   : > { %7622 = vmatprep.mubr.msk.bf16.mxu1 %vm4855_vm0, %v4643_v9  ;;  %v886_v54 = vxor.u32 2147483648, %v11934_v45  ;;  %vm7134_vm11 = vcmp.lt.s32.totalorder %v7133_v60, 0  ;;  %v788_v30 = vsel %vm781_vm6, %v784_v28, %v787_v38  ;;  %vm885_vm12 = vcmp.eq.s32.totalorder %v11933_v19, 0  ;;  %7643 = vmatpush3.bf16.msra.mxu0 %v7965_v16 }
 0x26b   : > { %v889_v32 = vxor.u32 2147483648, %v11935_v43  ;;  %v2406_v58 = vsel %vm7134_vm11, 0, %v7133_v60  ;;  %v789_v31 = vsel %vm779_vm4, nan, %v788_v30  ;;  %vm888_vm15 = vcmp.eq.s32.totalorder %v11933_v19, 2  ;;  %v11937_v30 = vld [vmem:[#allocation13_spill] sm:$0xff] }
 0x26c   : > { %v887_v24 = vsel %vm885_vm12, %v11935_v43, %v886_v54  ;;  %v2407_v42 = vsub.s32 32, %v2406_v58  ;;  %v2411_v23 = vsub.s32 4294967266, %v2406_v58  ;;  %vm2844_vm7 = vcmp.lt.s32.totalorder %v11936_v20, 2 }
 0x26d   : > { %v890_v34 = vsel %vm888_vm15, %v889_v32, %v11934_v45  ;;  %v2408_v25 = vshll.u32 %v10347_v47, %v2406_v58  ;;  %vm2845_vm13 = vcmp.eq.s32.totalorder %v11936_v20, 0  ;;  %vm2848_vm6 = vcmp.eq.s32.totalorder %v11936_v20, 2 }
 0x26e   : > { %v891_v9 = vsel %vm884_vm5, %v887_v24, %v890_v34  ;;  %v2409_v28 = vshrl.u32 %v10323_v5, %v2407_v42  ;;  %v2412_v60 = vadd.s32 127, %v2411_v23  ;;  %v2847_v38 = vsel %vm2845_vm13, %v11931_v57, %v783_v4  ;;  %v11938_v42 = vld [vmem:[#allocation6_spill] sm:$0xff] }
 0x26f   : > { %vm2948_vm14 = vcmp.lt.s32.totalorder %v11937_v30, 2  ;;  %v892_v55 = vsel %vm882_vm8, nan, %v891_v9  ;;  %v2850_v47 = vsel %vm2848_vm6, %v786_v15, %v11930_v0  ;;  %vm2949_vm3 = vcmp.eq.s32.totalorder %v11937_v30, 0  ;;  %v11939_v0 = vld [vmem:[#allocation20_spill] sm:$0xff] }
 0x270   : > { %vm2952_vm5 = vcmp.eq.s32.totalorder %v11937_v30, 2  ;;  %v2410_v19 = vor.u32 %v2409_v28, %v2408_v25  ;;  %v2413_v58 = vshll.u32 %v2412_v60, 23  ;;  %v2851_v5 = vsel %vm2844_vm7, %v2847_v38, %v2850_v47  ;;  %v11942_v60 = vld [vmem:[#allocation5_spill] sm:$0xff]  ;;  %v11943_v47 = vld [vmem:[#allocation16_spill] sm:$0xff] }
 0x271   : > { %v2951_v4 = vsel %vm2949_vm3, %v11935_v43, %v886_v54  ;;  %v2852_v57 = vsel %vm779_vm4, nan, %v2851_v5  ;;  %v2954_v24 = vsel %vm2952_vm5, %v889_v32, %v11934_v45  ;;  %vm985_vm11 = vweird.f32 %v11938_v42  ;;  %v11940_v54 = vld [vmem:[#allocation30_spill] sm:$0xff]  ;;  %v11941_v32 = vld [vmem:[#allocation29_spill] sm:$0xff] }
 0x272   : > { %vm987_vm12 = vcmp.lt.s32.totalorder %v11939_v0, 2  ;;  %v10424_v15 = vpop.eup %8079  ;;  %v2414_v23 = vor.u32 4788187, %v2413_v58  ;;  %v2417_v34 = vcvt.s32.f32 %v2410_v19  ;;  %v2955_v16 = vsel %vm2948_vm14, %v2951_v4, %v2954_v24  ;;  %v11948_v42 = vld [vmem:[#allocation33_spill] sm:$0xff] }
 0x273   : > { %vm988_vm15 = vcmp.eq.s32.totalorder %v11939_v0, 0  ;;  %v10429_v20 = vpop.eup %8081  ;;  %v2956_v63 = vsel %vm882_vm8, nan, %v2955_v16  ;;  %v4625_v45 = vsel %vm334_vm2, %v789_v31, %v2852_v57  ;;  %v989_v43 = vxor.u32 2147483648, %v11940_v54  ;;  %v7958_v31 = vld [vmem:[%s11671_s5 + $0x48] sm:$0xff]  }
 0x274   : > { %v992_v25 = vxor.u32 2147483648, %v11941_v32  ;;  %v2415_v9 = vand.u32 2147483647, %v2414_v23  ;;  %v4626_v28 = vsel %vm334_vm2, %v892_v55, %v2956_v63  ;;  %vm991_vm4 = vcmp.eq.s32.totalorder %v11939_v0, 2  ;;  %v11944_v55 = vld [vmem:[#allocation28_spill] sm:$0xff]  ;;  %v11945_v57 = vld [vmem:[#allocation27_spill] sm:$0xff] }
 0x275   : > { %vm1088_vm7 = vweird.f32 %v11942_v60  ;;  %v4644_v38 = vpack.c.bf16 %v4626_v28, %v4625_v45  ;;  %v990_v30 = vsel %vm988_vm15, %v11941_v32, %v989_v43  ;;  %vm1090_vm8 = vcmp.lt.s32.totalorder %v11943_v47, 2  ;;  %v11946_v23 = vld [vmem:[#allocation24_spill] sm:$0xff]  ;;  %v8487_v0 = vld [vmem:[%s11671_s5 + $0x40] sm:$0xff]  }
 0x276   : > { %v993_v36 = vsel %vm991_vm4, %v992_v25, %v11940_v54  ;;  %v2418_v19 = vmul.f32 %v2417_v34, %v2415_v9  ;;  %vm1091_vm13 = vcmp.eq.s32.totalorder %v11943_v47, 0  ;;  %v1092_v5 = vxor.u32 2147483648, %v11944_v55  ;;  %v11947_v28 = vld [vmem:[#allocation18_spill] sm:$0xff] }
 0x277   : > { %v994_v58 = vsel %vm987_vm12, %v990_v30, %v993_v36  ;;  %7623 = vmatmul.mubr.msk.bf16.vlgmr.msra.gmra.mrb[0].mxu1 %vm4855_vm0, %v4644_v38  ;;  %vm1094_vm6 = vcmp.eq.s32.totalorder %v11943_v47, 2  ;;  %v1095_v24 = vxor.u32 2147483648, %v11945_v57  ;;  %vm3053_vm14 = vcmp.eq.s32.totalorder %v11946_v23, 0  ;;  %v7959_v38 = vld [vmem:[%s11671_s5 + $0x50] sm:$0xff]  }
 0x278   : > { %v995_v4 = vsel %vm985_vm11, nan, %v994_v58  ;;  %v2419_v16 = vxor.u32 2147483648, %v2418_v19  ;;  %7679 = vmatpush3.bf16.msra.mxu1 %v8487_v0  ;;  %v1093_v34 = vsel %vm1091_vm13, %v11945_v57, %v1092_v5  ;;  %v3055_v63 = vsel %vm3053_vm14, %v11941_v32, %v989_v43 }
 0x279   : > { %vm3056_vm3 = vcmp.eq.s32.totalorder %v11946_v23, 2  ;;  %v1096_v45 = vsel %vm1094_vm6, %v1095_v24, %v11944_v55  ;;  %vm3052_vm5 = vcmp.lt.s32.totalorder %v11946_v23, 2  ;;  %vm3157_vm12 = vcmp.eq.s32.totalorder %v11947_v28, 0  ;;  %7680 = vmatprep.subr.bf16.mxu1 %v7958_v31  ;;  %v11950_v23 = vld [vmem:[#allocation25_spill] sm:$0xff] }
 0x27a   : > { %v3058_v9 = vsel %vm3056_vm3, %v992_v25, %v11940_v54  ;;  %v2420_v30 = vsel %vm2337_vm10, %v2419_v16, %v2418_v19  ;;  %v1097_v43 = vsel %vm1090_vm8, %v1093_v34, %v1096_v45  ;;  %v3159_v36 = vsel %vm3157_vm12, %v11945_v57, %v1092_v5  ;;  %v7960_v5 = vld [vmem:[%s11671_s5 + $0x58] sm:$0xff]  }
 0x27b   : > { %v3059_v32 = vsel %vm3052_vm5, %v3055_v63, %v3058_v9  ;;  %v10478_v54 = vsel %vm10312_vm9, %v9935_v2, %v2420_v30  ;;  %vm3156_vm15 = vcmp.lt.s32.totalorder %v11947_v28, 2  ;;  %vm3160_vm4 = vcmp.eq.s32.totalorder %v11947_v28, 2  ;;  %v11951_v34 = vld [vmem:[#allocation37_spill] sm:$0xff]  ;;  %v11952_v9 = vld [vmem:[#allocation32_spill] sm:$0xff]  ;;  %v11953_v30 = vld [vmem:[#allocation34_spill] sm:$0xff] }
 0x27c   : > { %v3060_v25 = vsel %vm985_vm11, nan, %v3059_v32  ;;  %v1098_v19 = vsel %vm1088_vm7, nan, %v1097_v43  ;;  %v3162_v47 = vsel %vm3160_vm4, %v1095_v24, %v11944_v55  ;;  %7681 = vmatpush3.bf16.msra.mxu1 %v7958_v31  ;;  %vm1191_vm10 = vweird.f32 %v9030_v59  ;;  %v11949_v24 = vld [vmem:[#allocation7_spill] sm:$0xff]  ;;  %v7961_v43 = vld [vmem:[%s11671_s5 + $0x60] sm:$0xff]  }
 0x27d   : > { %v4627_v58 = vsel %vm334_vm2, %v995_v4, %v3060_v25  ;;  %8083 = vsinq.f32 %v10478_v54  ;;  %v3163_v33 = vsel %vm3156_vm15, %v3159_v36, %v3162_v47  ;;  %vm1193_vm9 = vcmp.lt.s32.totalorder %v11948_v42, 2  ;;  %7682 = vmatprep.subr.bf16.mxu1 %v7959_v38  ;;  %v11954_v47 = vld [vmem:[#allocation31_spill] sm:$0xff] }
 0x27e   : > { %vm1194_vm11 = vcmp.eq.s32.totalorder %v11948_v42, 0  ;;  %v3164_v55 = vsel %vm1088_vm7, nan, %v3163_v33  ;;  %v1195_v4 = vxor.u32 2147483648, %v9537_v6  ;;  %vm1197_vm8 = vcmp.eq.s32.totalorder %v11948_v42, 2 }
 0x27f   : > { %v1198_v31 = vxor.u32 2147483648, %v9534_v22  ;;  %v4628_v57 = vsel %vm334_vm2, %v1098_v19, %v3164_v55  ;;  %vm1294_vm13 = vweird.f32 %v11949_v24  ;;  %vm1296_vm6 = vcmp.lt.s32.totalorder %v11950_v23, 2 }
 0x280   : > { %vm1297_vm14 = vcmp.eq.s32.totalorder %v11950_v23, 0  ;;  %v4645_v16 = vpack.c.bf16 %v4628_v57, %v4627_v58  ;;  %v1196_v0 = vsel %vm1194_vm11, %v9534_v22, %v1195_v4  ;;  %v1298_v63 = vxor.u32 2147483648, %v11951_v34  ;;  %7683 = vmatpush3.bf16.msra.mxu1 %v7959_v38 }
 0x281   : > { %v1199_v60 = vsel %vm1197_vm8, %v1198_v31, %v9537_v6  ;;  %vm1300_vm7 = vcmp.eq.s32.totalorder %v11950_v23, 2  ;;  %v1301_v28 = vxor.u32 2147483648, %v11952_v9  ;;  %vm3260_vm3 = vcmp.lt.s32.totalorder %v11953_v30, 2  ;;  %7684 = vmatprep.subr.bf16.mxu1 %v7960_v5  ;;  %v11956_v23 = vld [vmem:[#allocation40_spill] sm:$0xff] }
 0x282   : > { %v1200_v45 = vsel %vm1193_vm9, %v1196_v0, %v1199_v60  ;;  %7626 = vmatprep.mubr.msk.bf16.mxu1 %vm4855_vm0, %v4645_v16  ;;  %v1299_v38 = vsel %vm1297_vm14, %v11952_v9, %v1298_v63  ;;  %vm3261_vm5 = vcmp.eq.s32.totalorder %v11953_v30, 0  ;;  %vm3264_vm12 = vcmp.eq.s32.totalorder %v11953_v30, 2  ;;  %v11960_v30 = vld [vmem:[#allocation42_spill] sm:$0xff] }
 0x283   : > { %v1201_v32 = vsel %vm1191_vm10, nan, %v1200_v45  ;;  %v1302_v36 = vsel %vm1300_vm7, %v1301_v28, %v11951_v34  ;;  %v3263_v25 = vsel %vm3261_vm5, %v9534_v22, %v1195_v4  ;;  %v3266_v19 = vsel %vm3264_vm12, %v1198_v31, %v9537_v6  ;;  %v7962_v4 = vld [vmem:[%s11671_s5 + $0x68] sm:$0xff]  }
 0x284   : > { %vm3364_vm15 = vcmp.lt.s32.totalorder %v11954_v47, 2  ;;  %v1303_v58 = vsel %vm1296_vm6, %v1299_v38, %v1302_v36  ;;  %v3267_v33 = vsel %vm3260_vm3, %v3263_v25, %v3266_v19  ;;  %vm3365_vm4 = vcmp.eq.s32.totalorder %v11954_v47, 0  ;;  %7685 = vmatpush3.bf16.msra.mxu1 %v7960_v5  ;;  %v11955_v5 = vld [vmem:[#allocation17_spill] sm:$0xff]  ;;  %v11958_v45 = vld [vmem:[#allocation15_spill] sm:$0xff]  ;;  %v7963_v38 = vld [vmem:[%s11671_s5 + $0x70] sm:$0xff]  }
 0x285   : > { %vm3368_vm9 = vcmp.eq.s32.totalorder %v11954_v47, 2  ;;  %v1304_v42 = vsel %vm1294_vm13, nan, %v1303_v58  ;;  %v3268_v55 = vsel %vm1191_vm10, nan, %v3267_v33  ;;  %v3367_v22 = vsel %vm3365_vm4, %v11952_v9, %v1298_v63  ;;  %7686 = vmatprep.subr.bf16.mxu1 %v7961_v43  ;;  %v11959_v9 = vld [vmem:[#allocation38_spill] sm:$0xff]  ;;  %v11961_v25 = vld [vmem:[#allocation41_spill] sm:$0xff]  ;;  %v11962_v47 = vld [vmem:[#allocation43_spill] sm:$0xff] }
 0x286   : > { %v3370_v6 = vsel %vm3368_vm9, %v1301_v28, %v11951_v34  ;;  %v4629_v57 = vsel %vm334_vm2, %v1201_v32, %v3268_v55  ;;  %vm1397_vm11 = vweird.f32 %v11955_v5  ;;  %vm1399_vm8 = vcmp.lt.s32.totalorder %v11956_v23, 2  ;;  %v11957_v34 = vld [vmem:[#allocation46_spill] sm:$0xff] }
 0x287   : > { %v3371_v31 = vsel %vm3364_vm15, %v3367_v22, %v3370_v6  ;;  %v10544_v16 = vpop.eup %8083  ;;  %vm1400_vm10 = vcmp.eq.s32.totalorder %v11956_v23, 0  ;;  %v1401_v0 = vxor.u32 2147483648, %v9754_v53  ;;  %vm1403_vm6 = vcmp.eq.s32.totalorder %v11956_v23, 2  ;;  %v7964_v23 = vld [vmem:[%s11671_s5 + $0x78] sm:$0xff]  }
 0x288   : > { %v3372_v59 = vsel %vm1294_vm13, nan, %v3371_v31  ;;  %v1404_v63 = vxor.u32 2147483648, %v11957_v34  ;;  %vm1500_vm14 = vweird.f32 %v11958_v45  ;;  %vm1502_vm7 = vcmp.lt.s32.totalorder %v11959_v9, 2  ;;  %7687 = vmatpush3.bf16.msra.mxu1 %v7961_v43 }
 0x289   : > { %v4630_v60 = vsel %vm334_vm2, %v1304_v42, %v3372_v59  ;;  %v1402_v24 = vsel %vm1400_vm10, %v11957_v34, %v1401_v0  ;;  %vm1503_vm13 = vcmp.eq.s32.totalorder %v11959_v9, 0  ;;  %v1504_v32 = vxor.u32 2147483648, %v11960_v30  ;;  %7688 = vmatprep.subr.bf16.mxu1 %v7962_v4 }
 0x28a   : > { %v4646_v28 = vpack.c.bf16 %v4630_v60, %v4629_v57  ;;  %v1405_v36 = vsel %vm1403_vm6, %v1404_v63, %v9754_v53  ;;  %vm1506_vm3 = vcmp.eq.s32.totalorder %v11959_v9, 2  ;;  %v1507_v19 = vxor.u32 2147483648, %v11961_v25  ;;  %v11963_v57 = vld [vmem:[#allocation39_spill] sm:$0xff]  ;;  %v11964_v9 = vld [vmem:[#allocation52_spill] sm:$0xff] }
 0x28b   : > { %vm3468_vm5 = vcmp.lt.s32.totalorder %v11962_v47, 2  ;;  %v1406_v43 = vsel %vm1399_vm8, %v1402_v24, %v1405_v36  ;;  %v1505_v58 = vsel %vm1503_vm13, %v11961_v25, %v1504_v32  ;;  %vm3469_vm12 = vcmp.eq.s32.totalorder %v11962_v47, 0  ;;  %v11965_v24 = vld [vmem:[#allocation26_spill] sm:$0xff] }
 0x28c   : > { %7627 = vmatmul.mubr.msk.bf16.gmra.mrb[4].mxu1 %vm4855_vm0, %v4646_v28  ;;  %vm3472_vm15 = vcmp.eq.s32.totalorder %v11962_v47, 2  ;;  %v1407_v33 = vsel %vm1397_vm11, nan, %v1406_v43  ;;  %v1508_v42 = vsel %vm1506_vm3, %v1507_v19, %v11960_v30  ;;  %v3471_v55 = vsel %vm3469_vm12, %v11957_v34, %v1401_v0  ;;  %v11968_v47 = vld [vmem:[#allocation50_spill] sm:$0xff] }
 0x28d   : > { %v3474_v22 = vsel %vm3472_vm15, %v1404_v63, %v9754_v53  ;;  %7689 = vmatpush3.bf16.msra.mxu1 %v7962_v4  ;;  %v1509_v6 = vsel %vm1502_vm7, %v1505_v58, %v1508_v42  ;;  %vm3572_vm4 = vcmp.lt.s32.totalorder %v11963_v57, 2  ;;  %vm3573_vm9 = vcmp.eq.s32.totalorder %v11963_v57, 0  ;;  %v11969_v42 = vld [vmem:[#allocation47_spill] sm:$0xff] }
 0x28e   : > { %v3475_v31 = vsel %vm3468_vm5, %v3471_v55, %v3474_v22  ;;  %7690 = vmatprep.subr.bf16.mxu1 %v7963_v38  ;;  %v1510_v59 = vsel %vm1500_vm14, nan, %v1509_v6  ;;  %v3575_v4 = vsel %vm3573_vm9, %v11961_v25, %v1504_v32  ;;  %vm3576_vm8 = vcmp.eq.s32.totalorder %v11963_v57, 2  ;;  %v11967_v25 = vld [vmem:[#allocation51_spill] sm:$0xff]  ;;  %v11970_v57 = vld [vmem:[#allocation45_spill] sm:$0xff] }
 0x28f   : > { %v3476_v53 = vsel %vm1397_vm11, nan, %v3475_v31  ;;  %v3578_v0 = vsel %vm3576_vm8, %v1507_v19, %v11960_v30  ;;  %vm1603_vm10 = vweird.f32 %v9416_v62  ;;  %vm1605_vm6 = vcmp.lt.s32.totalorder %v9724_v12, 2  ;;  %v11966_v30 = vld [vmem:[#allocation44_spill] sm:$0xff] }
 0x290   : > { %v4631_v60 = vsel %vm334_vm2, %v1407_v33, %v3476_v53  ;;  %v3579_v34 = vsel %vm3572_vm4, %v3575_v4, %v3578_v0  ;;  %vm1606_vm7 = vcmp.eq.s32.totalorder %v9724_v12, 0  ;;  %v1607_v63 = vxor.u32 2147483648, %v9794_v8 }
 0x291   : > { %vm1609_vm11 = vcmp.eq.s32.totalorder %v9724_v12, 2  ;;  %7691 = vmatpush3.bf16.msra.mxu1 %v7963_v38  ;;  %v3580_v5 = vsel %vm1500_vm14, nan, %v3579_v34  ;;  %v1610_v28 = vxor.u32 2147483648, %v11964_v9  ;;  %vm1706_vm13 = vweird.f32 %v11965_v24  ;;  %v11974_v24 = vld [vmem:[#allocation58_spill] sm:$0xff] }
 0x292   : > { %vm1708_vm3 = vcmp.lt.s32.totalorder %v11966_v30, 2  ;;  %7692 = vmatprep.subr.bf16.mxu1 %v7964_v23  ;;  %v4632_v32 = vsel %vm334_vm2, %v1510_v59, %v3580_v5  ;;  %v1608_v36 = vsel %vm1606_vm7, %v11964_v9, %v1607_v63  ;;  %vm1709_vm5 = vcmp.eq.s32.totalorder %v11966_v30, 0 }
 0x293   : > { %v1710_v19 = vxor.u32 2147483648, %v11967_v25  ;;  %v4647_v38 = vpack.c.bf16 %v4632_v32, %v4631_v60  ;;  %v1611_v45 = vsel %vm1609_vm11, %v1610_v28, %v9794_v8  ;;  %vm1712_vm14 = vcmp.eq.s32.totalorder %v11966_v30, 2  ;;  %v11973_v32 = vld [vmem:[#allocation48_spill] sm:$0xff] }
 0x294   : > { %v1713_v43 = vxor.u32 2147483648, %v11968_v47  ;;  %v1612_v58 = vsel %vm1605_vm6, %v1608_v36, %v1611_v45  ;;  %vm3676_vm12 = vcmp.lt.s32.totalorder %v11969_v42, 2  ;;  %vm3677_vm15 = vcmp.eq.s32.totalorder %v11969_v42, 0  ;;  %v11975_v45 = vld [vmem:[#allocation57_spill] sm:$0xff] }
 0x295   : > { %v1711_v33 = vsel %vm1709_vm5, %v11968_v47, %v1710_v19  ;;  %7693 = vmatpush3.bf16.msra.mxu1 %v7964_v23  ;;  %7630 = vmatprep.mubr.msk.bf16.mxu1 %vm4855_vm0, %v4647_v38  ;;  %v1613_v55 = vsel %vm1603_vm10, nan, %v1612_v58  ;;  %v3679_v6 = vsel %vm3677_vm15, %v11964_v9, %v1607_v63  ;;  %vm3680_vm4 = vcmp.eq.s32.totalorder %v11969_v42, 2  ;;  %v11972_v9 = vld [vmem:[#allocation35_spill] sm:$0xff] }
 0x296   : > { %v1714_v22 = vsel %vm1712_vm14, %v1713_v43, %v11967_v25  ;;  %v3682_v31 = vsel %vm3680_vm4, %v1610_v28, %v9794_v8  ;;  %vm3780_vm9 = vcmp.lt.s32.totalorder %v11970_v57, 2  ;;  %vm3781_vm8 = vcmp.eq.s32.totalorder %v11970_v57, 0  ;;  %v11971_v8 = vld [vmem:[#allocation53_spill] sm:$0xff] }
 0x297   : > { %v1715_v12 = vsel %vm1708_vm3, %v1711_v33, %v1714_v22  ;;  %v3683_v59 = vsel %vm3676_vm12, %v3679_v6, %v3682_v31  ;;  %v3783_v53 = vsel %vm3781_vm8, %v11968_v47, %v1710_v19  ;;  %vm3784_vm6 = vcmp.eq.s32.totalorder %v11970_v57, 2  ;;  %v11977_v6 = vld [vmem:[#allocation49_spill] sm:$0xff] }
 0x298   : > { %v1716_v23 = vsel %vm1706_vm13, nan, %v1715_v12  ;;  %v3684_v4 = vsel %vm1603_vm10, nan, %v3683_v59  ;;  %v3786_v0 = vsel %vm3784_vm6, %v1713_v43, %v11967_v25  ;;  %vm1809_vm7 = vweird.f32 %v9434_v14  ;;  %v11976_v43 = vld [vmem:[#allocation54_spill] sm:$0xff]  ;;  %v11980_v14 = vld [vmem:[#allocation65_spill] sm:$0xff] }
 0x299   : > { %vm1811_vm11 = vcmp.lt.s32.totalorder %v11971_v8, 2  ;;  %v3787_v60 = vsel %vm3780_vm9, %v3783_v53, %v3786_v0  ;;  %v4633_v34 = vsel %vm334_vm2, %v1613_v55, %v3684_v4  ;;  %vm1812_vm3 = vcmp.eq.s32.totalorder %v11971_v8, 0  ;;  %v11978_v4 = vld [vmem:[#allocation59_spill] sm:$0xff] }
 0x29a   : > { %v1813_v63 = vxor.u32 2147483648, %v9973_v40  ;;  %v3788_v5 = vsel %vm1706_vm13, nan, %v3787_v60  ;;  %vm1815_vm5 = vcmp.eq.s32.totalorder %v11971_v8, 2  ;;  %v1816_v62 = vxor.u32 2147483648, %v9962_v44  ;;  %v11979_v8 = vld [vmem:[#allocation66_spill] sm:$0xff] }
 0x29b   : > { %vm1912_vm10 = vweird.f32 %v11972_v9  ;;  %v4634_v28 = vsel %vm334_vm2, %v1716_v23, %v3788_v5  ;;  %vm1914_vm14 = vcmp.lt.s32.totalorder %v11973_v32, 2  ;;  %vm1915_vm12 = vcmp.eq.s32.totalorder %v11973_v32, 0  ;;  %v11981_v5 = vld [vmem:[#allocation36_spill] sm:$0xff] }
 0x29c   : > { %v1814_v30 = vsel %vm1812_vm3, %v9962_v44, %v1813_v63  ;;  %v4648_v36 = vpack.c.bf16 %v4634_v28, %v4633_v34  ;;  %v1817_v25 = vsel %vm1815_vm5, %v1816_v62, %v9973_v40  ;;  %v1916_v19 = vxor.u32 2147483648, %v11974_v24 }
 0x29d   : > { %vm1918_vm13 = vcmp.eq.s32.totalorder %v11973_v32, 2  ;;  %v1818_v38 = vsel %vm1811_vm11, %v1814_v30, %v1817_v25  ;;  %v1919_v47 = vxor.u32 2147483648, %v11975_v45  ;;  %vm3884_vm15 = vcmp.lt.s32.totalorder %v11976_v43, 2  ;;  %v11983_v32 = vld [vmem:[#allocation61_spill] sm:$0xff] }
 0x29e   : > { %vm3885_vm4 = vcmp.eq.s32.totalorder %v11976_v43, 0  ;;  %7631 = vmatmul.mubr.msk.bf16.gmra.mrb[8].mxu1 %vm4855_vm0, %v4648_v36  ;;  %v1819_v58 = vsel %vm1809_vm7, nan, %v1818_v38  ;;  %v1917_v33 = vsel %vm1915_vm12, %v11975_v45, %v1916_v19  ;;  %vm3888_vm9 = vcmp.eq.s32.totalorder %v11976_v43, 2  ;;  %v11985_v38 = vld [vmem:[#allocation62_spill] sm:$0xff] }
 0x29f   : > { %v3887_v42 = vsel %vm3885_vm4, %v9962_v44, %v1813_v63  ;;  %v1920_v55 = vsel %vm1918_vm13, %v1919_v47, %v11974_v24  ;;  %v3890_v22 = vsel %vm3888_vm9, %v1816_v62, %v9973_v40  ;;  %vm3988_vm8 = vcmp.lt.s32.totalorder %v11977_v6, 2  ;;  %v11982_v62 = vld [vmem:[#allocation55_spill] sm:$0xff] }
 0x2a0   : > { %vm3989_vm6 = vcmp.eq.s32.totalorder %v11977_v6, 0  ;;  %v1921_v12 = vsel %vm1914_vm14, %v1917_v33, %v1920_v55  ;;  %v3891_v31 = vsel %vm3884_vm15, %v3887_v42, %v3890_v22  ;;  %vm3992_vm11 = vcmp.eq.s32.totalorder %v11977_v6, 2  ;;  %v11986_v42 = vld [vmem:[#allocation56_spill] sm:$0xff] }
 0x2a1   : > { %v3991_v57 = vsel %vm3989_vm6, %v11975_v45, %v1916_v19  ;;  %v1922_v44 = vsel %vm1912_vm10, nan, %v1921_v12  ;;  %v3892_v23 = vsel %vm1809_vm7, nan, %v3891_v31  ;;  %v3994_v40 = vsel %vm3992_vm11, %v1919_v47, %v11974_v24  ;;  %v11984_v24 = vld [vmem:[#allocation60_spill] sm:$0xff] }
 0x2a2   : > { %vm2015_vm3 = vweird.f32 %v9443_v37  ;;  %v3995_v59 = vsel %vm3988_vm8, %v3991_v57, %v3994_v40  ;;  %v4635_v53 = vsel %vm334_vm2, %v1819_v58, %v3892_v23  ;;  %vm2017_vm5 = vcmp.lt.s32.totalorder %v11978_v4, 2 }
 0x2a3   : > { %vm2018_vm14 = vcmp.eq.s32.totalorder %v11978_v4, 0  ;;  %v3996_v0 = vsel %vm1912_vm10, nan, %v3995_v59  ;;  %v2019_v60 = vxor.u32 2147483648, %v11979_v8  ;;  %vm2021_vm12 = vcmp.eq.s32.totalorder %v11978_v4, 2 }
 0x2a4   : > { %v2022_v34 = vxor.u32 2147483648, %v11980_v14  ;;  %v4636_v63 = vsel %vm334_vm2, %v1922_v44, %v3996_v0  ;;  %vm2118_vm7 = vweird.f32 %v11981_v5  ;;  %vm2120_vm13 = vcmp.lt.s32.totalorder %v11982_v62, 2  ;;  %v11987_v0 = vld [vmem:[#allocation63_spill] sm:$0xff] }
 0x2a5   : > { %vm2121_vm15 = vcmp.eq.s32.totalorder %v11982_v62, 0  ;;  %v4649_v28 = vpack.c.bf16 %v4636_v63, %v4635_v53  ;;  %v2020_v30 = vsel %vm2018_vm14, %v11980_v14, %v2019_v60  ;;  %v2122_v36 = vxor.u32 2147483648, %v11983_v32 }
 0x2a6   : > { %v2023_v9 = vsel %vm2021_vm12, %v2022_v34, %v11979_v8  ;;  %vm2124_vm10 = vcmp.eq.s32.totalorder %v11982_v62, 2  ;;  %v2125_v19 = vxor.u32 2147483648, %v11984_v24  ;;  %vm4092_vm4 = vcmp.lt.s32.totalorder %v11985_v38, 2 }
 0x2a7   : > { %v2024_v25 = vsel %vm2017_vm5, %v2020_v30, %v2023_v9  ;;  %7634 = vmatprep.mubr.msk.bf16.mxu1 %vm4855_vm0, %v4649_v28  ;;  %v2123_v47 = vsel %vm2121_vm15, %v11984_v24, %v2122_v36  ;;  %vm4093_vm9 = vcmp.eq.s32.totalorder %v11985_v38, 0  ;;  %vm4096_vm8 = vcmp.eq.s32.totalorder %v11985_v38, 2 }
 0x2a8   : > { %v2025_v45 = vsel %vm2015_vm3, nan, %v2024_v25  ;;  %v2126_v43 = vsel %vm2124_vm10, %v2125_v19, %v11983_v32  ;;  %v4095_v58 = vsel %vm4093_vm9, %v11980_v14, %v2019_v60  ;;  %v4098_v33 = vsel %vm4096_vm8, %v2022_v34, %v11979_v8 }
 0x2a9   : > { %vm4196_vm6 = vcmp.lt.s32.totalorder %v11986_v42, 2  ;;  %v2127_v55 = vsel %vm2120_vm13, %v2123_v47, %v2126_v43  ;;  %v4099_v22 = vsel %vm4092_vm4, %v4095_v58, %v4098_v33  ;;  %vm4197_vm11 = vcmp.eq.s32.totalorder %v11986_v42, 0 }
 0x2aa   : > { %vm4200_vm5 = vcmp.eq.s32.totalorder %v11986_v42, 2  ;;  %v2128_v6 = vsel %vm2118_vm7, nan, %v2127_v55  ;;  %v4100_v12 = vsel %vm2015_vm3, nan, %v4099_v22  ;;  %v4199_v31 = vsel %vm4197_vm11, %v11984_v24, %v2122_v36  ;;  %v10755_v36 = vld [vmem:[%s11670_s4] ss:$0 sm:$0xff] }
 0x2ab   : > { %v4202_v57 = vsel %vm4200_vm5, %v2125_v19, %v11983_v32  ;;  %8085 = vcosq.f32 %v10478_v54  ;;  %v4506_v44 = vadd.s32 3, %v10354_v21  ;;  %v4637_v40 = vsel %vm334_vm2, %v2025_v45, %v4100_v12  ;;  %v11988_v32 = vld [vmem:[#allocation64_spill] sm:$0xff] }
 0x2ac   : > { %v4203_v23 = vsel %vm4196_vm6, %v4199_v31, %v4202_v57  ;;  %vm2221_vm14 = vweird.f32 %v9910_v51  ;;  %vm2223_vm12 = vcmp.lt.s32.totalorder %v10166_v1, 2  ;;  %v2225_v37 = vxor.u32 2147483648, %v10345_v26 }
 0x2ad   : > { %v4204_v59 = vsel %vm2118_vm7, nan, %v4203_v23  ;;  %vm2224_vm3 = vcmp.eq.s32.totalorder %v10166_v1, 0  ;;  %vm2227_vm13 = vcmp.eq.s32.totalorder %v10166_v1, 2  ;;  %v2228_v21 = vxor.u32 2147483648, %v10335_v29 }
 0x2ae   : > { %v4638_v53 = vsel %vm334_vm2, %v2128_v6, %v4204_v59  ;;  %v2226_v4 = vsel %vm2224_vm3, %v10335_v29, %v2225_v37  ;;  %vm2326_vm7 = vcmp.lt.s32.totalorder %v11987_v0, 2  ;;  %v2328_v8 = vxor.u32 2147483648, %v10318_v17 }
 0x2af   : > { %v4650_v54 = vpack.c.bf16 %v4638_v53, %v4637_v40  ;;  %v2229_v60 = vsel %vm2227_vm13, %v2228_v21, %v10345_v26  ;;  %vm2327_vm15 = vcmp.eq.s32.totalorder %v11987_v0, 0  ;;  %vm2330_vm10 = vcmp.eq.s32.totalorder %v11987_v0, 2 }
 0x2b0   : > { %v2331_v14 = vxor.u32 2147483648, %v10217_v3  ;;  %v2230_v1 = vsel %vm2223_vm12, %v2226_v4, %v2229_v60  ;;  %v2329_v34 = vsel %vm2327_vm15, %v10217_v3, %v2328_v8  ;;  %vm4301_vm4 = vcmp.eq.s32.totalorder %v10169_v49, 0 }
 0x2b1   : > { %7635 = vmatmul.mubr.msk.bf16.gmra.mrb[12].mxu1 %vm4855_vm0, %v4650_v54  ;;  %vm4304_vm9 = vcmp.eq.s32.totalorder %v10169_v49, 2  ;;  %vm4300_vm8 = vcmp.lt.s32.totalorder %v10169_v49, 2  ;;  %v4303_v5 = vsel %vm4301_vm4, %v10335_v29, %v2225_v37  ;;  %v2231_v28 = vsel %vm2221_vm14, nan, %v2230_v1 }
 0x2b2   : > { %v2332_v63 = vsel %vm2330_vm10, %v2331_v14, %v10318_v17  ;;  %v4306_v62 = vsel %vm4304_vm9, %v2228_v21, %v10345_v26  ;;  %vm4405_vm6 = vcmp.eq.s32.totalorder %v11988_v32, 0  ;;  %vm2324_vm11 = vweird.f32 %v9786_v35 }
 0x2b3   : > { %v2333_v30 = vsel %vm2326_vm7, %v2329_v34, %v2332_v63  ;;  %v4307_v9 = vsel %vm4300_vm8, %v4303_v5, %v4306_v62  ;;  %v4407_v29 = vsel %vm4405_vm6, %v10217_v3, %v2328_v8  ;;  %vm4408_vm5 = vcmp.eq.s32.totalorder %v11988_v32, 2  ;;  %v11991_v8 = vld [vmem:[#allocation68_spill] sm:$0xff]  ;;  %v11992_v34 = vld [vmem:[#allocation69_spill] sm:$0xff]  ;;  %v11993_v5 = vld [vmem:[#allocation70_spill] sm:$0xff] }
 0x2b4   : > { %v4308_v49 = vsel %vm2221_vm14, nan, %v4307_v9  ;;  %v4611_v26 = vand.u32 3, %v10284_v18  ;;  %v2334_v25 = vsel %vm2324_vm11, nan, %v2333_v30  ;;  %vm4404_vm12 = vcmp.lt.s32.totalorder %v11988_v32, 2 }
 0x2b5   : > { %v4410_v24 = vsel %vm4408_vm5, %v2331_v14, %v10318_v17  ;;  %v8086_v19 = vpop.eup %8085  ;;  %v4507_v38 = vand.u32 3, %v4506_v44  ;;  %v4639_v35 = vsel %vm334_vm2, %v2231_v28, %v4308_v49  ;;  %v10769_v51 = vadd.f32 %v10755_v36, %v10142_v10 }
 0x2b6   : > { %v4411_v45 = vsel %vm4404_vm12, %v4407_v29, %v4410_v24  ;;  %v10773_v47 = vadd.f32 %v10755_v36, %v10162_v11  ;;  %vm2427_vm14 = vweird.f32 %v9935_v2  ;;  %v2431_v18 = vxor.u32 2147483648, %v10544_v16  ;;  %v11998_v24 = vld [vmem:[#allocation73_spill] sm:$0xff] }
 0x2b7   : > { %v4412_v3 = vsel %vm2324_vm11, nan, %v4411_v45  ;;  %vm2429_vm3 = vcmp.lt.s32.totalorder %v10366_v56, 2  ;;  %vm2430_vm13 = vcmp.eq.s32.totalorder %v10366_v56, 0  ;;  %vm2433_vm7 = vcmp.eq.s32.totalorder %v10366_v56, 2 }
 0x2b8   : > { %v4640_v17 = vsel %vm334_vm2, %v2334_v25, %v4412_v3  ;;  %v2432_v43 = vsel %vm2430_vm13, %v8086_v19, %v2431_v18  ;;  %v2434_v58 = vxor.u32 2147483648, %v8086_v19  ;;  %vm2530_vm15 = vweird.f32 %v9932_v46  ;;  %v11990_v46 = vld [vmem:[#allocation67_spill] sm:$0xff]  ;;  %v11997_v25 = vld [vmem:[#allocation72_spill] sm:$0xff] }
 0x2b9   : > { %v4651_v10 = vpack.c.bf16 %v4640_v17, %v4639_v35  ;;  %vm2532_vm10 = vcmp.lt.s32.totalorder %v10268_v61, 2  ;;  %vm2533_vm4 = vcmp.eq.s32.totalorder %v10268_v61, 0  ;;  %v2534_v11 = vxor.u32 2147483648, %v10429_v20  ;;  %v11999_v35 = vld [vmem:[#allocation14_spill] sm:$0xff] }
 0x2ba   : > { %vm2536_vm9 = vcmp.eq.s32.totalorder %v10268_v61, 2  ;;  %v2435_v33 = vsel %vm2433_vm7, %v2434_v58, %v10544_v16  ;;  %v2537_v42 = vxor.u32 2147483648, %v10424_v15  ;;  %vm4508_vm8 = vcmp.lt.s32.totalorder %v4507_v38, 2 }
 0x2bb   : > { %7638 = vmatprep.mubr.msk.bf16.mxu1 %vm4855_vm0, %v4651_v10  ;;  %vm4509_vm6 = vcmp.eq.s32.totalorder %v4507_v38, 0  ;;  %v2436_v55 = vsel %vm2429_vm3, %v2432_v43, %v2435_v33  ;;  %v2535_v22 = vsel %vm2533_vm4, %v10424_v15, %v2534_v11  ;;  %vm4512_vm11 = vcmp.eq.s32.totalorder %v4507_v38, 2  ;;  %v7966_v10 = vld [vmem:[%s11671_s5 + $0x8] sm:$0xff]  }
 0x2bc   : > { %v4511_v6 = vsel %vm4509_vm6, %v8086_v19, %v2431_v18  ;;  %v2437_v12 = vsel %vm2427_vm14, nan, %v2436_v55  ;;  %v2538_v31 = vsel %vm2536_vm9, %v2537_v42, %v10429_v20  ;;  %v4514_v57 = vsel %vm4512_vm11, %v2434_v58, %v10544_v16  ;;  %v12000_v18 = vld [vmem:[#allocation22_spill] sm:$0xff]  ;;  %7644 = vmatprep.subr.bf16.mxu0 %v7966_v10  ;;  %v7967_v58 = vld [vmem:[%s11671_s5 + $0x10] sm:$0xff]   ;;  %v7970_v33 = vld [vmem:[%s11671_s5 + $0x28] sm:$0xff]  }
 0x2bd   : > { %vm4612_vm5 = vcmp.lt.s32.totalorder %v4611_v26, 2  ;;  %v2539_v44 = vsel %vm2532_vm10, %v2535_v22, %v2538_v31  ;;  %v4515_v23 = vsel %vm4508_vm8, %v4511_v6, %v4514_v57  ;;  %vm4613_vm12 = vcmp.eq.s32.totalorder %v4611_v26, 0  ;;  %7645 = vmatpush3.bf16.msra.mxu0 %v7966_v10  ;;  %v7972_v55 = vld [vmem:[%s11671_s5 + $0x38] sm:$0xff]   ;;  %v10928_v22 = vld [vmem:[%s11671_s5 + $0x80] sm:$0xff]  }
 0x2be   : > { %vm4616_vm13 = vcmp.eq.s32.totalorder %v4611_v26, 2  ;;  %v2540_v56 = vsel %vm2530_vm15, nan, %v2539_v44  ;;  %v4516_v40 = vsel %vm2427_vm14, nan, %v4515_v23  ;;  %v4615_v59 = vsel %vm4613_vm12, %v10424_v15, %v2534_v11  ;;  %v11989_v15 = vld [vmem:[#allocation71_spill] sm:$0xff]  ;;  %v11995_v26 = vld [vmem:[#allocation74_spill] sm:$0xff]  ;;  %7646 = vmatprep.subr.bf16.mxu0 %v7967_v58 }
 0x2bf   : > { %v4618_v37 = vsel %vm4616_vm13, %v2537_v42, %v10429_v20  ;;  %v4641_v16 = vsel %vm334_vm2, %v2437_v12, %v4516_v40  ;;  %v5344_v21 = vpack.c.bf16 %v10773_v47, %v10769_v51  ;;  %v10816_v2 = vadd.f32 %v10755_v36, %v10204_v48  ;;  %v7969_v11 = vld [vmem:[%s11671_s5 + $0x20] sm:$0xff]   ;;  %v7971_v42 = vld [vmem:[%s11671_s5 + $0x30] sm:$0xff]  }
 0x2c0   : > { %v4619_v53 = vsel %vm4612_vm5, %v4615_v59, %v4618_v37  ;;  %v10820_v20 = vadd.f32 %v10755_v36, %v11989_v15  ;;  %v10824_v0 = vadd.f32 %v11990_v46, %v10755_v36  ;;  %v10828_v27 = vadd.f32 %v11991_v8, %v10755_v36  ;;  %v10934_v6 = vld [vmem:[%s11670_s4 + $0x1] ss:$0 sm:$0xff] }
 0x2c1   : > { %v4620_v61 = vsel %vm2530_vm15, nan, %v4619_v53  ;;  %v10836_v48 = vadd.f32 %v10755_v36, %v10240_v52  ;;  %v10840_v1 = vadd.f32 %v10755_v36, %v10259_v7  ;;  %v10844_v63 = vadd.f32 %v11992_v34, %v10755_v36  ;;  %7647 = vmatpush3.bf16.msra.mxu0 %v7967_v58 }
 0x2c2   : > { %v4642_v54 = vsel %vm334_vm2, %v2540_v56, %v4620_v61  ;;  %v5346_v60 = vpack.c.bf16 %v10820_v20, %v10816_v2  ;;  %v5345_v14 = vpack.c.bf16 %v10828_v27, %v10824_v0  ;;  %v10848_v62 = vadd.f32 %v11993_v5, %v10755_v36 }
 0x2c3   : > { %v4652_v4 = vpack.c.bf16 %v4642_v54, %v4641_v16  ;;  %v5348_v28 = vpack.c.bf16 %v10840_v1, %v10836_v48  ;;  %v10856_v52 = vadd.f32 %v10755_v36, %v10298_v41  ;;  %v10860_v7 = vadd.f32 %v10755_v36, %v10308_v13  ;;  %v11994_v41 = vld [vmem:[#allocation23_spill] sm:$0xff] }
 0x2c4   : > { %v5347_v30 = vpack.c.bf16 %v10848_v62, %v10844_v63  ;;  %v10864_v9 = vadd.f32 %v10233_v39, %v10755_v36  ;;  %v10868_v32 = vadd.f32 %v10249_v50, %v10755_v36  ;;  %v10876_v13 = vadd.f32 %v10755_v36, %v11994_v41 }
 0x2c5   : > { %7639 = vmatmul.mubr.msk.bf16.gmra.mrb[16].mxu1 %vm4855_vm0, %v4652_v4  ;;  %v5350_v49 = vpack.c.bf16 %v10860_v7, %v10856_v52  ;;  %v10880_v39 = vadd.f32 %v10755_v36, %v11995_v26  ;;  %v10884_v50 = vadd.f32 %v11997_v25, %v10755_v36  ;;  %v10888_v19 = vadd.f32 %v11998_v24, %v10755_v36 }
 0x2c6   : > { %7694 = vmatprep.mubr.bf16.mxu1 %v5344_v21  ;;  %v5349_v29 = vpack.c.bf16 %v10868_v32, %v10864_v9  ;;  %v10896_v3 = vadd.f32 %v11999_v35, %v10755_v36  ;;  %v10900_v17 = vadd.f32 %v12000_v18, %v10755_v36  ;;  %v7968_v36 = vld [vmem:[%s11671_s5 + $0x18] sm:$0xff]  }
 0x2c7   : > { %11996 = vst [vmem:[#allocation3_spill] sm:$0xff] %v10880_v39  ;;  %v5352_v38 = vpack.c.bf16 %v10880_v39, %v10876_v13  ;;  %v5351_v45 = vpack.c.bf16 %v10888_v19, %v10884_v50  ;;  %7648 = vmatprep.subr.bf16.mxu0 %v7968_v36 }
 0x2c8   : > { %v5353_v43 = vpack.c.bf16 %v10900_v17, %v10896_v3  ;;  %7649 = vmatpush3.bf16.msra.mxu0 %v7968_v36 }
 0x2c9   : > { %7650 = vmatprep.subr.bf16.mxu0 %v7969_v11 }
 0x2cc   : > { %7651 = vmatpush3.bf16.msra.mxu0 %v7969_v11 }
 0x2cd   : > { %7695 = vmatmul.mubr.bf16.vlgmr.msra.gmra.mrb[20].mxu1 %v5345_v14  ;;  %7652 = vmatprep.subr.bf16.mxu0 %v7970_v33 }
 0x2ce   : > { %7698 = vmatprep.mubr.bf16.mxu1 %v5346_v60 }
 0x2d0   : > { %7653 = vmatpush3.bf16.msra.mxu0 %v7970_v33 }
 0x2d1   : > { %7654 = vmatprep.subr.bf16.mxu0 %v7971_v42 }
 0x2d4   : > { %7655 = vmatpush3.bf16.msra.mxu0 %v7971_v42 }
 0x2d5   : > { %7699 = vmatmul.mubr.bf16.gmra.mrb[24].mxu1 %v5347_v30  ;;  %7656 = vmatprep.subr.bf16.mxu0 %v7972_v55 }
 0x2d6   : > { %7702 = vmatprep.mubr.bf16.mxu1 %v5348_v28 }
 0x2d8   : > { %7657 = vmatpush3.bf16.msra.mxu0 %v7972_v55 }
 0x2d9   : > { %7714 = vmatprep.subr.bf16.mxu0 %v10928_v22 }
 0x2dd   : > { %7703 = vmatmul.mubr.bf16.gmra.mrb[28].mxu1 %v5349_v29 }
 0x2de   : > { %7706 = vmatprep.mubr.bf16.mxu1 %v5350_v49 }
 0x2e5   : > { %7707 = vmatmul.mubr.bf16.gmra.mrb[32].mxu1 %v5351_v45 }
 0x2e6   : > { %7710 = vmatprep.mubr.bf16.mxu1 %v5352_v38 }
 0x2ed   : > { %7711 = vmatmul.mubr.bf16.gmra.mrb[36].mxu1 %v5353_v43 }
 0x34a   : > { %v7624_v12 = vpop.f32.mrb[0].mxu1 }
 0x34b   : > { %v4929_v31 = vadd.f32 %v7624_v12, %v10934_v6  ;;  %v4920_v57 = vpop.f32.mrb[1].mxu1 }
 0x34c   : > { %v4921_v44 = vadd.f32 %v10934_v6, %v4920_v57  ;;  %v7625_v23 = vpop.f32.mrb[2].mxu1  ;;  %v7974_v57 = vld [vmem:[%s11671_s5 + $0x88] sm:$0xff]  }
 0x34d   : > { %v7245_v56 = vmul.f32 -1.442695, %v4929_v31  ;;  %v4932_v40 = vadd.f32 %v7625_v23, %v10934_v6  ;;  %v4923_v59 = vpop.f32.mrb[3].mxu1 }
 0x34e   : > { %v7243_v37 = vmul.f32 -1.442695, %v4921_v44  ;;  %v4924_v53 = vadd.f32 %v10934_v6, %v4923_v59 }
 0x34f   : > { %8087 = vpow2.f32 %v7245_v56  ;;  %v7246_v16 = vmul.f32 -1.442695, %v4932_v40 }
 0x350   : > { %8089 = vpow2.f32 %v7243_v37  ;;  %v7244_v61 = vmul.f32 -1.442695, %v4924_v53 }
 0x351   : > { %8091 = vpow2.f32 %v7246_v16 }
 0x352   : > { %8093 = vpow2.f32 %v7244_v61 }
 0x359   : > { %v8088_v21 = vpop.eup %8087 }
 0x35a   : > { %v8090_v54 = vpop.eup %8089  ;;  %v5061_v4 = vadd.f32 1.0, %v8088_v21 }
 0x35b   : > { %v8092_v15 = vpop.eup %8091  ;;  %v5059_v46 = vadd.f32 1.0, %v8090_v54 }
 0x35c   : > { %v8094_v8 = vpop.eup %8093  ;;  %8095 = vrcp.f32 %v5061_v4  ;;  %v5062_v60 = vadd.f32 1.0, %v8092_v15 }
 0x35d   : > { %8097 = vrcp.f32 %v5059_v46  ;;  %v5060_v14 = vadd.f32 1.0, %v8094_v8 }
 0x35e   : > { %8099 = vrcp.f32 %v5062_v60 }
 0x35f   : > { %v7628_v34 = vpop.f32.mrb[4].mxu1  ;;  %8101 = vrcp.f32 %v5060_v14  ;;  %v7976_v14 = vld [vmem:[%s11671_s5 + $0x98] sm:$0xff]  }
 0x360   : > { %v10941_v5 = vadd.f32 %v7628_v34, %v10934_v6  ;;  %v4936_v28 = vpop.f32.mrb[5].mxu1 }
 0x361   : > { %v10944_v30 = vadd.f32 %v10934_v6, %v4936_v28  ;;  %v7629_v49 = vpop.f32.mrb[6].mxu1 }
 0x362   : > { %v7249_v29 = vmul.f32 -1.442695, %v10941_v5  ;;  %v10948_v41 = vadd.f32 %v7629_v49, %v10934_v6  ;;  %v4939_v26 = vpop.f32.mrb[7].mxu1  ;;  %v7977_v49 = vld [vmem:[%s11671_s5 + $0xa0] sm:$0xff]  }
 0x363   : > { %v7247_v25 = vmul.f32 -1.442695, %v10944_v30  ;;  %v10952_v24 = vadd.f32 %v10934_v6, %v4939_v26 }
 0x364   : > { %8103 = vpow2.f32 %v7249_v29  ;;  %v7250_v38 = vmul.f32 -1.442695, %v10948_v41 }
 0x365   : > { %8105 = vpow2.f32 %v7247_v25  ;;  %v7248_v45 = vmul.f32 -1.442695, %v10952_v24 }
 0x366   : > { %8107 = vpow2.f32 %v7250_v38  ;;  %v8096_v35 = vpop.eup %8095 }
 0x367   : > { %8109 = vpow2.f32 %v7248_v45  ;;  %v8098_v18 = vpop.eup %8097  ;;  %v5121_v58 = vmul.f32 %v8096_v35, %v4929_v31 }
 0x368   : > { %v8100_v10 = vpop.eup %8099  ;;  %v5119_v11 = vmul.f32 %v8098_v18, %v4921_v44  ;;  %v7978_v18 = vld [vmem:[%s11671_s5 + $0xa8] sm:$0xff]  }
 0x369   : > { %v8102_v43 = vpop.eup %8101  ;;  %v5122_v36 = vmul.f32 %v8100_v10, %v4932_v40  ;;  %v7975_v40 = vld [vmem:[%s11671_s5 + $0x90] sm:$0xff]  }
 0x36a   : > { %v5120_v33 = vmul.f32 %v8102_v43, %v4924_v53 }
 0x36b   : > { %v5140_v42 = vpack.c.bf16 %v5122_v36, %v5121_v58 }
 0x36c   : > { %v5139_v55 = vpack.c.bf16 %v5120_v33, %v5119_v11 }
 0x36e   : > { %v8104_v12 = vpop.eup %8103  ;;  %7658 = vmatprep.mubr.bf16.mxu0 %v5139_v55 }
 0x36f   : > { %v8106_v23 = vpop.eup %8105  ;;  %v5065_v56 = vadd.f32 1.0, %v8104_v12  ;;  %7659 = vmatmul.mubr.bf16.vlgmr.msra.gmra.mrb[20].mxu0 %v5140_v42 }
 0x370   : > { %v8108_v59 = vpop.eup %8107  ;;  %v5063_v37 = vadd.f32 1.0, %v8106_v23  ;;  %7715 = vmatpush3.bf16.msra.mxu0 %v10928_v22 }
 0x371   : > { %v8110_v16 = vpop.eup %8109  ;;  %8111 = vrcp.f32 %v5065_v56  ;;  %v5066_v61 = vadd.f32 1.0, %v8108_v59  ;;  %v7632_v44 = vpop.f32.mrb[8].mxu1  ;;  %7716 = vmatprep.subr.bf16.mxu0 %v7974_v57 }
 0x372   : > { %8113 = vrcp.f32 %v5063_v37  ;;  %v5064_v31 = vadd.f32 1.0, %v8110_v16  ;;  %v10964_v53 = vadd.f32 %v7632_v44, %v10934_v6  ;;  %v4952_v21 = vpop.f32.mrb[9].mxu1  ;;  %v7980_v16 = vld [vmem:[%s11671_s5 + $0xb8] sm:$0xff]  }
 0x373   : > { %8115 = vrcp.f32 %v5066_v61  ;;  %v10967_v54 = vadd.f32 %v10934_v6, %v4952_v21  ;;  %v7633_v4 = vpop.f32.mrb[10].mxu1 }
 0x374   : > { %8117 = vrcp.f32 %v5064_v31  ;;  %v7253_v22 = vmul.f32 -1.442695, %v10964_v53  ;;  %v10971_v15 = vadd.f32 %v7633_v4, %v10934_v6  ;;  %v4955_v46 = vpop.f32.mrb[11].mxu1  ;;  %7717 = vmatpush3.bf16.msra.mxu0 %v7974_v57 }
 0x375   : > { %v7251_v8 = vmul.f32 -1.442695, %v10967_v54  ;;  %v10975_v60 = vadd.f32 %v10934_v6, %v4955_v46  ;;  %7718 = vmatprep.subr.bf16.mxu0 %v7975_v40 }
 0x376   : > { %8119 = vpow2.f32 %v7253_v22  ;;  %v7254_v34 = vmul.f32 -1.442695, %v10971_v15 }
 0x377   : > { %8121 = vpow2.f32 %v7251_v8  ;;  %v7252_v28 = vmul.f32 -1.442695, %v10975_v60 }
 0x378   : > { %8123 = vpow2.f32 %v7254_v34  ;;  %7719 = vmatpush3.bf16.msra.mxu0 %v7975_v40 }
 0x379   : > { %8125 = vpow2.f32 %v7252_v28  ;;  %7720 = vmatprep.subr.bf16.mxu0 %v7976_v14 }
 0x37b   : > { %v8112_v29 = vpop.eup %8111 }
 0x37c   : > { %v8114_v26 = vpop.eup %8113  ;;  %7721 = vmatpush3.bf16.msra.mxu0 %v7976_v14  ;;  %v5125_v45 = vmul.f32 %v8112_v29, %v10941_v5  ;;  %v7979_v5 = vld [vmem:[%s11671_s5 + $0xb0] sm:$0xff]  }
 0x37d   : > { %v8116_v25 = vpop.eup %8115  ;;  %7722 = vmatprep.subr.bf16.mxu0 %v7977_v49  ;;  %v5123_v10 = vmul.f32 %v8114_v26, %v10944_v30 }
 0x37e   : > { %v8118_v38 = vpop.eup %8117  ;;  %v5126_v35 = vmul.f32 %v8116_v25, %v10948_v41 }
 0x37f   : > { %v5124_v43 = vmul.f32 %v8118_v38, %v10952_v24 }
 0x380   : > { %v5142_v58 = vpack.c.bf16 %v5126_v35, %v5125_v45  ;;  %v8120_v36 = vpop.eup %8119  ;;  %7723 = vmatpush3.bf16.msra.mxu0 %v7977_v49 }
 0x381   : > { %v5141_v11 = vpack.c.bf16 %v5124_v43, %v5123_v10  ;;  %v8122_v33 = vpop.eup %8121  ;;  %v5069_v42 = vadd.f32 1.0, %v8120_v36  ;;  %7724 = vmatprep.subr.bf16.mxu0 %v7978_v18 }
 0x382   : > { %v8124_v41 = vpop.eup %8123  ;;  %v5067_v55 = vadd.f32 1.0, %v8122_v33 }
 0x383   : > { %7662 = vmatprep.mubr.bf16.mxu0 %v5141_v11  ;;  %v8126_v12 = vpop.eup %8125  ;;  %8127 = vrcp.f32 %v5069_v42  ;;  %v5070_v57 = vadd.f32 1.0, %v8124_v41 }
 0x384   : > { %v7636_v30 = vpop.f32.mrb[12].mxu1  ;;  %7663 = vmatmul.mubr.bf16.gmra.mrb[24].mxu0 %v5142_v58  ;;  %8129 = vrcp.f32 %v5067_v55  ;;  %v5068_v24 = vadd.f32 1.0, %v8126_v12 }
 0x385   : > { %v10996_v23 = vadd.f32 %v7636_v30, %v10934_v6  ;;  %v4968_v56 = vpop.f32.mrb[13].mxu1  ;;  %7725 = vmatpush3.bf16.msra.mxu0 %v7978_v18  ;;  %8131 = vrcp.f32 %v5070_v57 }
 0x386   : > { %v10999_v59 = vadd.f32 %v10934_v6, %v4968_v56  ;;  %v7637_v37 = vpop.f32.mrb[14].mxu1  ;;  %7726 = vmatprep.subr.bf16.mxu0 %v7979_v5  ;;  %8133 = vrcp.f32 %v5068_v24  ;;  %v11037_v24 = vld [vmem:[%s11670_s4 + $0x3] ss:$0 sm:$0xff] }
 0x387   : > { %v7257_v61 = vmul.f32 -1.442695, %v10996_v23  ;;  %v11006_v31 = vadd.f32 %v7637_v37, %v10934_v6  ;;  %v4971_v44 = vpop.f32.mrb[15].mxu1 }
 0x388   : > { %v7255_v40 = vmul.f32 -1.442695, %v10999_v59  ;;  %v11010_v21 = vadd.f32 %v10934_v6, %v4971_v44 }
 0x389   : > { %8135 = vpow2.f32 %v7257_v61  ;;  %v7258_v4 = vmul.f32 -1.442695, %v11006_v31  ;;  %7727 = vmatpush3.bf16.msra.mxu0 %v7979_v5 }
 0x38a   : > { %8137 = vpow2.f32 %v7255_v40  ;;  %v7256_v22 = vmul.f32 -1.442695, %v11010_v21  ;;  %7728 = vmatprep.subr.bf16.mxu0 %v7980_v16 }
 0x38b   : > { %8139 = vpow2.f32 %v7258_v4 }
 0x38c   : > { %8141 = vpow2.f32 %v7256_v22 }
 0x38d   : > { %7729 = vmatpush3.bf16.msra.mxu0 %v7980_v16  ;;  %v8128_v46 = vpop.eup %8127 }
 0x38e   : > { %v8130_v8 = vpop.eup %8129  ;;  %v5129_v28 = vmul.f32 %v8128_v46, %v10964_v53 }
 0x38f   : > { %v8132_v14 = vpop.eup %8131  ;;  %v5127_v29 = vmul.f32 %v8130_v8, %v10967_v54 }
 0x390   : > { %v8134_v34 = vpop.eup %8133  ;;  %v5130_v49 = vmul.f32 %v8132_v14, %v10971_v15 }
 0x391   : > { %v5128_v26 = vmul.f32 %v8134_v34, %v10975_v60 }
 0x392   : > { %v5144_v38 = vpack.c.bf16 %v5130_v49, %v5129_v28 }
 0x393   : > { %v8136_v25 = vpop.eup %8135  ;;  %v5143_v18 = vpack.c.bf16 %v5128_v26, %v5127_v29 }
 0x394   : > { %v8138_v45 = vpop.eup %8137  ;;  %v5073_v35 = vadd.f32 1.0, %v8136_v25 }
 0x395   : > { %v8140_v10 = vpop.eup %8139  ;;  %v5071_v43 = vadd.f32 1.0, %v8138_v45  ;;  %7666 = vmatprep.mubr.bf16.mxu0 %v5143_v18 }
 0x396   : > { %v8142_v58 = vpop.eup %8141  ;;  %8143 = vrcp.f32 %v5073_v35  ;;  %v5074_v36 = vadd.f32 1.0, %v8140_v10  ;;  %7667 = vmatmul.mubr.bf16.gmra.mrb[28].mxu0 %v5144_v38 }
 0x397   : > { %8145 = vrcp.f32 %v5071_v43  ;;  %v5072_v11 = vadd.f32 1.0, %v8142_v58 }
 0x398   : > { %8147 = vrcp.f32 %v5074_v36  ;;  %v7640_v53 = vpop.f32.mrb[16].mxu1 }
 0x399   : > { %8149 = vrcp.f32 %v5072_v11  ;;  %v11019_v54 = vadd.f32 %v7640_v53, %v10934_v6  ;;  %v4984_v15 = vpop.f32.mrb[17].mxu1 }
 0x39a   : > { %v11022_v60 = vadd.f32 %v10934_v6, %v4984_v15  ;;  %v7641_v33 = vpop.f32.mrb[18].mxu1 }
 0x39b   : > { %v7261_v42 = vmul.f32 -1.442695, %v11019_v54  ;;  %v11026_v5 = vadd.f32 %v7641_v33, %v10934_v6  ;;  %v4987_v41 = vpop.f32.mrb[19].mxu1 }
 0x39c   : > { %v7259_v55 = vmul.f32 -1.442695, %v11022_v60  ;;  %v11030_v12 = vadd.f32 %v10934_v6, %v4987_v41 }
 0x39d   : > { %8151 = vpow2.f32 %v7261_v42  ;;  %v7262_v57 = vmul.f32 -1.442695, %v11026_v5 }
 0x39e   : > { %8153 = vpow2.f32 %v7259_v55  ;;  %v7260_v30 = vmul.f32 -1.442695, %v11030_v12 }
 0x39f   : > { %8155 = vpow2.f32 %v7262_v57 }
 0x3a0   : > { %v8144_v56 = vpop.eup %8143  ;;  %8157 = vpow2.f32 %v7260_v30  ;;  %v7696_v37 = vpop.f32.mrb[20].mxu1 }
 0x3a1   : > { %v8146_v16 = vpop.eup %8145  ;;  %v11040_v61 = vadd.f32 %v7696_v37, %v11037_v24  ;;  %v5461_v6 = vpop.f32.mrb[21].mxu1  ;;  %v5133_v46 = vmul.f32 %v8144_v56, %v10996_v23 }
 0x3a2   : > { %v8148_v44 = vpop.eup %8147  ;;  %v11043_v40 = vadd.f32 %v11037_v24, %v5461_v6  ;;  %v7697_v4 = vpop.f32.mrb[22].mxu1  ;;  %v5131_v49 = vmul.f32 %v8146_v16, %v10999_v59 }
 0x3a3   : > { %v8150_v22 = vpop.eup %8149  ;;  %v5134_v8 = vmul.f32 %v8148_v44, %v11006_v31  ;;  %v7301_v14 = vmul.f32 -1.442695, %v11040_v61  ;;  %v11049_v34 = vadd.f32 %v7697_v4, %v11037_v24  ;;  %v5464_v28 = vpop.f32.mrb[23].mxu1 }
 0x3a4   : > { %v5132_v29 = vmul.f32 %v8150_v22, %v11010_v21  ;;  %v7299_v26 = vmul.f32 -1.442695, %v11043_v40  ;;  %v11055_v25 = vadd.f32 %v11037_v24, %v5464_v28 }
 0x3a5   : > { %8159 = vpow2.f32 %v7301_v14  ;;  %v7302_v23 = vmul.f32 -1.442695, %v11049_v34  ;;  %v5146_v38 = vpack.c.bf16 %v5134_v8, %v5133_v46 }
 0x3a6   : > { %8161 = vpow2.f32 %v7299_v26  ;;  %v7300_v31 = vmul.f32 -1.442695, %v11055_v25  ;;  %v5145_v45 = vpack.c.bf16 %v5132_v29, %v5131_v49 }
 0x3a7   : > { %v8152_v35 = vpop.eup %8151  ;;  %8163 = vpow2.f32 %v7302_v23 }
 0x3a8   : > { %v8154_v18 = vpop.eup %8153  ;;  %v5077_v10 = vadd.f32 1.0, %v8152_v35  ;;  %8165 = vpow2.f32 %v7300_v31  ;;  %v7700_v59 = vpop.f32.mrb[24].mxu1  ;;  %7670 = vmatprep.mubr.bf16.mxu0 %v5145_v45 }
 0x3a9   : > { %v8156_v21 = vpop.eup %8155  ;;  %v5075_v43 = vadd.f32 1.0, %v8154_v18  ;;  %v11060_v58 = vadd.f32 %v7700_v59, %v11037_v24  ;;  %v5477_v36 = vpop.f32.mrb[25].mxu1  ;;  %7671 = vmatmul.mubr.bf16.gmra.mrb[32].mxu0 %v5146_v38 }
 0x3aa   : > { %v8158_v11 = vpop.eup %8157  ;;  %8167 = vrcp.f32 %v5077_v10  ;;  %v5078_v53 = vadd.f32 1.0, %v8156_v21  ;;  %v11063_v15 = vadd.f32 %v11037_v24, %v5477_v36  ;;  %v7701_v33 = vpop.f32.mrb[26].mxu1 }
 0x3ab   : > { %8169 = vrcp.f32 %v5075_v43  ;;  %v5076_v42 = vadd.f32 1.0, %v8158_v11  ;;  %v7305_v41 = vmul.f32 -1.442695, %v11060_v58  ;;  %v11067_v55 = vadd.f32 %v7701_v33, %v11037_v24  ;;  %v5480_v57 = vpop.f32.mrb[27].mxu1 }
 0x3ac   : > { %8171 = vrcp.f32 %v5078_v53  ;;  %v7303_v30 = vmul.f32 -1.442695, %v11063_v15  ;;  %v11071_v56 = vadd.f32 %v11037_v24, %v5480_v57 }
 0x3ad   : > { %8173 = vrcp.f32 %v5076_v42  ;;  %v7306_v37 = vmul.f32 -1.442695, %v11067_v55 }
 0x3ae   : > { %8175 = vpow2.f32 %v7305_v41  ;;  %v7304_v16 = vmul.f32 -1.442695, %v11071_v56 }
 0x3af   : > { %v8160_v6 = vpop.eup %8159  ;;  %8177 = vpow2.f32 %v7303_v30 }
 0x3b0   : > { %v8162_v44 = vpop.eup %8161  ;;  %v5602_v4 = vadd.f32 1.0, %v8160_v6  ;;  %8179 = vpow2.f32 %v7306_v37  ;;  %v7704_v22 = vpop.f32.mrb[28].mxu1 }
 0x3b1   : > { %v8164_v46 = vpop.eup %8163  ;;  %v5600_v8 = vadd.f32 1.0, %v8162_v44  ;;  %8181 = vpow2.f32 %v7304_v16  ;;  %v11076_v14 = vadd.f32 %v7704_v22, %v11037_v24  ;;  %v5493_v28 = vpop.f32.mrb[29].mxu1 }
 0x3b2   : > { %v8166_v49 = vpop.eup %8165  ;;  %8183 = vrcp.f32 %v5602_v4  ;;  %v5603_v29 = vadd.f32 1.0, %v8164_v46  ;;  %v11079_v26 = vadd.f32 %v11037_v24, %v5493_v28  ;;  %v7705_v23 = vpop.f32.mrb[30].mxu1 }
 0x3b3   : > { %8185 = vrcp.f32 %v5600_v8  ;;  %v5601_v38 = vadd.f32 1.0, %v8166_v49  ;;  %v7309_v31 = vmul.f32 -1.442695, %v11076_v14  ;;  %v11083_v45 = vadd.f32 %v7705_v23, %v11037_v24  ;;  %v5496_v35 = vpop.f32.mrb[31].mxu1 }
 0x3b4   : > { %v8168_v18 = vpop.eup %8167  ;;  %8187 = vrcp.f32 %v5603_v29  ;;  %v7307_v10 = vmul.f32 -1.442695, %v11079_v26  ;;  %v11087_v59 = vadd.f32 %v11037_v24, %v5496_v35 }
 0x3b5   : > { %v8170_v21 = vpop.eup %8169  ;;  %8189 = vrcp.f32 %v5601_v38  ;;  %v7310_v43 = vmul.f32 -1.442695, %v11083_v45  ;;  %v5137_v33 = vmul.f32 %v8168_v18, %v11019_v54 }
 0x3b6   : > { %v8172_v36 = vpop.eup %8171  ;;  %8191 = vpow2.f32 %v7309_v31  ;;  %v7308_v11 = vmul.f32 -1.442695, %v11087_v59  ;;  %v5135_v57 = vmul.f32 %v8170_v21, %v11022_v60 }
 0x3b7   : > { %v8174_v53 = vpop.eup %8173  ;;  %v5138_v42 = vmul.f32 %v8172_v36, %v11026_v5  ;;  %8193 = vpow2.f32 %v7307_v10 }
 0x3b8   : > { %v8176_v41 = vpop.eup %8175  ;;  %v5136_v30 = vmul.f32 %v8174_v53, %v11030_v12  ;;  %8195 = vpow2.f32 %v7310_v43  ;;  %v7708_v37 = vpop.f32.mrb[32].mxu1 }
 0x3b9   : > { %v8178_v16 = vpop.eup %8177  ;;  %v5606_v6 = vadd.f32 1.0, %v8176_v41  ;;  %8197 = vpow2.f32 %v7308_v11  ;;  %v11096_v44 = vadd.f32 %v7708_v37, %v11037_v24  ;;  %v5509_v4 = vpop.f32.mrb[33].mxu1  ;;  %v5148_v22 = vpack.c.bf16 %v5138_v42, %v5137_v33 }
 0x3ba   : > { %v8180_v46 = vpop.eup %8179  ;;  %v5604_v54 = vadd.f32 1.0, %v8178_v16  ;;  %v11099_v5 = vadd.f32 %v11037_v24, %v5509_v4  ;;  %v7709_v8 = vpop.f32.mrb[34].mxu1  ;;  %v5147_v28 = vpack.c.bf16 %v5136_v30, %v5135_v57 }
 0x3bb   : > { %v8182_v60 = vpop.eup %8181  ;;  %8199 = vrcp.f32 %v5606_v6  ;;  %v5607_v12 = vadd.f32 1.0, %v8180_v46  ;;  %v7313_v49 = vmul.f32 -1.442695, %v11096_v44  ;;  %v11103_v29 = vadd.f32 %v7709_v8, %v11037_v24  ;;  %v5512_v23 = vpop.f32.mrb[35].mxu1 }
 0x3bc   : > { %v8184_v38 = vpop.eup %8183  ;;  %8201 = vrcp.f32 %v5604_v54  ;;  %v5605_v31 = vadd.f32 1.0, %v8182_v60  ;;  %v7311_v35 = vmul.f32 -1.442695, %v11099_v5  ;;  %v11107_v18 = vadd.f32 %v11037_v24, %v5512_v23  ;;  %7674 = vmatprep.mubr.bf16.mxu0 %v5147_v28 }
 0x3bd   : > { %v8186_v10 = vpop.eup %8185  ;;  %8203 = vrcp.f32 %v5607_v12  ;;  %v7314_v21 = vmul.f32 -1.442695, %v11103_v29  ;;  %7675 = vmatmul.mubr.bf16.gmra.mrb[36].mxu0 %v5148_v22  ;;  %v5662_v53 = vmul.f32 %v8184_v38, %v11040_v61 }
 0x3be   : > { %v8188_v43 = vpop.eup %8187  ;;  %8205 = vrcp.f32 %v5605_v31  ;;  %v7312_v36 = vmul.f32 -1.442695, %v11107_v18  ;;  %v5660_v41 = vmul.f32 %v8186_v10, %v11043_v40 }
 0x3bf   : > { %v8190_v11 = vpop.eup %8189  ;;  %v5663_v33 = vmul.f32 %v8188_v43, %v11049_v34  ;;  %8207 = vpow2.f32 %v7313_v49 }
 0x3c0   : > { %v8192_v42 = vpop.eup %8191  ;;  %v5661_v57 = vmul.f32 %v8190_v11, %v11055_v25  ;;  %8209 = vpow2.f32 %v7311_v35  ;;  %v7712_v30 = vpop.f32.mrb[36].mxu1 }
 0x3c1   : > { %v8194_v37 = vpop.eup %8193  ;;  %v5681_v16 = vpack.c.bf16 %v5663_v33, %v5662_v53  ;;  %v5610_v6 = vadd.f32 1.0, %v8192_v42  ;;  %8211 = vpow2.f32 %v7314_v21  ;;  %v11116_v4 = vadd.f32 %v7712_v30, %v11037_v24  ;;  %v5525_v22 = vpop.f32.mrb[37].mxu1 }
 0x3c2   : > { %v8196_v46 = vpop.eup %8195  ;;  %v5608_v61 = vadd.f32 1.0, %v8194_v37  ;;  %8213 = vpow2.f32 %v7312_v36  ;;  %v11119_v34 = vadd.f32 %v11037_v24, %v5525_v22  ;;  %v7713_v54 = vpop.f32.mrb[38].mxu1  ;;  %v5680_v40 = vpack.c.bf16 %v5661_v57, %v5660_v41 }
 0x3c3   : > { %v8198_v8 = vpop.eup %8197  ;;  %8215 = vrcp.f32 %v5610_v6  ;;  %v5611_v25 = vadd.f32 1.0, %v8196_v46  ;;  %v7317_v28 = vmul.f32 -1.442695, %v11116_v4  ;;  %v11123_v60 = vadd.f32 %v7713_v54, %v11037_v24  ;;  %v5528_v12 = vpop.f32.mrb[39].mxu1 }
 0x3c4   : > { %8217 = vrcp.f32 %v5608_v61  ;;  %v5609_v49 = vadd.f32 1.0, %v8198_v8  ;;  %v7315_v23 = vmul.f32 -1.442695, %v11119_v34  ;;  %v11127_v38 = vadd.f32 %v11037_v24, %v5528_v12  ;;  %7730 = vmatprep.mubr.bf16.mxu0 %v5680_v40 }
 0x3c5   : > { %v8200_v31 = vpop.eup %8199  ;;  %8219 = vrcp.f32 %v5611_v25  ;;  %v7318_v35 = vmul.f32 -1.442695, %v11123_v60  ;;  %7731 = vmatmul.mubr.bf16.vlgmr.msra.gmra.mrb[40].mxu0 %v5681_v16 }
 0x3c6   : > { %v8202_v10 = vpop.eup %8201  ;;  %8221 = vrcp.f32 %v5609_v49  ;;  %v7316_v21 = vmul.f32 -1.442695, %v11127_v38  ;;  %v5666_v11 = vmul.f32 %v8200_v31, %v11060_v58 }
 0x3c7   : > { %v8204_v43 = vpop.eup %8203  ;;  %8223 = vpow2.f32 %v7317_v28  ;;  %v5664_v33 = vmul.f32 %v8202_v10, %v11063_v15 }
 0x3c8   : > { %v8206_v36 = vpop.eup %8205  ;;  %v5667_v53 = vmul.f32 %v8204_v43, %v11067_v55  ;;  %8225 = vpow2.f32 %v7315_v23 }
 0x3c9   : > { %v8208_v24 = vpop.eup %8207  ;;  %v5665_v42 = vmul.f32 %v8206_v36, %v11071_v56  ;;  %8227 = vpow2.f32 %v7318_v35 }
 0x3ca   : > { %v8210_v41 = vpop.eup %8209  ;;  %v5614_v57 = vadd.f32 1.0, %v8208_v24  ;;  %8229 = vpow2.f32 %v7316_v21  ;;  %v5683_v30 = vpack.c.bf16 %v5667_v53, %v5666_v11 }
 0x3cb   : > { %v8212_v37 = vpop.eup %8211  ;;  %v5612_v16 = vadd.f32 1.0, %v8210_v41  ;;  %v5682_v6 = vpack.c.bf16 %v5665_v42, %v5664_v33 }
 0x3cc   : > { %v8214_v22 = vpop.eup %8213  ;;  %8231 = vrcp.f32 %v5614_v57  ;;  %v5615_v46 = vadd.f32 1.0, %v8212_v37 }
 0x3cd   : > { %v8216_v58 = vpop.eup %8215  ;;  %8233 = vrcp.f32 %v5612_v16  ;;  %v5613_v55 = vadd.f32 1.0, %v8214_v22  ;;  %7734 = vmatprep.mubr.bf16.mxu0 %v5682_v6 }
 0x3ce   : > { %v8218_v61 = vpop.eup %8217  ;;  %8235 = vrcp.f32 %v5615_v46  ;;  %7735 = vmatmul.mubr.bf16.gmra.mrb[44].mxu0 %v5683_v30  ;;  %v5670_v54 = vmul.f32 %v8216_v58, %v11076_v14  ;;  %v7264_v58 = vld [vmem:[%s11670_s4 + $0x2] ss:$0 sm:$0xff] }
 0x3cf   : > { %v8220_v15 = vpop.eup %8219  ;;  %8237 = vrcp.f32 %v5613_v55  ;;  %v5668_v25 = vmul.f32 %v8218_v61, %v11079_v26 }
 0x3d0   : > { %v8222_v56 = vpop.eup %8221  ;;  %v5671_v40 = vmul.f32 %v8220_v15, %v11083_v45 }
 0x3d1   : > { %v8224_v8 = vpop.eup %8223  ;;  %v5669_v28 = vmul.f32 %v8222_v56, %v11087_v59 }
 0x3d2   : > { %v8226_v12 = vpop.eup %8225  ;;  %v5618_v49 = vadd.f32 1.0, %v8224_v8  ;;  %v5685_v23 = vpack.c.bf16 %v5671_v40, %v5670_v54  ;;  %v7985_v40 = vld [vmem:[%s11671_s5 + $0xe0] sm:$0xff]  }
 0x3d3   : > { %v8228_v31 = vpop.eup %8227  ;;  %v5616_v35 = vadd.f32 1.0, %v8226_v12  ;;  %v5684_v10 = vpack.c.bf16 %v5669_v28, %v5668_v25 }
 0x3d4   : > { %v8230_v21 = vpop.eup %8229  ;;  %8239 = vrcp.f32 %v5618_v49  ;;  %v5619_v43 = vadd.f32 1.0, %v8228_v31  ;;  %v7986_v49 = vld [vmem:[%s11671_s5 + $0xe8] sm:$0xff]   ;;  %v7988_v31 = vld [vmem:[%s11671_s5 + $0xf8] sm:$0xff]  }
 0x3d5   : > { %8241 = vrcp.f32 %v5616_v35  ;;  %v5617_v36 = vadd.f32 1.0, %v8230_v21  ;;  %7738 = vmatprep.mubr.bf16.mxu0 %v5684_v10 }
 0x3d6   : > { %v8232_v14 = vpop.eup %8231  ;;  %8243 = vrcp.f32 %v5619_v43  ;;  %7739 = vmatmul.mubr.bf16.gmra.mrb[48].mxu0 %v5685_v23  ;;  %v7987_v23 = vld [vmem:[%s11671_s5 + $0xf0] sm:$0xff]  }
 0x3d7   : > { %v8234_v45 = vpop.eup %8233  ;;  %8245 = vrcp.f32 %v5617_v36  ;;  %v5674_v59 = vmul.f32 %v8232_v14, %v11096_v44 }
 0x3d8   : > { %v8236_v26 = vpop.eup %8235  ;;  %v5672_v24 = vmul.f32 %v8234_v45, %v11099_v5 }
 0x3d9   : > { %v8238_v11 = vpop.eup %8237  ;;  %v5675_v53 = vmul.f32 %v8236_v26, %v11103_v29 }
 0x3da   : > { %v5673_v33 = vmul.f32 %v8238_v11, %v11107_v18  ;;  %v7981_v18 = vld [vmem:[%s11671_s5 + $0xc0] sm:$0xff]  }
 0x3db   : > { %v5687_v42 = vpack.c.bf16 %v5675_v53, %v5674_v59  ;;  %7750 = vmatprep.subr.bf16.mxu1 %v7981_v18 }
 0x3dc   : > { %v5686_v41 = vpack.c.bf16 %v5673_v33, %v5672_v24  ;;  %7751 = vmatpush3.bf16.msra.mxu1 %v7981_v18 }
 0x3de   : > { %v8240_v57 = vpop.eup %8239  ;;  %7742 = vmatprep.mubr.bf16.mxu0 %v5686_v41 }
 0x3df   : > { %v8242_v30 = vpop.eup %8241  ;;  %7743 = vmatmul.mubr.bf16.gmra.mrb[52].mxu0 %v5687_v42  ;;  %v5678_v6 = vmul.f32 %v8240_v57, %v11116_v4  ;;  %v7982_v4 = vld [vmem:[%s11671_s5 + $0xc8] sm:$0xff]  }
 0x3e0   : > { %v8244_v37 = vpop.eup %8243  ;;  %v5676_v44 = vmul.f32 %v8242_v30, %v11119_v34  ;;  %7752 = vmatprep.subr.bf16.mxu1 %v7982_v4  ;;  %v7983_v34 = vld [vmem:[%s11671_s5 + $0xd0] sm:$0xff]  }
 0x3e1   : > { %v8246_v16 = vpop.eup %8245  ;;  %v5679_v22 = vmul.f32 %v8244_v37, %v11123_v60  ;;  %7753 = vmatpush3.bf16.msra.mxu1 %v7982_v4  ;;  %v7984_v60 = vld [vmem:[%s11671_s5 + $0xd8] sm:$0xff]  }
 0x3e2   : > { %v5677_v29 = vmul.f32 %v8246_v16, %v11127_v38  ;;  %7754 = vmatprep.subr.bf16.mxu1 %v7983_v34 }
 0x3e3   : > { %v5689_v46 = vpack.c.bf16 %v5679_v22, %v5678_v6 }
 0x3e4   : > { %v5688_v5 = vpack.c.bf16 %v5677_v29, %v5676_v44 }
 0x3e5   : > { %7755 = vmatpush3.bf16.msra.mxu1 %v7983_v34 }
 0x3e6   : > { %7746 = vmatprep.mubr.bf16.mxu0 %v5688_v5  ;;  %7756 = vmatprep.subr.bf16.mxu1 %v7984_v60 }
 0x3e7   : > { %7747 = vmatmul.mubr.bf16.gmra.mrb[56].mxu0 %v5689_v46 }
 0x3e9   : > { %7757 = vmatpush3.bf16.msra.mxu1 %v7984_v60 }
 0x3ea   : > { %7758 = vmatprep.subr.bf16.mxu1 %v7985_v40 }
 0x3ed   : > { %7759 = vmatpush3.bf16.msra.mxu1 %v7985_v40 }
 0x3ee   : > { %7760 = vmatprep.subr.bf16.mxu1 %v7986_v49 }
 0x3f1   : > { %7761 = vmatpush3.bf16.msra.mxu1 %v7986_v49 }
 0x3f2   : > { %7762 = vmatprep.subr.bf16.mxu1 %v7987_v23 }
 0x3f5   : > { %7763 = vmatpush3.bf16.msra.mxu1 %v7987_v23 }
 0x3f6   : > { %7764 = vmatprep.subr.bf16.mxu1 %v7988_v31 }
 0x3f9   : > { %7765 = vmatpush3.bf16.msra.mxu1 %v7988_v31  ;;  %v11197_v31 = vld [vmem:[%s11670_s4 + $0x4] ss:$0 sm:$0xff] }
 0x442   : > { %v7660_v38 = vpop.f32.mrb[20].mxu0 }
 0x443   : > { %v5255_v55 = vpop.f32.mrb[21].mxu0  ;;  %v5264_v15 = vadd.f32 %v7660_v38, %v7264_v58 }
 0x444   : > { %v7661_v61 = vpop.f32.mrb[22].mxu0  ;;  %v5256_v8 = vadd.f32 %v7264_v58, %v5255_v55 }
 0x445   : > { %v5267_v56 = vadd.f32 %v7661_v61, %v7264_v58  ;;  %v5258_v54 = vpop.f32.mrb[23].mxu0 }
 0x446   : > { %v5259_v25 = vadd.f32 %v7264_v58, %v5258_v54 }
 0x447   : > { %v11165_v28 = vpack.c.bf16 %v5267_v56, %v5264_v15 }
 0x448   : > { %v11167_v12 = vpack.c.bf16 %v5259_v25, %v5256_v8 }
 0x457   : > { %v7664_v35 = vpop.f32.mrb[24].mxu0 }
 0x458   : > { %v5271_v10 = vpop.f32.mrb[25].mxu0  ;;  %v5280_v43 = vadd.f32 %v7664_v35, %v7264_v58 }
 0x459   : > { %v7665_v21 = vpop.f32.mrb[26].mxu0  ;;  %v5272_v45 = vadd.f32 %v7264_v58, %v5271_v10 }
 0x45a   : > { %v5283_v36 = vadd.f32 %v7665_v21, %v7264_v58  ;;  %v5274_v14 = vpop.f32.mrb[27].mxu0 }
 0x45b   : > { %v5275_v26 = vadd.f32 %v7264_v58, %v5274_v14 }
 0x45c   : > { %v11178_v11 = vpack.c.bf16 %v5283_v36, %v5280_v43 }
 0x45d   : > { %v11180_v59 = vpack.c.bf16 %v5275_v26, %v5272_v45 }
 0x469   : > { %v7668_v53 = vpop.f32.mrb[28].mxu0 }
 0x46a   : > { %v5287_v24 = vpop.f32.mrb[29].mxu0  ;;  %v5296_v42 = vadd.f32 %v7668_v53, %v7264_v58 }
 0x46b   : > { %v7669_v33 = vpop.f32.mrb[30].mxu0  ;;  %v5288_v30 = vadd.f32 %v7264_v58, %v5287_v24 }
 0x46c   : > { %v5299_v41 = vadd.f32 %v7669_v33, %v7264_v58  ;;  %v5290_v57 = vpop.f32.mrb[31].mxu0 }
 0x46d   : > { %v5291_v37 = vadd.f32 %v7264_v58, %v5290_v57 }
 0x46e   : > { %v11182_v16 = vpack.c.bf16 %v5299_v41, %v5296_v42 }
 0x46f   : > { %v11184_v6 = vpack.c.bf16 %v5291_v37, %v5288_v30 }
 0x47c   : > { %v7672_v22 = vpop.f32.mrb[32].mxu0 }
 0x47d   : > { %v5303_v44 = vpop.f32.mrb[33].mxu0  ;;  %v5312_v46 = vadd.f32 %v7672_v22, %v7264_v58 }
 0x47e   : > { %v7673_v29 = vpop.f32.mrb[34].mxu0  ;;  %v5304_v4 = vadd.f32 %v7264_v58, %v5303_v44 }
 0x47f   : > { %v5315_v5 = vadd.f32 %v7673_v29, %v7264_v58  ;;  %v5306_v18 = vpop.f32.mrb[35].mxu0 }
 0x480   : > { %v5307_v34 = vadd.f32 %v7264_v58, %v5306_v18 }
 0x481   : > { %v11186_v60 = vpack.c.bf16 %v5315_v5, %v5312_v46 }
 0x482   : > { %v11188_v38 = vpack.c.bf16 %v5307_v34, %v5304_v4 }
 0x490   : > { %v7676_v55 = vpop.f32.mrb[36].mxu0 }
 0x491   : > { %v5319_v61 = vpop.f32.mrb[37].mxu0  ;;  %v5328_v56 = vadd.f32 %v7676_v55, %v7264_v58 }
 0x492   : > { %v7677_v15 = vpop.f32.mrb[38].mxu0  ;;  %v5320_v8 = vadd.f32 %v7264_v58, %v5319_v61 }
 0x493   : > { %v5331_v54 = vadd.f32 %v7677_v15, %v7264_v58  ;;  %v5322_v40 = vpop.f32.mrb[39].mxu0 }
 0x494   : > { %v5323_v25 = vadd.f32 %v7264_v58, %v5322_v40 }
 0x495   : > { %v11190_v49 = vpack.c.bf16 %v5331_v54, %v5328_v56 }
 0x496   : > { %v11192_v23 = vpack.c.bf16 %v5323_v25, %v5320_v8 }
 0x498   : > { %v7732_v35 = vpop.f32.mrb[40].mxu0 }
 0x499   : > { %v11200_v10 = vadd.f32 %v7732_v35, %v11197_v31  ;;  %v5797_v21 = vpop.f32.mrb[41].mxu0 }
 0x49a   : > { %v11203_v43 = vadd.f32 %v11197_v31, %v5797_v21  ;;  %v7733_v36 = vpop.f32.mrb[42].mxu0 }
 0x49b   : > { %v7347_v58 = vmul.f32 -1.442695, %v11200_v10  ;;  %v11207_v14 = vadd.f32 %v7733_v36, %v11197_v31  ;;  %v5800_v45 = vpop.f32.mrb[43].mxu0 }
 0x49c   : > { %v7345_v26 = vmul.f32 -1.442695, %v11203_v43  ;;  %v11211_v53 = vadd.f32 %v11197_v31, %v5800_v45 }
 0x49d   : > { %8247 = vpow2.f32 %v7347_v58  ;;  %v7348_v24 = vmul.f32 -1.442695, %v11207_v14 }
 0x49e   : > { %8249 = vpow2.f32 %v7345_v26  ;;  %v7346_v33 = vmul.f32 -1.442695, %v11211_v53 }
 0x49f   : > { %8251 = vpow2.f32 %v7348_v24 }
 0x4a0   : > { %8253 = vpow2.f32 %v7346_v33 }
 0x4a1   : > { %v7736_v42 = vpop.f32.mrb[44].mxu0 }
 0x4a2   : > { %v11216_v41 = vadd.f32 %v7736_v42, %v11197_v31  ;;  %v5813_v57 = vpop.f32.mrb[45].mxu0 }
 0x4a3   : > { %v11219_v30 = vadd.f32 %v11197_v31, %v5813_v57  ;;  %v7737_v37 = vpop.f32.mrb[46].mxu0 }
 0x4a4   : > { %v7351_v22 = vmul.f32 -1.442695, %v11216_v41  ;;  %v11223_v44 = vadd.f32 %v7737_v37, %v11197_v31  ;;  %v5816_v29 = vpop.f32.mrb[47].mxu0 }
 0x4a5   : > { %v7349_v46 = vmul.f32 -1.442695, %v11219_v30  ;;  %v11227_v5 = vadd.f32 %v11197_v31, %v5816_v29 }
 0x4a6   : > { %8255 = vpow2.f32 %v7351_v22  ;;  %v7352_v18 = vmul.f32 -1.442695, %v11223_v44 }
 0x4a7   : > { %v8248_v4 = vpop.eup %8247  ;;  %8257 = vpow2.f32 %v7349_v46  ;;  %v7350_v34 = vmul.f32 -1.442695, %v11227_v5 }
 0x4a8   : > { %v8250_v55 = vpop.eup %8249  ;;  %v5938_v61 = vadd.f32 1.0, %v8248_v4  ;;  %8259 = vpow2.f32 %v7352_v18 }
 0x4a9   : > { %v8252_v15 = vpop.eup %8251  ;;  %v5936_v56 = vadd.f32 1.0, %v8250_v55  ;;  %8261 = vpow2.f32 %v7350_v34  ;;  %v7740_v54 = vpop.f32.mrb[48].mxu0 }
 0x4aa   : > { %v8254_v40 = vpop.eup %8253  ;;  %8263 = vrcp.f32 %v5938_v61  ;;  %v5939_v8 = vadd.f32 1.0, %v8252_v15  ;;  %v11232_v25 = vadd.f32 %v7740_v54, %v11197_v31  ;;  %v5829_v35 = vpop.f32.mrb[49].mxu0 }
 0x4ab   : > { %8265 = vrcp.f32 %v5936_v56  ;;  %v5937_v21 = vadd.f32 1.0, %v8254_v40  ;;  %v11235_v36 = vadd.f32 %v11197_v31, %v5829_v35  ;;  %v7741_v58 = vpop.f32.mrb[50].mxu0 }
 0x4ac   : > { %8267 = vrcp.f32 %v5939_v8  ;;  %v7355_v45 = vmul.f32 -1.442695, %v11232_v25  ;;  %v11239_v26 = vadd.f32 %v7741_v58, %v11197_v31  ;;  %v5832_v24 = vpop.f32.mrb[51].mxu0 }
 0x4ad   : > { %8269 = vrcp.f32 %v5937_v21  ;;  %v7353_v33 = vmul.f32 -1.442695, %v11235_v36  ;;  %v11243_v42 = vadd.f32 %v11197_v31, %v5832_v24 }
 0x4ae   : > { %8271 = vpow2.f32 %v7355_v45  ;;  %v7356_v57 = vmul.f32 -1.442695, %v11239_v26 }
 0x4af   : > { %8273 = vpow2.f32 %v7353_v33  ;;  %v7354_v37 = vmul.f32 -1.442695, %v11243_v42 }
 0x4b0   : > { %v8256_v22 = vpop.eup %8255  ;;  %8275 = vpow2.f32 %v7356_v57 }
 0x4b1   : > { %v8258_v29 = vpop.eup %8257  ;;  %v5942_v46 = vadd.f32 1.0, %v8256_v22  ;;  %8277 = vpow2.f32 %v7354_v37 }
 0x4b2   : > { %v8260_v18 = vpop.eup %8259  ;;  %v5940_v4 = vadd.f32 1.0, %v8258_v29  ;;  %v7744_v34 = vpop.f32.mrb[52].mxu0 }
 0x4b3   : > { %v8262_v55 = vpop.eup %8261  ;;  %8279 = vrcp.f32 %v5942_v46  ;;  %v5943_v61 = vadd.f32 1.0, %v8260_v18  ;;  %v11248_v15 = vadd.f32 %v7744_v34, %v11197_v31  ;;  %v5845_v56 = vpop.f32.mrb[53].mxu0 }
 0x4b4   : > { %v8264_v54 = vpop.eup %8263  ;;  %8281 = vrcp.f32 %v5940_v4  ;;  %v5941_v40 = vadd.f32 1.0, %v8262_v55  ;;  %v11251_v8 = vadd.f32 %v11197_v31, %v5845_v56  ;;  %v7745_v35 = vpop.f32.mrb[54].mxu0 }
 0x4b5   : > { %v8266_v21 = vpop.eup %8265  ;;  %8283 = vrcp.f32 %v5943_v61  ;;  %v7359_v58 = vmul.f32 -1.442695, %v11248_v15  ;;  %v11255_v45 = vadd.f32 %v7745_v35, %v11197_v31  ;;  %v5848_v24 = vpop.f32.mrb[55].mxu0  ;;  %v5998_v29 = vmul.f32 %v8264_v54, %v11200_v10 }
 0x4b6   : > { %v8268_v33 = vpop.eup %8267  ;;  %8285 = vrcp.f32 %v5941_v40  ;;  %v7357_v57 = vmul.f32 -1.442695, %v11251_v8  ;;  %v11259_v37 = vadd.f32 %v11197_v31, %v5848_v24  ;;  %v5996_v34 = vmul.f32 %v8266_v21, %v11203_v43 }
 0x4b7   : > { %v8270_v22 = vpop.eup %8269  ;;  %v5999_v46 = vmul.f32 %v8268_v33, %v11207_v14  ;;  %8287 = vpow2.f32 %v7359_v58  ;;  %v7360_v18 = vmul.f32 -1.442695, %v11255_v45 }
 0x4b8   : > { %v8272_v4 = vpop.eup %8271  ;;  %v5997_v55 = vmul.f32 %v8270_v22, %v11211_v53  ;;  %8289 = vpow2.f32 %v7357_v57  ;;  %v7358_v61 = vmul.f32 -1.442695, %v11259_v37 }
 0x4b9   : > { %v8274_v56 = vpop.eup %8273  ;;  %v6017_v40 = vpack.c.bf16 %v5999_v46, %v5998_v29  ;;  %v5946_v35 = vadd.f32 1.0, %v8272_v4  ;;  %8291 = vpow2.f32 %v7360_v18 }
 0x4ba   : > { %v8276_v24 = vpop.eup %8275  ;;  %v5944_v39 = vadd.f32 1.0, %v8274_v56  ;;  %8293 = vpow2.f32 %v7358_v61  ;;  %v7748_v10 = vpop.f32.mrb[56].mxu0  ;;  %v6016_v14 = vpack.c.bf16 %v5997_v55, %v5996_v34 }
 0x4bb   : > { %v8278_v54 = vpop.eup %8277  ;;  %8295 = vrcp.f32 %v5946_v35  ;;  %v5947_v58 = vadd.f32 1.0, %v8276_v24  ;;  %v11268_v33 = vadd.f32 %v7748_v10, %v11197_v31  ;;  %v5861_v43 = vpop.f32.mrb[57].mxu0 }
 0x4bc   : > { %8297 = vrcp.f32 %v5944_v39  ;;  %v5945_v53 = vadd.f32 1.0, %v8278_v54  ;;  %v11271_v21 = vadd.f32 %v11197_v31, %v5861_v43  ;;  %v7749_v57 = vpop.f32.mrb[58].mxu0  ;;  %7766 = vmatprep.mubr.bf16.mxu1 %v6016_v14 }
 0x4bd   : > { %v8280_v22 = vpop.eup %8279  ;;  %8299 = vrcp.f32 %v5947_v58  ;;  %v7363_v29 = vmul.f32 -1.442695, %v11268_v33  ;;  %v11275_v46 = vadd.f32 %v7749_v57, %v11197_v31  ;;  %v5864_v18 = vpop.f32.mrb[59].mxu0  ;;  %7767 = vmatmul.mubr.bf16.vlgmr.msra.gmra.mrb[40].mxu1 %v6017_v40 }
 0x4be   : > { %v8282_v4 = vpop.eup %8281  ;;  %8301 = vrcp.f32 %v5945_v53  ;;  %v7361_v34 = vmul.f32 -1.442695, %v11271_v21  ;;  %v11279_v39 = vadd.f32 %v11197_v31, %v5864_v18  ;;  %v6002_v35 = vmul.f32 %v8280_v22, %v11216_v41 }
 0x4bf   : > { %v8284_v55 = vpop.eup %8283  ;;  %8303 = vpow2.f32 %v7363_v29  ;;  %v7364_v61 = vmul.f32 -1.442695, %v11275_v46  ;;  %v6000_v14 = vmul.f32 %v8282_v4, %v11219_v30 }
 0x4c0   : > { %v8286_v56 = vpop.eup %8285  ;;  %v6003_v24 = vmul.f32 %v8284_v55, %v11223_v44  ;;  %8305 = vpow2.f32 %v7361_v34  ;;  %v7362_v10 = vmul.f32 -1.442695, %v11279_v39 }
 0x4c1   : > { %v8288_v40 = vpop.eup %8287  ;;  %v6001_v54 = vmul.f32 %v8286_v56, %v11227_v5  ;;  %8307 = vpow2.f32 %v7364_v61 }
 0x4c2   : > { %v8290_v31 = vpop.eup %8289  ;;  %v5950_v58 = vadd.f32 1.0, %v8288_v40  ;;  %8309 = vpow2.f32 %v7362_v10  ;;  %v6019_v43 = vpack.c.bf16 %v6003_v24, %v6002_v35 }
 0x4c3   : > { %v8292_v53 = vpop.eup %8291  ;;  %v5948_v57 = vadd.f32 1.0, %v8290_v31  ;;  %v6018_v29 = vpack.c.bf16 %v6001_v54, %v6000_v14 }
 0x4c4   : > { %v8294_v18 = vpop.eup %8293  ;;  %8311 = vrcp.f32 %v5950_v58  ;;  %v5951_v41 = vadd.f32 1.0, %v8292_v53 }
 0x4c5   : > { %v8296_v44 = vpop.eup %8295  ;;  %8313 = vrcp.f32 %v5948_v57  ;;  %v5949_v22 = vadd.f32 1.0, %v8294_v18  ;;  %7770 = vmatprep.mubr.bf16.mxu1 %v6018_v29 }
 0x4c6   : > { %v8298_v34 = vpop.eup %8297  ;;  %8315 = vrcp.f32 %v5951_v41  ;;  %7771 = vmatmul.mubr.bf16.gmra.mrb[44].mxu1 %v6019_v43  ;;  %v6006_v4 = vmul.f32 %v8296_v44, %v11232_v25 }
 0x4c7   : > { %v8300_v30 = vpop.eup %8299  ;;  %8317 = vrcp.f32 %v5949_v22  ;;  %v6004_v56 = vmul.f32 %v8298_v34, %v11235_v36 }
 0x4c8   : > { %v8302_v5 = vpop.eup %8301  ;;  %v6007_v55 = vmul.f32 %v8300_v30, %v11239_v26 }
 0x4c9   : > { %v8304_v61 = vpop.eup %8303  ;;  %v6005_v35 = vmul.f32 %v8302_v5, %v11243_v42 }
 0x4ca   : > { %v8306_v24 = vpop.eup %8305  ;;  %v5954_v10 = vadd.f32 1.0, %v8304_v61  ;;  %v6021_v40 = vpack.c.bf16 %v6007_v55, %v6006_v4 }
 0x4cb   : > { %v8308_v14 = vpop.eup %8307  ;;  %v5952_v54 = vadd.f32 1.0, %v8306_v24  ;;  %v6020_v31 = vpack.c.bf16 %v6005_v35, %v6004_v56  ;;  %v7990_v35 = vld [vmem:[%s11671_s5 + $0x108] sm:$0xff]   ;;  %v7995_v24 = vld [vmem:[%s11671_s5 + $0x130] sm:$0xff]  }
 0x4cc   : > { %v8310_v58 = vpop.eup %8309  ;;  %8319 = vrcp.f32 %v5954_v10  ;;  %v5955_v43 = vadd.f32 1.0, %v8308_v14  ;;  %v7996_v10 = vld [vmem:[%s11671_s5 + $0x138] sm:$0xff]   ;;  %v11329_v14 = vld [vmem:[%s11670_s4 + $0x5] ss:$0 sm:$0xff] }
 0x4cd   : > { %8321 = vrcp.f32 %v5952_v54  ;;  %v5953_v53 = vadd.f32 1.0, %v8310_v58  ;;  %7774 = vmatprep.mubr.bf16.mxu1 %v6020_v31 }
 0x4ce   : > { %v8312_v25 = vpop.eup %8311  ;;  %8323 = vrcp.f32 %v5955_v43  ;;  %7775 = vmatmul.mubr.bf16.gmra.mrb[48].mxu1 %v6021_v40  ;;  %v7997_v40 = vld [vmem:[%s11672_s6] sm:$0xff]  }
 0x4cf   : > { %v8314_v26 = vpop.eup %8313  ;;  %8325 = vrcp.f32 %v5953_v53  ;;  %v6010_v42 = vmul.f32 %v8312_v25, %v11248_v15  ;;  %7822 = vmatprep.subr.bf16.mxu1 %v7997_v40 }
 0x4d0   : > { %v8316_v36 = vpop.eup %8315  ;;  %v6008_v18 = vmul.f32 %v8314_v26, %v11251_v8  ;;  %7823 = vmatpush3.bf16.msra.mxu1 %v7997_v40 }
 0x4d1   : > { %v8318_v57 = vpop.eup %8317  ;;  %v6011_v29 = vmul.f32 %v8316_v36, %v11255_v45 }
 0x4d2   : > { %v6009_v41 = vmul.f32 %v8318_v57, %v11259_v37  ;;  %v7989_v37 = vld [vmem:[%s11671_s5 + $0x100] sm:$0xff]  }
 0x4d3   : > { %v6023_v44 = vpack.c.bf16 %v6011_v29, %v6010_v42  ;;  %7786 = vmatprep.subr.bf16.mxu0 %v7989_v37 }
 0x4d4   : > { %v6022_v22 = vpack.c.bf16 %v6009_v41, %v6008_v18  ;;  %7787 = vmatpush3.bf16.msra.mxu0 %v7989_v37 }
 0x4d5   : > { %7788 = vmatprep.subr.bf16.mxu0 %v7990_v35 }
 0x4d6   : > { %v8320_v34 = vpop.eup %8319  ;;  %7778 = vmatprep.mubr.bf16.mxu1 %v6022_v22 }
 0x4d7   : > { %v8322_v30 = vpop.eup %8321  ;;  %7779 = vmatmul.mubr.bf16.gmra.mrb[52].mxu1 %v6023_v44  ;;  %v6014_v55 = vmul.f32 %v8320_v34, %v11268_v33  ;;  %v7991_v33 = vld [vmem:[%s11671_s5 + $0x110] sm:$0xff]  }
 0x4d8   : > { %v8324_v5 = vpop.eup %8323  ;;  %v6012_v15 = vmul.f32 %v8322_v30, %v11271_v21  ;;  %7789 = vmatpush3.bf16.msra.mxu0 %v7990_v35  ;;  %v7992_v21 = vld [vmem:[%s11671_s5 + $0x118] sm:$0xff]  }
 0x4d9   : > { %v8326_v4 = vpop.eup %8325  ;;  %v6015_v61 = vmul.f32 %v8324_v5, %v11275_v46  ;;  %7790 = vmatprep.subr.bf16.mxu0 %v7991_v33  ;;  %v7993_v46 = vld [vmem:[%s11671_s5 + $0x120] sm:$0xff]  }
 0x4da   : > { %v6013_v45 = vmul.f32 %v8326_v4, %v11279_v39  ;;  %v7994_v39 = vld [vmem:[%s11671_s5 + $0x128] sm:$0xff]  }
 0x4db   : > { %v6025_v56 = vpack.c.bf16 %v6015_v61, %v6014_v55 }
 0x4dc   : > { %v6024_v8 = vpack.c.bf16 %v6013_v45, %v6012_v15  ;;  %7791 = vmatpush3.bf16.msra.mxu0 %v7991_v33 }
 0x4dd   : > { %7792 = vmatprep.subr.bf16.mxu0 %v7992_v21 }
 0x4de   : > { %7782 = vmatprep.mubr.bf16.mxu1 %v6024_v8 }
 0x4df   : > { %7783 = vmatmul.mubr.bf16.gmra.mrb[56].mxu1 %v6025_v56 }
 0x4e0   : > { %7793 = vmatpush3.bf16.msra.mxu0 %v7992_v21 }
 0x4e1   : > { %7794 = vmatprep.subr.bf16.mxu0 %v7993_v46 }
 0x4e4   : > { %7795 = vmatpush3.bf16.msra.mxu0 %v7993_v46 }
 0x4e5   : > { %7796 = vmatprep.subr.bf16.mxu0 %v7994_v39 }
 0x4e8   : > { %7797 = vmatpush3.bf16.msra.mxu0 %v7994_v39 }
 0x4e9   : > { %7798 = vmatprep.subr.bf16.mxu0 %v7995_v24 }
 0x4ec   : > { %7799 = vmatpush3.bf16.msra.mxu0 %v7995_v24 }
 0x4ed   : > { %7800 = vmatprep.subr.bf16.mxu0 %v7996_v10 }
 0x4f0   : > { %7801 = vmatpush3.bf16.msra.mxu0 %v7996_v10 }
 0x590   : > { %v7768_v54 = vpop.f32.mrb[40].mxu1 }
 0x591   : > { %v11332_v31 = vadd.f32 %v7768_v54, %v11329_v14  ;;  %v6133_v58 = vpop.f32.mrb[41].mxu1 }
 0x592   : > { %v11335_v43 = vadd.f32 %v11329_v14, %v6133_v58  ;;  %v7769_v53 = vpop.f32.mrb[42].mxu1 }
 0x593   : > { %v7393_v25 = vmul.f32 -1.442695, %v11332_v31  ;;  %v11339_v26 = vadd.f32 %v7769_v53, %v11329_v14  ;;  %v6136_v36 = vpop.f32.mrb[43].mxu1 }
 0x594   : > { %v7391_v57 = vmul.f32 -1.442695, %v11335_v43  ;;  %v11343_v42 = vadd.f32 %v11329_v14, %v6136_v36 }
 0x595   : > { %8327 = vpow2.f32 %v7393_v25  ;;  %v7394_v29 = vmul.f32 -1.442695, %v11339_v26 }
 0x596   : > { %8329 = vpow2.f32 %v7391_v57  ;;  %v7392_v18 = vmul.f32 -1.442695, %v11343_v42 }
 0x597   : > { %8331 = vpow2.f32 %v7394_v29 }
 0x598   : > { %8333 = vpow2.f32 %v7392_v18 }
 0x599   : > { %v7772_v41 = vpop.f32.mrb[44].mxu1 }
 0x59a   : > { %v11348_v44 = vadd.f32 %v7772_v41, %v11329_v14  ;;  %v6149_v22 = vpop.f32.mrb[45].mxu1 }
 0x59b   : > { %v11351_v34 = vadd.f32 %v11329_v14, %v6149_v22  ;;  %v7773_v30 = vpop.f32.mrb[46].mxu1 }
 0x59c   : > { %v7397_v5 = vmul.f32 -1.442695, %v11348_v44  ;;  %v11355_v4 = vadd.f32 %v7773_v30, %v11329_v14  ;;  %v6152_v55 = vpop.f32.mrb[47].mxu1 }
 0x59d   : > { %v7395_v61 = vmul.f32 -1.442695, %v11351_v34  ;;  %v11359_v15 = vadd.f32 %v11329_v14, %v6152_v55 }
 0x59e   : > { %8335 = vpow2.f32 %v7397_v5  ;;  %v7398_v45 = vmul.f32 -1.442695, %v11355_v4  ;;  %v6394_v5 = vunpack.c.l.bf16 %v11165_v28 }
 0x59f   : > { %v8328_v56 = vpop.eup %8327  ;;  %8337 = vpow2.f32 %v7395_v61  ;;  %v7396_v8 = vmul.f32 -1.442695, %v11359_v15  ;;  %v6395_v61 = vunpack.c.h.bf16 %v11165_v28 }
 0x5a0   : > { %v8330_v37 = vpop.eup %8329  ;;  %v6274_v35 = vadd.f32 1.0, %v8328_v56  ;;  %8339 = vpow2.f32 %v7398_v45 }
 0x5a1   : > { %v8332_v33 = vpop.eup %8331  ;;  %v6272_v21 = vadd.f32 1.0, %v8330_v37  ;;  %8341 = vpow2.f32 %v7396_v8  ;;  %v7776_v46 = vpop.f32.mrb[48].mxu1 }
 0x5a2   : > { %v8334_v39 = vpop.eup %8333  ;;  %8343 = vrcp.f32 %v6274_v35  ;;  %v6275_v24 = vadd.f32 1.0, %v8332_v33  ;;  %v11364_v10 = vadd.f32 %v7776_v46, %v11329_v14  ;;  %v6165_v40 = vpop.f32.mrb[49].mxu1 }
 0x5a3   : > { %8345 = vrcp.f32 %v6272_v21  ;;  %v6273_v54 = vadd.f32 1.0, %v8334_v39  ;;  %v11367_v58 = vadd.f32 %v11329_v14, %v6165_v40  ;;  %v7777_v53 = vpop.f32.mrb[50].mxu1 }
 0x5a4   : > { %8347 = vrcp.f32 %v6275_v24  ;;  %v7401_v25 = vmul.f32 -1.442695, %v11364_v10  ;;  %v11371_v36 = vadd.f32 %v7777_v53, %v11329_v14  ;;  %v6168_v57 = vpop.f32.mrb[51].mxu1 }
 0x5a5   : > { %8349 = vrcp.f32 %v6273_v54  ;;  %v7399_v29 = vmul.f32 -1.442695, %v11367_v58  ;;  %v11375_v18 = vadd.f32 %v11329_v14, %v6168_v57 }
 0x5a6   : > { %8351 = vpow2.f32 %v7401_v25  ;;  %v7402_v41 = vmul.f32 -1.442695, %v11371_v36 }
 0x5a7   : > { %8353 = vpow2.f32 %v7399_v29  ;;  %v7400_v22 = vmul.f32 -1.442695, %v11375_v18 }
 0x5a8   : > { %v8336_v30 = vpop.eup %8335  ;;  %8355 = vpow2.f32 %v7402_v41 }
 0x5a9   : > { %v8338_v55 = vpop.eup %8337  ;;  %v6278_v56 = vadd.f32 1.0, %v8336_v30  ;;  %8357 = vpow2.f32 %v7400_v22 }
 0x5aa   : > { %v8340_v8 = vpop.eup %8339  ;;  %v6276_v21 = vadd.f32 1.0, %v8338_v55  ;;  %v7780_v46 = vpop.f32.mrb[52].mxu1 }
 0x5ab   : > { %v8342_v39 = vpop.eup %8341  ;;  %8359 = vrcp.f32 %v6278_v56  ;;  %v6279_v40 = vadd.f32 1.0, %v8340_v8  ;;  %v11387_v54 = vadd.f32 %v7780_v46, %v11329_v14  ;;  %v6181_v53 = vpop.f32.mrb[53].mxu1 }
 0x5ac   : > { %v8344_v25 = vpop.eup %8343  ;;  %8361 = vrcp.f32 %v6276_v21  ;;  %v6277_v29 = vadd.f32 1.0, %v8342_v39  ;;  %v11391_v41 = vadd.f32 %v11329_v14, %v6181_v53  ;;  %v7781_v22 = vpop.f32.mrb[54].mxu1 }
 0x5ad   : > { %v8346_v30 = vpop.eup %8345  ;;  %v6334_v55 = vmul.f32 %v8344_v25, %v11332_v31  ;;  %8363 = vrcp.f32 %v6279_v40  ;;  %v7405_v56 = vmul.f32 -1.442695, %v11387_v54  ;;  %v11396_v8 = vadd.f32 %v7781_v22, %v11329_v14  ;;  %v6184_v46 = vpop.f32.mrb[55].mxu1 }
 0x5ae   : > { %v8348_v33 = vpop.eup %8347  ;;  %v6332_v35 = vmul.f32 %v8346_v30, %v11335_v43  ;;  %8365 = vrcp.f32 %v6277_v29  ;;  %v7403_v21 = vmul.f32 -1.442695, %v11391_v41  ;;  %v11401_v39 = vadd.f32 %v11329_v14, %v6184_v46 }
 0x5af   : > { %v8350_v53 = vpop.eup %8349  ;;  %v6354_v57 = vadd.f32 %v6334_v55, %v10824_v0  ;;  %v6335_v31 = vmul.f32 %v8348_v33, %v11339_v26  ;;  %8367 = vpow2.f32 %v7405_v56  ;;  %v7406_v40 = vmul.f32 -1.442695, %v11396_v8 }
 0x5b0   : > { %v8352_v25 = vpop.eup %8351  ;;  %v6352_v22 = vadd.f32 %v6332_v35, %v10769_v51  ;;  %v6333_v24 = vmul.f32 %v8350_v53, %v11343_v42  ;;  %8369 = vpow2.f32 %v7403_v21  ;;  %v7404_v43 = vmul.f32 -1.442695, %v11401_v39 }
 0x5b1   : > { %v8354_v29 = vpop.eup %8353  ;;  %v6374_v30 = vmul.f32 0.70710677, %v6354_v57  ;;  %v6355_v46 = vadd.f32 %v6335_v31, %v10828_v27  ;;  %v6282_v37 = vadd.f32 1.0, %v8352_v25  ;;  %8371 = vpow2.f32 %v7406_v40 }
 0x5b2   : > { %v8356_v0 = vpop.eup %8355  ;;  %v6372_v55 = vmul.f32 0.70710677, %v6352_v22  ;;  %v6353_v26 = vadd.f32 %v6333_v24, %v10773_v47  ;;  %v6280_v33 = vadd.f32 1.0, %v8354_v29  ;;  %8373 = vpow2.f32 %v7404_v43  ;;  %v7784_v56 = vpop.f32.mrb[56].mxu1 }
 0x5b3   : > { %v8358_v45 = vpop.eup %8357  ;;  %v11411_v51 = vadd.f32 %v6394_v5, %v6374_v30  ;;  %v6375_v42 = vmul.f32 0.70710677, %v6355_v46  ;;  %8375 = vrcp.f32 %v6282_v37  ;;  %v6283_v35 = vadd.f32 1.0, %v8356_v0  ;;  %v6197_v21 = vpop.f32.mrb[57].mxu1 }
 0x5b4   : > { %v6373_v53 = vmul.f32 0.70710677, %v6353_v26  ;;  %8377 = vrcp.f32 %v6280_v33  ;;  %v6281_v57 = vadd.f32 1.0, %v8358_v45  ;;  %v11414_v27 = vadd.f32 %v7784_v56, %v11329_v14  ;;  %v7785_v31 = vpop.f32.mrb[58].mxu1 }
 0x5b5   : > { %v8360_v40 = vpop.eup %8359  ;;  %v6415_v47 = vadd.f32 %v6395_v61, %v6375_v42  ;;  %8379 = vrcp.f32 %v6283_v35  ;;  %v11419_v24 = vadd.f32 %v11329_v14, %v6197_v21  ;;  %v11422_v5 = vadd.f32 %v7785_v31, %v11329_v14  ;;  %v6200_v37 = vpop.f32.mrb[59].mxu1 }
 0x5b6   : > { %v8362_v25 = vpop.eup %8361  ;;  %v6338_v22 = vmul.f32 %v8360_v40, %v11348_v44  ;;  %8381 = vrcp.f32 %v6281_v57  ;;  %v7409_v45 = vmul.f32 -1.442695, %v11414_v27  ;;  %v11427_v43 = vadd.f32 %v11329_v14, %v6200_v37 }
 0x5b7   : > { %v8364_v29 = vpop.eup %8363  ;;  %v6433_v28 = vpack.c.bf16 %v6415_v47, %v11411_v51  ;;  %v6336_v61 = vmul.f32 %v8362_v25, %v11351_v34  ;;  %v7407_v30 = vmul.f32 -1.442695, %v11419_v24  ;;  %v7410_v46 = vmul.f32 -1.442695, %v11422_v5 }
 0x5b8   : > { %v8366_v0 = vpop.eup %8365  ;;  %v6358_v26 = vadd.f32 %v6338_v22, %v10844_v63  ;;  %v6339_v44 = vmul.f32 %v8364_v29, %v11355_v4  ;;  %8383 = vpow2.f32 %v7409_v45  ;;  %v7408_v33 = vmul.f32 -1.442695, %v11427_v43 }
 0x5b9   : > { %v8368_v56 = vpop.eup %8367  ;;  %v6356_v14 = vadd.f32 %v6336_v61, %v10816_v2  ;;  %v6337_v42 = vmul.f32 %v8366_v0, %v11359_v15  ;;  %8385 = vpow2.f32 %v7407_v30  ;;  %v12001_v34 = vunpack.c.l.bf16 %v11167_v12 }
 0x5ba   : > { %v8370_v35 = vpop.eup %8369  ;;  %v6378_v21 = vmul.f32 0.70710677, %v6358_v26  ;;  %v6359_v57 = vadd.f32 %v6339_v44, %v10848_v62  ;;  %v6286_v31 = vadd.f32 1.0, %v8368_v56  ;;  %8387 = vpow2.f32 %v7410_v46 }
 0x5bb   : > { %v6412_v51 = vadd.f32 %v12001_v34, %v6372_v55  ;;  %v8372_v63 = vpop.eup %8371  ;;  %v6376_v4 = vmul.f32 0.70710677, %v6356_v14  ;;  %v6357_v40 = vadd.f32 %v6337_v42, %v10820_v20  ;;  %v6284_v47 = vadd.f32 1.0, %v8370_v35 }
 0x5bc   : > { %8389 = vpow2.f32 %v7408_v33  ;;  %v8374_v37 = vpop.eup %8373  ;;  %v6379_v2 = vmul.f32 0.70710677, %v6359_v57  ;;  %v6287_v15 = vadd.f32 1.0, %v8372_v63  ;;  %v12002_v25 = vunpack.c.h.bf16 %v11167_v12 }
 0x5bd   : > { %8391 = vrcp.f32 %v6286_v31  ;;  %v8376_v55 = vpop.eup %8375  ;;  %v6377_v45 = vmul.f32 0.70710677, %v6357_v40  ;;  %v6285_v29 = vadd.f32 1.0, %v8374_v37  ;;  %v12003_v62 = vunpack.c.l.bf16 %v11180_v59 }
 0x5be   : > { %v6413_v22 = vadd.f32 %v12002_v25, %v6373_v53  ;;  %8393 = vrcp.f32 %v6284_v47  ;;  %v8378_v30 = vpop.eup %8377  ;;  %v6342_v46 = vmul.f32 %v8376_v55, %v11364_v10  ;;  %v12004_v0 = vunpack.c.l.bf16 %v11178_v11 }
 0x5bf   : > { %v6416_v61 = vadd.f32 %v12003_v62, %v6376_v4  ;;  %8395 = vrcp.f32 %v6287_v15  ;;  %v8380_v44 = vpop.eup %8379  ;;  %v6340_v33 = vmul.f32 %v8378_v30, %v11367_v58  ;;  %v12005_v12 = vunpack.c.h.bf16 %v11180_v59 }
 0x5c0   : > { %v6432_v20 = vpack.c.bf16 %v6413_v22, %v6412_v51  ;;  %v6418_v26 = vadd.f32 %v12004_v0, %v6378_v21  ;;  %8397 = vrcp.f32 %v6285_v29  ;;  %v12006_v56 = vunpack.c.h.bf16 %v11178_v11  ;;  %v8382_v42 = vpop.eup %8381 }
 0x5c1   : > { %v6417_v53 = vadd.f32 %v12005_v12, %v6377_v45  ;;  %v6362_v34 = vadd.f32 %v6342_v46, %v10864_v9  ;;  %v6343_v10 = vmul.f32 %v8380_v44, %v11371_v36  ;;  %v6360_v51 = vadd.f32 %v6340_v33, %v10836_v48 }
 0x5c2   : > { %v6419_v14 = vadd.f32 %v12006_v56, %v6379_v2  ;;  %7802 = vmatprep.mubr.bf16.mxu0 %v6432_v20  ;;  %v6341_v35 = vmul.f32 %v8382_v42, %v11375_v18  ;;  %v8384_v57 = vpop.eup %8383  ;;  %v6402_v59 = vunpack.c.l.bf16 %v11182_v16  ;;  %v6403_v31 = vunpack.c.h.bf16 %v11182_v16 }
 0x5c3   : > { %7803 = vmatmul.mubr.bf16.vlgmr.msra.gmra.mrb[60].mxu0 %v6433_v28  ;;  %v6434_v21 = vpack.c.bf16 %v6417_v53, %v6416_v61  ;;  %v6382_v11 = vmul.f32 0.70710677, %v6362_v34  ;;  %v6363_v63 = vadd.f32 %v6343_v10, %v10868_v32  ;;  %v8386_v4 = vpop.eup %8385  ;;  %v6400_v9 = vunpack.c.l.bf16 %v11184_v6 }
 0x5c4   : > { %v6435_v58 = vpack.c.bf16 %v6419_v14, %v6418_v26  ;;  %v6380_v36 = vmul.f32 0.70710677, %v6360_v51  ;;  %v6361_v40 = vadd.f32 %v6341_v35, %v10840_v1  ;;  %v6290_v48 = vadd.f32 1.0, %v8384_v57  ;;  %v8388_v18 = vpop.eup %8387 }
 0x5c5   : > { %7806 = vmatprep.mubr.bf16.mxu0 %v6434_v21  ;;  %v6401_v28 = vunpack.c.h.bf16 %v11184_v6  ;;  %v6383_v47 = vmul.f32 0.70710677, %v6363_v63  ;;  %v6288_v37 = vadd.f32 1.0, %v8386_v4  ;;  %v6422_v2 = vadd.f32 %v6402_v59, %v6382_v11 }
 0x5c6   : > { %v8390_v15 = vpop.eup %8389  ;;  %v6381_v25 = vmul.f32 0.70710677, %v6361_v40  ;;  %8399 = vrcp.f32 %v6290_v48  ;;  %v6291_v16 = vadd.f32 1.0, %v8388_v18  ;;  %v6420_v22 = vadd.f32 %v6400_v9, %v6380_v36  ;;  %v12007_v40 = vld [vmem:[#allocation3_spill] sm:$0xff] }
 0x5c7   : > { %v8392_v32 = vpop.eup %8391  ;;  %8401 = vrcp.f32 %v6288_v37  ;;  %v6289_v55 = vadd.f32 1.0, %v8390_v15  ;;  %v6423_v45 = vadd.f32 %v6403_v31, %v6383_v47  ;;  %v6405_v34 = vunpack.c.h.bf16 %v11188_v38 }
 0x5c8   : > { %v8394_v29 = vpop.eup %8393  ;;  %v6346_v1 = vmul.f32 %v8392_v32, %v11387_v54  ;;  %8403 = vrcp.f32 %v6291_v16  ;;  %v6421_v62 = vadd.f32 %v6401_v28, %v6381_v25  ;;  %v6406_v54 = vunpack.c.l.bf16 %v11186_v60  ;;  %v8001_v25 = vld [vmem:[%s11672_s6 + $0x20] sm:$0xff]   ;;  %v8002_v16 = vld [vmem:[%s11672_s6 + $0x28] sm:$0xff]   ;;  %v8004_v32 = vld [vmem:[%s11672_s6 + $0x38] sm:$0xff]  }
 0x5c9   : > { %v8396_v61 = vpop.eup %8395  ;;  %v6344_v6 = vmul.f32 %v8394_v29, %v11391_v41  ;;  %8405 = vrcp.f32 %v6289_v55  ;;  %v6437_v30 = vpack.c.bf16 %v6423_v45, %v6422_v2  ;;  %v6404_v41 = vunpack.c.l.bf16 %v11188_v38  ;;  %v11512_v55 = vld [vmem:[%s11670_s4 + $0x6] ss:$0 sm:$0xff] }
 0x5ca   : > { %v8398_v46 = vpop.eup %8397  ;;  %v6366_v20 = vadd.f32 %v6346_v1, %v10884_v50  ;;  %v6347_v0 = vmul.f32 %v8396_v61, %v11396_v8  ;;  %v6436_v26 = vpack.c.bf16 %v6421_v62, %v6420_v22  ;;  %v6407_v50 = vunpack.c.h.bf16 %v11186_v60  ;;  %v8003_v22 = vld [vmem:[%s11672_s6 + $0x30] sm:$0xff]  }
 0x5cb   : > { %7807 = vmatmul.mubr.bf16.gmra.mrb[64].mxu0 %v6435_v58  ;;  %v6364_v44 = vadd.f32 %v6344_v6, %v10856_v52  ;;  %v6345_v33 = vmul.f32 %v8398_v46, %v11401_v39  ;;  %v6410_v4 = vunpack.c.l.bf16 %v11190_v49  ;;  %v6409_v28 = vunpack.c.h.bf16 %v11192_v23 }
 0x5cc   : > { %v6386_v12 = vmul.f32 0.70710677, %v6366_v20  ;;  %v6367_v53 = vadd.f32 %v6347_v0, %v10888_v19  ;;  %7810 = vmatprep.mubr.bf16.mxu0 %v6436_v26 }
 0x5cd   : > { %v6384_v56 = vmul.f32 0.70710677, %v6364_v44  ;;  %v6365_v14 = vadd.f32 %v6345_v33, %v10860_v7 }
 0x5ce   : > { %v6387_v8 = vmul.f32 0.70710677, %v6367_v53  ;;  %v6426_v42 = vadd.f32 %v6406_v54, %v6386_v12 }
 0x5cf   : > { %v6385_v52 = vmul.f32 0.70710677, %v6365_v14  ;;  %v6424_v10 = vadd.f32 %v6404_v41, %v6384_v56 }
 0x5d0   : > { %v8400_v39 = vpop.eup %8399  ;;  %v6427_v51 = vadd.f32 %v6407_v50, %v6387_v8 }
 0x5d1   : > { %v8402_v35 = vpop.eup %8401  ;;  %v6350_v21 = vmul.f32 %v8400_v39, %v11414_v27  ;;  %v6425_v19 = vadd.f32 %v6405_v34, %v6385_v52 }
 0x5d2   : > { %v8404_v58 = vpop.eup %8403  ;;  %v6348_v57 = vmul.f32 %v8402_v35, %v11419_v24  ;;  %v6439_v59 = vpack.c.bf16 %v6427_v51, %v6426_v42  ;;  %v6408_v24 = vunpack.c.l.bf16 %v11192_v23  ;;  %v8000_v23 = vld [vmem:[%s11672_s6 + $0x18] sm:$0xff]  }
 0x5d3   : > { %7811 = vmatmul.mubr.bf16.gmra.mrb[68].mxu0 %v6437_v30  ;;  %v8406_v7 = vpop.eup %8405  ;;  %v6370_v60 = vadd.f32 %v6350_v21, %v10896_v3  ;;  %v6351_v31 = vmul.f32 %v8404_v58, %v11422_v5  ;;  %v6438_v11 = vpack.c.bf16 %v6425_v19, %v6424_v10  ;;  %v6411_v3 = vunpack.c.h.bf16 %v11190_v49  ;;  %v7999_v49 = vld [vmem:[%s11672_s6 + $0x10] sm:$0xff]  }
 0x5d4   : > { %v6368_v38 = vadd.f32 %v6348_v57, %v10876_v13  ;;  %v6349_v63 = vmul.f32 %v8406_v7, %v11427_v43 }
 0x5d5   : > { %v6390_v9 = vmul.f32 0.70710677, %v6370_v60  ;;  %v6371_v27 = vadd.f32 %v6351_v31, %v10900_v17  ;;  %7814 = vmatprep.mubr.bf16.mxu0 %v6438_v11  ;;  %v7998_v17 = vld [vmem:[%s11672_s6 + $0x8] sm:$0xff]  }
 0x5d6   : > { %v6388_v36 = vmul.f32 0.70710677, %v6368_v38  ;;  %v6369_v48 = vadd.f32 %v6349_v63, %v12007_v40  ;;  %7824 = vmatprep.subr.bf16.mxu1 %v7998_v17 }
 0x5d7   : > { %v6391_v18 = vmul.f32 0.70710677, %v6371_v27  ;;  %v6430_v5 = vadd.f32 %v6410_v4, %v6390_v9  ;;  %7825 = vmatpush3.bf16.msra.mxu1 %v7998_v17 }
 0x5d8   : > { %v6389_v13 = vmul.f32 0.70710677, %v6369_v48  ;;  %v6428_v47 = vadd.f32 %v6408_v24, %v6388_v36  ;;  %7826 = vmatprep.subr.bf16.mxu1 %v7999_v49 }
 0x5d9   : > { %v6431_v43 = vadd.f32 %v6411_v3, %v6391_v18 }
 0x5da   : > { %v6429_v37 = vadd.f32 %v6409_v28, %v6389_v13 }
 0x5db   : > { %7815 = vmatmul.mubr.bf16.gmra.mrb[72].mxu0 %v6439_v59  ;;  %v6441_v2 = vpack.c.bf16 %v6431_v43, %v6430_v5  ;;  %7827 = vmatpush3.bf16.msra.mxu1 %v7999_v49 }
 0x5dc   : > { %v6440_v15 = vpack.c.bf16 %v6429_v37, %v6428_v47  ;;  %7828 = vmatprep.subr.bf16.mxu1 %v8000_v23 }
 0x5de   : > { %7818 = vmatprep.mubr.bf16.mxu0 %v6440_v15 }
 0x5df   : > { %7829 = vmatpush3.bf16.msra.mxu1 %v8000_v23 }
 0x5e0   : > { %7830 = vmatprep.subr.bf16.mxu1 %v8001_v25 }
 0x5e3   : > { %7819 = vmatmul.mubr.bf16.gmra.mrb[76].mxu0 %v6441_v2  ;;  %7831 = vmatpush3.bf16.msra.mxu1 %v8001_v25 }
 0x5e4   : > { %7832 = vmatprep.subr.bf16.mxu1 %v8002_v16 }
 0x5e7   : > { %7833 = vmatpush3.bf16.msra.mxu1 %v8002_v16 }
 0x5e8   : > { %7834 = vmatprep.subr.bf16.mxu1 %v8003_v22 }
 0x5eb   : > { %7835 = vmatpush3.bf16.msra.mxu1 %v8003_v22 }
 0x5ec   : > { %7836 = vmatprep.subr.bf16.mxu1 %v8004_v32 }
 0x5ef   : > { %7837 = vmatpush3.bf16.msra.mxu1 %v8004_v32 }
 0x696   : > { %v7804_v45 = vpop.f32.mrb[60].mxu0 }
 0x697   : > { %v11515_v29 = vadd.f32 %v7804_v45, %v11512_v55  ;;  %v6549_v1 = vpop.f32.mrb[61].mxu0 }
 0x698   : > { %v11518_v62 = vadd.f32 %v11512_v55, %v6549_v1  ;;  %v7805_v61 = vpop.f32.mrb[62].mxu0 }
 0x699   : > { %v7439_v6 = vmul.f32 -1.442695, %v11515_v29  ;;  %v11522_v30 = vadd.f32 %v7805_v61, %v11512_v55  ;;  %v6552_v46 = vpop.f32.mrb[63].mxu0 }
 0x69a   : > { %v7437_v20 = vmul.f32 -1.442695, %v11518_v62  ;;  %v11526_v0 = vadd.f32 %v11512_v55, %v6552_v46 }
 0x69b   : > { %8407 = vpow2.f32 %v7439_v6  ;;  %v7440_v26 = vmul.f32 -1.442695, %v11522_v30 }
 0x69c   : > { %8409 = vpow2.f32 %v7437_v20  ;;  %v7438_v44 = vmul.f32 -1.442695, %v11526_v0 }
 0x69d   : > { %8411 = vpow2.f32 %v7440_v26 }
 0x69e   : > { %8413 = vpow2.f32 %v7438_v44  ;;  %v7808_v33 = vpop.f32.mrb[64].mxu0 }
 0x69f   : > { %v11531_v54 = vadd.f32 %v7808_v33, %v11512_v55  ;;  %v6565_v12 = vpop.f32.mrb[65].mxu0 }
 0x6a0   : > { %v11534_v53 = vadd.f32 %v11512_v55, %v6565_v12  ;;  %v7809_v41 = vpop.f32.mrb[66].mxu0 }
 0x6a1   : > { %v7443_v56 = vmul.f32 -1.442695, %v11531_v54  ;;  %v11538_v14 = vadd.f32 %v7809_v41, %v11512_v55  ;;  %v6568_v50 = vpop.f32.mrb[67].mxu0 }
 0x6a2   : > { %v7441_v8 = vmul.f32 -1.442695, %v11534_v53  ;;  %v11542_v42 = vadd.f32 %v11512_v55, %v6568_v50 }
 0x6a3   : > { %8415 = vpow2.f32 %v7443_v56  ;;  %v7444_v34 = vmul.f32 -1.442695, %v11538_v14 }
 0x6a4   : > { %8417 = vpow2.f32 %v7441_v8  ;;  %v7442_v52 = vmul.f32 -1.442695, %v11542_v42 }
 0x6a5   : > { %v8408_v10 = vpop.eup %8407  ;;  %8419 = vpow2.f32 %v7444_v34 }
 0x6a6   : > { %v8410_v39 = vpop.eup %8409  ;;  %v6690_v51 = vadd.f32 1.0, %v8408_v10  ;;  %8421 = vpow2.f32 %v7442_v52  ;;  %v7812_v35 = vpop.f32.mrb[68].mxu0 }
 0x6a7   : > { %v8412_v21 = vpop.eup %8411  ;;  %v6688_v19 = vadd.f32 1.0, %v8410_v39  ;;  %v11547_v58 = vadd.f32 %v7812_v35, %v11512_v55  ;;  %v6581_v57 = vpop.f32.mrb[69].mxu0 }
 0x6a8   : > { %v8414_v59 = vpop.eup %8413  ;;  %8423 = vrcp.f32 %v6690_v51  ;;  %v6691_v7 = vadd.f32 1.0, %v8412_v21  ;;  %v11550_v60 = vadd.f32 %v11512_v55, %v6581_v57  ;;  %v7813_v31 = vpop.f32.mrb[70].mxu0 }
 0x6a9   : > { %8425 = vrcp.f32 %v6688_v19  ;;  %v6689_v11 = vadd.f32 1.0, %v8414_v59  ;;  %v7447_v38 = vmul.f32 -1.442695, %v11547_v58  ;;  %v11554_v63 = vadd.f32 %v7813_v31, %v11512_v55  ;;  %v6584_v4 = vpop.f32.mrb[71].mxu0 }
 0x6aa   : > { %8427 = vrcp.f32 %v6691_v7  ;;  %v7445_v9 = vmul.f32 -1.442695, %v11550_v60  ;;  %v11558_v27 = vadd.f32 %v11512_v55, %v6584_v4 }
 0x6ab   : > { %8429 = vrcp.f32 %v6689_v11  ;;  %v7448_v24 = vmul.f32 -1.442695, %v11554_v63 }
 0x6ac   : > { %8431 = vpow2.f32 %v7447_v38  ;;  %v7446_v36 = vmul.f32 -1.442695, %v11558_v27 }
 0x6ad   : > { %v8416_v40 = vpop.eup %8415  ;;  %8433 = vpow2.f32 %v7445_v9 }
 0x6ae   : > { %v8418_v48 = vpop.eup %8417  ;;  %v6694_v3 = vadd.f32 1.0, %v8416_v40  ;;  %8435 = vpow2.f32 %v7448_v24  ;;  %v7816_v18 = vpop.f32.mrb[72].mxu0 }
 0x6af   : > { %v8420_v5 = vpop.eup %8419  ;;  %v6692_v28 = vadd.f32 1.0, %v8418_v48  ;;  %8437 = vpow2.f32 %v7446_v36  ;;  %v11563_v13 = vadd.f32 %v7816_v18, %v11512_v55  ;;  %v6597_v47 = vpop.f32.mrb[73].mxu0 }
 0x6b0   : > { %v8422_v43 = vpop.eup %8421  ;;  %8439 = vrcp.f32 %v6694_v3  ;;  %v6695_v37 = vadd.f32 1.0, %v8420_v5  ;;  %v11566_v2 = vadd.f32 %v11512_v55, %v6597_v47  ;;  %v7817_v15 = vpop.f32.mrb[74].mxu0 }
 0x6b1   : > { %8441 = vrcp.f32 %v6692_v28  ;;  %v6693_v17 = vadd.f32 1.0, %v8422_v43  ;;  %v7451_v49 = vmul.f32 -1.442695, %v11563_v13  ;;  %v11570_v23 = vadd.f32 %v7817_v15, %v11512_v55  ;;  %v6600_v25 = vpop.f32.mrb[75].mxu0 }
 0x6b2   : > { %v8424_v16 = vpop.eup %8423  ;;  %8443 = vrcp.f32 %v6695_v37  ;;  %v7449_v22 = vmul.f32 -1.442695, %v11566_v2  ;;  %v11574_v32 = vadd.f32 %v11512_v55, %v6600_v25 }
 0x6b3   : > { %v8426_v45 = vpop.eup %8425  ;;  %8445 = vrcp.f32 %v6693_v17  ;;  %v7452_v1 = vmul.f32 -1.442695, %v11570_v23  ;;  %v6750_v20 = vmul.f32 %v8424_v16, %v11515_v29 }
 0x6b4   : > { %v8428_v61 = vpop.eup %8427  ;;  %8447 = vpow2.f32 %v7451_v49  ;;  %v7450_v6 = vmul.f32 -1.442695, %v11574_v32  ;;  %v6748_v33 = vmul.f32 %v8426_v45, %v11518_v62 }
 0x6b5   : > { %v8430_v46 = vpop.eup %8429  ;;  %v6751_v26 = vmul.f32 %v8428_v61, %v11522_v30  ;;  %8449 = vpow2.f32 %v7449_v22 }
 0x6b6   : > { %v8432_v44 = vpop.eup %8431  ;;  %v6749_v12 = vmul.f32 %v8430_v46, %v11526_v0  ;;  %8451 = vpow2.f32 %v7452_v1  ;;  %v7820_v41 = vpop.f32.mrb[76].mxu0 }
 0x6b7   : > { %v8434_v56 = vpop.eup %8433  ;;  %v6769_v50 = vpack.c.bf16 %v6751_v26, %v6750_v20  ;;  %v6698_v8 = vadd.f32 1.0, %v8432_v44  ;;  %8453 = vpow2.f32 %v7450_v6  ;;  %v11583_v34 = vadd.f32 %v7820_v41, %v11512_v55  ;;  %v6613_v52 = vpop.f32.mrb[77].mxu0 }
 0x6b8   : > { %v8436_v10 = vpop.eup %8435  ;;  %v6696_v29 = vadd.f32 1.0, %v8434_v56  ;;  %v11586_v30 = vadd.f32 %v11512_v55, %v6613_v52  ;;  %v7821_v39 = vpop.f32.mrb[78].mxu0  ;;  %v6768_v51 = vpack.c.bf16 %v6749_v12, %v6748_v33 }
 0x6b9   : > { %v8438_v62 = vpop.eup %8437  ;;  %8455 = vrcp.f32 %v6698_v8  ;;  %v6699_v0 = vadd.f32 1.0, %v8436_v10  ;;  %v7455_v35 = vmul.f32 -1.442695, %v11583_v34  ;;  %v11590_v21 = vadd.f32 %v7821_v39, %v11512_v55  ;;  %v6616_v19 = vpop.f32.mrb[79].mxu0 }
 0x6ba   : > { %v8440_v57 = vpop.eup %8439  ;;  %8457 = vrcp.f32 %v6696_v29  ;;  %v6697_v59 = vadd.f32 1.0, %v8438_v62  ;;  %v7453_v7 = vmul.f32 -1.442695, %v11586_v30  ;;  %v11594_v31 = vadd.f32 %v11512_v55, %v6616_v19  ;;  %7838 = vmatprep.mubr.bf16.mxu1 %v6768_v51 }
 0x6bb   : > { %v8442_v11 = vpop.eup %8441  ;;  %8459 = vrcp.f32 %v6699_v0  ;;  %v7456_v38 = vmul.f32 -1.442695, %v11590_v21  ;;  %7839 = vmatmul.mubr.bf16.vlgmr.msra.gmra.mrb[60].mxu1 %v6769_v50  ;;  %v6754_v36 = vmul.f32 %v8440_v57, %v11531_v54 }
 0x6bc   : > { %v8444_v4 = vpop.eup %8443  ;;  %8461 = vrcp.f32 %v6697_v59  ;;  %v7454_v9 = vmul.f32 -1.442695, %v11594_v31  ;;  %v6752_v55 = vmul.f32 %v8442_v11, %v11534_v53 }
 0x6bd   : > { %v8446_v24 = vpop.eup %8445  ;;  %v6755_v40 = vmul.f32 %v8444_v4, %v11538_v14  ;;  %8463 = vpow2.f32 %v7455_v35 }
 0x6be   : > { %v8448_v48 = vpop.eup %8447  ;;  %v6753_v3 = vmul.f32 %v8446_v24, %v11542_v42  ;;  %8465 = vpow2.f32 %v7453_v7 }
 0x6bf   : > { %v8450_v18 = vpop.eup %8449  ;;  %v6702_v5 = vadd.f32 1.0, %v8448_v48  ;;  %8467 = vpow2.f32 %v7456_v38  ;;  %v6771_v28 = vpack.c.bf16 %v6755_v40, %v6754_v36 }
 0x6c0   : > { %v8452_v47 = vpop.eup %8451  ;;  %v6700_v43 = vadd.f32 1.0, %v8450_v18  ;;  %8469 = vpow2.f32 %v7454_v9  ;;  %v6770_v37 = vpack.c.bf16 %v6753_v3, %v6752_v55 }
 0x6c1   : > { %v8454_v15 = vpop.eup %8453  ;;  %8471 = vrcp.f32 %v6702_v5  ;;  %v6703_v54 = vadd.f32 1.0, %v8452_v47 }
 0x6c2   : > { %8473 = vrcp.f32 %v6700_v43  ;;  %v6701_v14 = vadd.f32 1.0, %v8454_v15  ;;  %7842 = vmatprep.mubr.bf16.mxu1 %v6770_v37 }
 0x6c3   : > { %v8456_v17 = vpop.eup %8455  ;;  %8475 = vrcp.f32 %v6703_v54  ;;  %7843 = vmatmul.mubr.bf16.gmra.mrb[64].mxu1 %v6771_v28 }
 0x6c4   : > { %v8458_v53 = vpop.eup %8457  ;;  %8477 = vrcp.f32 %v6701_v14  ;;  %v6758_v25 = vmul.f32 %v8456_v17, %v11547_v58 }
 0x6c5   : > { %v8460_v42 = vpop.eup %8459  ;;  %v6756_v45 = vmul.f32 %v8458_v53, %v11550_v60 }
 0x6c6   : > { %v8462_v49 = vpop.eup %8461  ;;  %v6759_v16 = vmul.f32 %v8460_v42, %v11554_v63 }
 0x6c7   : > { %v8464_v22 = vpop.eup %8463  ;;  %v6757_v1 = vmul.f32 %v8462_v49, %v11558_v27 }
 0x6c8   : > { %v8466_v61 = vpop.eup %8465  ;;  %v6706_v6 = vadd.f32 1.0, %v8464_v22  ;;  %v6773_v46 = vpack.c.bf16 %v6759_v16, %v6758_v25 }
 0x6c9   : > { %v8468_v20 = vpop.eup %8467  ;;  %v6704_v26 = vadd.f32 1.0, %v8466_v61  ;;  %v6772_v44 = vpack.c.bf16 %v6757_v1, %v6756_v45 }
 0x6ca   : > { %v8470_v33 = vpop.eup %8469  ;;  %8479 = vrcp.f32 %v6706_v6  ;;  %v6707_v12 = vadd.f32 1.0, %v8468_v20 }
 0x6cb   : > { %v8472_v41 = vpop.eup %8471  ;;  %8481 = vrcp.f32 %v6704_v26  ;;  %v6705_v56 = vadd.f32 1.0, %v8470_v33  ;;  %7846 = vmatprep.mubr.bf16.mxu1 %v6772_v44 }
 0x6cc   : > { %v8474_v58 = vpop.eup %8473  ;;  %8483 = vrcp.f32 %v6707_v12  ;;  %7847 = vmatmul.mubr.bf16.gmra.mrb[68].mxu1 %v6773_v46  ;;  %v6762_v27 = vmul.f32 %v8472_v41, %v11563_v13 }
 0x6cd   : > { %v8476_v63 = vpop.eup %8475  ;;  %8485 = vrcp.f32 %v6705_v56  ;;  %v6760_v8 = vmul.f32 %v8474_v58, %v11566_v2 }
 0x6ce   : > { %v8478_v60 = vpop.eup %8477  ;;  %v6763_v50 = vmul.f32 %v8476_v63, %v11570_v23 }
 0x6cf   : > { %v6761_v52 = vmul.f32 %v8478_v60, %v11574_v32  ;;  %v7457_v32 = vld [vmem:[%s11673_s7] ss:$0 sm:$0xff] }
 0x6d0   : > { %v6775_v10 = vpack.c.bf16 %v6763_v50, %v6762_v27 }
 0x6d1   : > { %v6774_v29 = vpack.c.bf16 %v6761_v52, %v6760_v8 }
 0x6d3   : > { %7850 = vmatprep.mubr.bf16.mxu1 %v6774_v29 }
 0x6d4   : > { %v8480_v39 = vpop.eup %8479  ;;  %7851 = vmatmul.mubr.bf16.gmra.mrb[72].mxu1 %v6775_v10 }
 0x6d5   : > { %v8482_v51 = vpop.eup %8481  ;;  %v6766_v35 = vmul.f32 %v8480_v39, %v11583_v34 }
 0x6d6   : > { %v8484_v62 = vpop.eup %8483  ;;  %v6764_v13 = vmul.f32 %v8482_v51, %v11586_v30 }
 0x6d7   : > { %v8486_v0 = vpop.eup %8485  ;;  %v6767_v19 = vmul.f32 %v8484_v62, %v11590_v21 }
 0x6d8   : > { %v6765_v23 = vmul.f32 %v8486_v0, %v11594_v31 }
 0x6d9   : > { %v6777_v2 = vpack.c.bf16 %v6767_v19, %v6766_v35 }
 0x6da   : > { %v6776_v57 = vpack.c.bf16 %v6765_v23, %v6764_v13 }
 0x6dc   : > { %7854 = vmatprep.mubr.bf16.mxu1 %v6776_v57 }
 0x6dd   : > { %7855 = vmatmul.mubr.bf16.gmra.mrb[76].mxu1 %v6777_v2 }
 0x78e   : > { %v7840_v34 = vpop.f32.mrb[60].mxu1 }
 0x78f   : > { %v6892_v30 = vadd.f32 %v7840_v34, %v7457_v32  ;;  %v6883_v21 = vpop.f32.mrb[61].mxu1 }
 0x790   : > { %v6884_v59 = vadd.f32 %v7457_v32, %v6883_v21  ;;  %v7841_v7 = vpop.f32.mrb[62].mxu1 }
 0x791   : > { %6964 = vst.msk [vmem:[%s11621_s15 + $0x10] sm:$0xff] %vm4691_vm1, %v6892_v30  ;;  %v6895_v31 = vadd.f32 %v7841_v7, %v7457_v32  ;;  %v6886_v11 = vpop.f32.mrb[63].mxu1 }
 0x792   : > { %6962 = vst.msk [vmem:[%s11621_s15] sm:$0xff] %vm4691_vm1, %v6884_v59  ;;  %v6887_v38 = vadd.f32 %v7457_v32, %v6886_v11 }
 0x793   : > { %6965 = vst.msk [vmem:[%s11621_s15 + $0x18] sm:$0xff] %vm4691_vm1, %v6895_v31 }
 0x794   : > { %6963 = vst.msk [vmem:[%s11621_s15 + $0x8] sm:$0xff] %vm4691_vm1, %v6887_v38 }
 0x796   : > { %v7844_v4 = vpop.f32.mrb[64].mxu1 }
 0x797   : > { %v6908_v9 = vadd.f32 %v7844_v4, %v7457_v32  ;;  %v6899_v24 = vpop.f32.mrb[65].mxu1 }
 0x798   : > { %v6900_v36 = vadd.f32 %v7457_v32, %v6899_v24  ;;  %v7845_v40 = vpop.f32.mrb[66].mxu1 }
 0x799   : > { %6968 = vst.msk [vmem:[%s11621_s15 + $0x30] sm:$0xff] %vm4691_vm1, %v6908_v9  ;;  %v6911_v48 = vadd.f32 %v7845_v40, %v7457_v32  ;;  %v6902_v55 = vpop.f32.mrb[67].mxu1 }
 0x79a   : > { %6966 = vst.msk [vmem:[%s11621_s15 + $0x20] sm:$0xff] %vm4691_vm1, %v6900_v36  ;;  %v6903_v3 = vadd.f32 %v7457_v32, %v6902_v55 }
 0x79b   : > { %6969 = vst.msk [vmem:[%s11621_s15 + $0x38] sm:$0xff] %vm4691_vm1, %v6911_v48 }
 0x79c   : > { %6967 = vst.msk [vmem:[%s11621_s15 + $0x28] sm:$0xff] %vm4691_vm1, %v6903_v3 }
 0x79f   : > { %v7848_v18 = vpop.f32.mrb[68].mxu1 }
 0x7a0   : > { %v6924_v5 = vadd.f32 %v7848_v18, %v7457_v32  ;;  %v6915_v28 = vpop.f32.mrb[69].mxu1 }
 0x7a1   : > { %v6916_v47 = vadd.f32 %v7457_v32, %v6915_v28  ;;  %v7849_v43 = vpop.f32.mrb[70].mxu1 }
 0x7a2   : > { %6972 = vst.msk [vmem:[%s11621_s15 + $0x50] sm:$0xff] %vm4691_vm1, %v6924_v5  ;;  %v6927_v37 = vadd.f32 %v7849_v43, %v7457_v32  ;;  %v6918_v15 = vpop.f32.mrb[71].mxu1 }
 0x7a3   : > { %6970 = vst.msk [vmem:[%s11621_s15 + $0x40] sm:$0xff] %vm4691_vm1, %v6916_v47  ;;  %v6919_v54 = vadd.f32 %v7457_v32, %v6918_v15 }
 0x7a4   : > { %6973 = vst.msk [vmem:[%s11621_s15 + $0x58] sm:$0xff] %vm4691_vm1, %v6927_v37 }
 0x7a5   : > { %6971 = vst.msk [vmem:[%s11621_s15 + $0x48] sm:$0xff] %vm4691_vm1, %v6919_v54 }
 0x7a7   : > { %v7852_v14 = vpop.f32.mrb[72].mxu1 }
 0x7a8   : > { %v6940_v17 = vadd.f32 %v7852_v14, %v7457_v32  ;;  %v6931_v53 = vpop.f32.mrb[73].mxu1 }
 0x7a9   : > { %v6932_v42 = vadd.f32 %v7457_v32, %v6931_v53  ;;  %v7853_v49 = vpop.f32.mrb[74].mxu1 }
 0x7aa   : > { %6976 = vst.msk [vmem:[%s11621_s15 + $0x70] sm:$0xff] %vm4691_vm1, %v6940_v17  ;;  %v6943_v25 = vadd.f32 %v7853_v49, %v7457_v32  ;;  %v6934_v16 = vpop.f32.mrb[75].mxu1 }
 0x7ab   : > { %6974 = vst.msk [vmem:[%s11621_s15 + $0x60] sm:$0xff] %vm4691_vm1, %v6932_v42  ;;  %v6935_v22 = vadd.f32 %v7457_v32, %v6934_v16 }
 0x7ac   : > { %6977 = vst.msk [vmem:[%s11621_s15 + $0x78] sm:$0xff] %vm4691_vm1, %v6943_v25 }
 0x7ad   : > { %6975 = vst.msk [vmem:[%s11621_s15 + $0x68] sm:$0xff] %vm4691_vm1, %v6935_v22 }
 0x7b0   : > { %v7856_v45 = vpop.f32.mrb[76].mxu1 }
 0x7b1   : > { %v6956_v1 = vadd.f32 %v7856_v45, %v7457_v32  ;;  %v6947_v61 = vpop.f32.mrb[77].mxu1 }
 0x7b2   : > { %v6948_v6 = vadd.f32 %v7457_v32, %v6947_v61  ;;  %v7857_v46 = vpop.f32.mrb[78].mxu1 }
 0x7b3   : > { %6980 = vst.msk [vmem:[%s11621_s15 + $0x90] sm:$0xff] %vm4691_vm1, %v6956_v1  ;;  %v6959_v20 = vadd.f32 %v7857_v46, %v7457_v32  ;;  %v6950_v26 = vpop.f32.mrb[79].mxu1 }
 0x7b4   : > { %6978 = vst.msk [vmem:[%s11621_s15 + $0x80] sm:$0xff] %vm4691_vm1, %v6948_v6  ;;  %v6951_v44 = vadd.f32 %v7457_v32, %v6950_v26 }
 0x7b5   : > { %6981 = vst.msk [vmem:[%s11621_s15 + $0x98] sm:$0xff] %vm4691_vm1, %v6959_v20 }
 0x7b6   : > { %6979 = vst.msk [vmem:[%s11621_s15 + $0x88] sm:$0xff] %vm4691_vm1, %v6951_v44 }
 0x7b7 PF: > { %s18_s27 = sadd.s32 1, %s8494_s27  }
 0x7b8   : > { %p15_p4 = scmp.ge.s32.totalorder %s18_s27, 4  }
 0x7ba   :  { %17 = sbr.rel (!%p15_p4) target bundleno = 1 (0x1), region = 95 }

</bundles_post_ra>
